<compile_context>
chip_gen: v6e
topology: v6e:2x2x1
jax: 0.10.0
libtpu: 0.0.40
codegen_flags: <defaults>
</compile_context>

<pallas_src>
import functools

import numpy as np

import jax
import jax.numpy as jnp
from jax.experimental import pallas as pl
from jax.experimental.pallas import tpu as pltpu


_LANE = 128
_H1 = 32   # per-image row stride, stage 1 (28 rows + 4 pad)
_H2 = 16   # per-image row stride, stage 2 (14 rows + 2 pad)

# name, cin, cout, canvas spatial side wc, valid output side ho
_CONV_DEFS = [
    ("conv1", 1, 8, 28, 26),
    ("conv2", 8, 16, 28, 24),
    ("conv4", 8, 16, 14, 12),   # padding=1 realized via zero ring in its input
    ("conv5", 16, 10, 14, 10),
    ("conv6", 10, 16, 14, 8),
    ("conv7", 16, 8, 14, 6),
    ("conv8", 8, 10, 14, 4),
]


def _pad_to(v, m):
    return ((v + m - 1) // m) * m


# ----------------------------------------------------------------------------
# Kernel
# ----------------------------------------------------------------------------
def _net_kernel(x_ref,
                b1_ref, b2_ref, b4_ref, b5_ref, b6_ref, b7_ref, b8_ref,
                scsh_ref, t_ref, sp_ref, bt1_ref, a_ref, bg_ref, w9_ref,
                out_ref):
    f32 = jnp.float32
    bf16 = jnp.bfloat16

    def shifted_cat(x):
        # Row shifts on the XLU (free slot) instead of MXU matmuls; the three
        # copies are concatenated along the (128-aligned) contraction axis.
        r = x.shape[0]
        x1 = pltpu.roll(x, shift=r - 1, axis=0)   # row r <- row r+1
        x2 = pltpu.roll(x, shift=r - 2, axis=0)   # row r <- row r+2
        return jnp.concatenate([x, x1, x2], axis=-1).astype(bf16)

    def conv_relu_bn(x, b_ref, layer):
        w_out = b_ref.shape[-1]
        # single stacked-K bf16 matmul, f32 accumulation
        y = jnp.dot(shifted_cat(x), b_ref[...], preferred_element_type=f32)
        y = jnp.maximum(y, 0.0)                                   # ReLU
        sc = scsh_ref[2 * layer:2 * layer + 1, 0:w_out]
        sh = scsh_ref[2 * layer + 1:2 * layer + 2, 0:w_out]
        return y * sc + sh                                        # folded eval BN

    x = x_ref[0]                                    # (bn*32, 128) f32 canvas

    x = conv_relu_bn(x, b1_ref, 0)                  # (bn*32, 256)
    x = conv_relu_bn(x, b2_ref, 1)                  # (bn*32, 512)

    # transition1: MaxPool(2,2) via 0/1 selection matmuls + 1x1 conv (16->8)
    # written at a (1,1) offset with an exact-zero ring (== conv4's padding).
    xb = x.astype(bf16)
    u = jnp.maximum(jnp.dot(xb, t_ref[0], preferred_element_type=f32),
                    jnp.dot(xb, t_ref[1], preferred_element_type=f32))
    ub = u.astype(bf16)
    v = jnp.maximum(jnp.dot(sp_ref[0], ub, preferred_element_type=f32),
                    jnp.dot(sp_ref[1], ub, preferred_element_type=f32))
    x = jnp.dot(v.astype(bf16), bt1_ref[...],
                preferred_element_type=f32)         # (bn*16, 128)

    x = conv_relu_bn(x, b4_ref, 2)                  # (bn*16, 256)
    x = conv_relu_bn(x, b5_ref, 3)                  # (bn*16, 256)
    x = conv_relu_bn(x, b6_ref, 4)                  # (bn*16, 256)
    x = conv_relu_bn(x, b7_ref, 5)                  # (bn*16, 128)
    x = conv_relu_bn(x, b8_ref, 6)                  # (bn*16, 256)

    # Head: GAP over the valid 4x4 region (selection matmuls), conv9 (1x1,
    # no bias), log_softmax.  Tiny -> kept in f32.
    g = jnp.dot(jnp.dot(a_ref[...], x, preferred_element_type=f32),
                bg_ref[...], preferred_element_type=f32) * (1.0 / 16.0)
    logits = jnp.dot(g, w9_ref[...], preferred_element_type=f32)   # (bn, 10)
    m = jnp.max(logits, axis=-1, keepdims=True)
    z = logits - m
    lse = jnp.log(jnp.sum(jnp.exp(z), axis=-1, keepdims=True))
    out_ref[0] = z - lse


# ----------------------------------------------------------------------------
# Host-side constant construction (numpy, once at init time)
# ----------------------------------------------------------------------------
def init_params(seed=0):
    """Random eval-mode parameters in PyTorch layouts."""
    rng = np.random.default_rng(seed)
    params = {}
    for name, cin, cout, _, _ in _CONV_DEFS:
        params[name] = {
            "w": (0.1 * rng.standard_normal((cout, cin, 3, 3))).astype(np.float32),
            "gamma": (1.0 + 0.1 * rng.standard_normal(cout)).astype(np.float32),
            "beta": (0.1 * rng.standard_normal(cout)).astype(np.float32),
            "mean": (0.05 * rng.standard_normal(cout)).astype(np.float32),
            "var": (1.0 + 0.1 * rng.random(cout)).astype(np.float32),
        }
    params["t1_w"] = (0.1 * rng.standard_normal((8, 16, 1, 1))).astype(np.float32)
    params["conv9_w"] = (0.1 * rng.standard_normal((10, 10, 1, 1))).astype(np.float32)
    return params


def _conv_weight_stack(w, cin, cout, wc, ho):
    """Stacked-K block-banded weight: rows = [di=0 | di=1 | di=2] input cols."""
    w_in = _pad_to(wc * cin, _LANE)
    w_out = _pad_to(wc * cout, _LANE)
    B = np.zeros((3, w_in, w_out), np.float32)
    for di in range(3):
        for dj in range(3):
            blk = w[:, :, di, dj].T                       # (cin, cout)
            for wo in range(ho):
                B[di, (wo + dj) * cin:(wo + dj + 1) * cin,
                      wo * cout:(wo + 1) * cout] = blk
    return B.reshape(3 * w_in, w_out)


def _scsh_slab(params):
    """All folded BN scale/shift rows packed into one (16, 512) slab."""
    slab = np.zeros((16, 512), np.float32)
    eps = 1e-5
    for l, (name, cin, cout, wc, ho) in enumerate(_CONV_DEFS):
        p = params[name]
        scale = p["gamma"] / np.sqrt(p["var"] + eps)
        shift = p["beta"] - p["mean"] * scale
        slab[2 * l, :wc * cout] = np.tile(scale, wc)
        slab[2 * l + 1, :wc * cout] = np.tile(shift, wc)
    return slab


def _transition_consts(t1_w, block_n):
    """MaxPool(2,2) selection matrices + 1x1 conv placed at a (1,1) offset."""
    c = 16
    T = np.zeros((2, 512, 256), np.float32)               # column pool
    for b in range(2):
        for j in range(12):
            for ch in range(c):
                T[b, (2 * j + b) * c + ch, j * c + ch] = 1.0
    S = np.zeros((2, block_n * _H2, block_n * _H1), np.float32)   # row pool (+1)
    for a in range(2):
        for n in range(block_n):
            for i in range(12):
                S[a, n * _H2 + i + 1, n * _H1 + 2 * i + a] = 1.0
    Bt1 = np.zeros((256, 128), np.float32)                # 1x1 conv, +1 col block
    blk = t1_w[:, :, 0, 0].T                              # (16, 8)
    for j in range(12):
        Bt1[j * 16:(j + 1) * 16, (j + 1) * 8:(j + 2) * 8] = blk
    return T, S, Bt1


def _head_consts(w9, block_n):
    """GAP row/column aggregation over the valid 4x4 region + conv9 weight."""
    A = np.zeros((block_n, block_n * _H2), np.float32)
    for n in range(block_n):
        A[n, n * _H2:n * _H2 + 4] = 1.0
    Bg = np.zeros((256, 10), np.float32)
    for w in range(4):
        for ch in range(10):
            Bg[w * 10 + ch, ch] = 1.0
    W9m = w9[:, :, 0, 0].T.astype(np.float32)             # (Cin=10, Cout=10)
    return A, Bg, W9m


def build_constants(params, block_n):
    """Ordered operand tuple: B1..B8, scsh, T, sp, Bt1, A, Bg, W9."""
    bf16 = jnp.bfloat16
    bs = [jnp.asarray(_conv_weight_stack(params[name]["w"], cin, cout, wc, ho), bf16)
          for name, cin, cout, wc, ho in _CONV_DEFS]
    scsh = jnp.asarray(_scsh_slab(params), jnp.float32)
    T, S, Bt1 = _transition_consts(params["t1_w"], block_n)
    A, Bg, W9 = _head_consts(params["conv9_w"], block_n)
    return tuple(bs) + (
        scsh,
        jnp.asarray(T, bf16), jnp.asarray(S, bf16), jnp.asarray(Bt1, bf16),
        jnp.asarray(A, jnp.float32), jnp.asarray(Bg, jnp.float32),
        jnp.asarray(W9, jnp.float32),
    )


def _const_index_map(g, *, ndim):
    return (0,) * ndim


# ----------------------------------------------------------------------------
# Forward pass
# ----------------------------------------------------------------------------
@jax.jit
def net_forward(x_nchw, consts):
    n = x_nchw.shape[0]
    assert x_nchw.shape[1:] == (1, 28, 28), "Net implies 1x28x28 input"
    block_n = consts[11].shape[0]          # images per grid step (from A)
    num_blocks = n // block_n
    assert num_blocks * block_n == n
    r1 = block_n * _H1

    # Build the padded stage-1 canvas: rows padded 28->32 per image, cols 28->128.
    x = x_nchw.astype(jnp.float32).reshape(n, 28, 28)
    x = jnp.pad(x, ((0, 0), (0, _H1 - 28), (0, _LANE - 28)))   # (n, 32, 128)
    x = x.reshape(num_blocks, r1, _LANE)

    in_specs = [pl.BlockSpec((1, r1, _LANE), lambda g: (g, 0, 0))]
    for c in consts:
        in_specs.append(
            pl.BlockSpec(c.shape, functools.partial(_const_index_map, ndim=c.ndim)))
    out_specs = pl.BlockSpec((1, block_n, 10), lambda g: (g, 0, 0))

    out = pl.pallas_call(
        _net_kernel,
        out_shape=jax.ShapeDtypeStruct((num_blocks, block_n, 10), jnp.float32),
        grid=(num_blocks,),
        in_specs=in_specs,
        out_specs=out_specs,
        compiler_params=pltpu.CompilerParams(
            dimension_semantics=("parallel",)),   # batch blocks -> v7x megacore
    )(x, *consts)
    return out.reshape(n, 10)


# ----------------------------------------------------------------------------
# Pure-JAX reference (re-verification requested by the perf review)
# ----------------------------------------------------------------------------
def _reference_forward(x_nchw, params):
    x = jnp.asarray(x_nchw, jnp.float32)

    def conv(x, w, pad):
        return jax.lax.conv_general_dilated(
            x, jnp.asarray(w), window_strides=(1, 1),
            padding=[(pad, pad), (pad, pad)],
            dimension_numbers=("NCHW", "OIHW", "NCHW"))

    def crb(x, p, pad=0):
        y = jnp.maximum(conv(x, p["w"], pad), 0.0)
        eps = 1e-5
        scale = p["gamma"] / np.sqrt(p["var"] + eps)
        shift = p["beta"] - p["mean"] * scale
        return y * scale[None, :, None, None] + shift[None, :, None, None]

    x = crb(x, params["conv1"])
    x = crb(x, params["conv2"])
    n, c, h, w = x.shape
    x = x.reshape(n, c, h // 2, 2, w // 2, 2).max(axis=(3, 5))   # MaxPool(2,2)
    x = conv(x, params["t1_w"], 0)
    x = crb(x, params["conv4"], pad=1)
    x = crb(x, params["conv5"])
    x = crb(x, params["conv6"])
    x = crb(x, params["conv7"])
    x = crb(x, params["conv8"])
    x = x.mean(axis=(2, 3), keepdims=True)                        # GAP
    x = conv(x, params["conv9_w"], 0).reshape(n, 10)
    return jax.nn.log_softmax(x, axis=-1)


if __name__ == "__main__":
    batch = 2
    block_n = 1   # 1 image per grid step -> grid=(2,), parallel across v7x cores
    params = init_params(seed=0)
    consts = build_constants(params, block_n)

    key = jax.random.PRNGKey(0)
    x = jax.random.normal(key, (batch, 1, 28, 28), jnp.float32)

    out = jax.block_until_ready(net_forward(x, consts))

    assert out.shape == (batch, 10)
    assert bool(jnp.all(jnp.isfinite(out)))
    # log_softmax rows must exponentiate-sum to 1
    row_sums = jnp.sum(jnp.exp(out), axis=-1)
    assert bool(jnp.all(jnp.abs(row_sums - 1.0) < 1e-3))

    # verify against the pure-JAX reference (bf16 weights -> loose tolerance)
    ref = jax.block_until_ready(_reference_forward(x, params))
    max_err = float(jnp.max(jnp.abs(out - ref)))
    assert max_err < 0.1, f"mismatch vs pure-JAX reference: {max_err}"

    print("KERNEL_OK")
</pallas_src>

<mosaic_0001>
module attributes {stable_mosaic.version = 11 : i64} {
  func.func @_net_kernel(%arg0: i32, %arg1: memref<1x32x128xf32, #tpu.memory_space<vmem>>, %arg2: memref<384x256xbf16, #tpu.memory_space<vmem>>, %arg3: memref<768x512xbf16, #tpu.memory_space<vmem>>, %arg4: memref<384x256xbf16, #tpu.memory_space<vmem>>, %arg5: memref<768x256xbf16, #tpu.memory_space<vmem>>, %arg6: memref<768x256xbf16, #tpu.memory_space<vmem>>, %arg7: memref<768x128xbf16, #tpu.memory_space<vmem>>, %arg8: memref<384x256xbf16, #tpu.memory_space<vmem>>, %arg9: memref<16x512xf32, #tpu.memory_space<vmem>>, %arg10: memref<2x512x256xbf16, #tpu.memory_space<vmem>>, %arg11: memref<2x16x32xbf16, #tpu.memory_space<vmem>>, %arg12: memref<256x128xbf16, #tpu.memory_space<vmem>>, %arg13: memref<1x16xf32, #tpu.memory_space<vmem>>, %arg14: memref<256x10xf32, #tpu.memory_space<vmem>>, %arg15: memref<10x10xf32, #tpu.memory_space<vmem>>, %arg16: memref<1x1x10xf32, #tpu.memory_space<vmem>>) attributes {dimension_semantics = [#tpu.dimension_semantics<parallel>], iteration_bounds = array<i64: 2>, scalar_prefetch = 0 : i64, scratch_operands = 0 : i64, tpu.core_type = #tpu.core_type<tc>, window_params = [{transform_indices = @transform_0, window_bounds = array<i64: 1, 32, 128>}, {pipeline_mode = #tpu.pipeline_mode<synchronous>, transform_indices = @transform_1, window_bounds = array<i64: 384, 256>}, {pipeline_mode = #tpu.pipeline_mode<synchronous>, transform_indices = @transform_2, window_bounds = array<i64: 768, 512>}, {pipeline_mode = #tpu.pipeline_mode<synchronous>, transform_indices = @transform_3, window_bounds = array<i64: 384, 256>}, {pipeline_mode = #tpu.pipeline_mode<synchronous>, transform_indices = @transform_4, window_bounds = array<i64: 768, 256>}, {pipeline_mode = #tpu.pipeline_mode<synchronous>, transform_indices = @transform_5, window_bounds = array<i64: 768, 256>}, {pipeline_mode = #tpu.pipeline_mode<synchronous>, transform_indices = @transform_6, window_bounds = array<i64: 768, 128>}, {pipeline_mode = #tpu.pipeline_mode<synchronous>, transform_indices = @transform_7, window_bounds = array<i64: 384, 256>}, {pipeline_mode = #tpu.pipeline_mode<synchronous>, transform_indices = @transform_8, window_bounds = array<i64: 16, 512>}, {pipeline_mode = #tpu.pipeline_mode<synchronous>, transform_indices = @transform_9, window_bounds = array<i64: 2, 512, 256>}, {pipeline_mode = #tpu.pipeline_mode<synchronous>, transform_indices = @transform_10, window_bounds = array<i64: 2, 16, 32>}, {pipeline_mode = #tpu.pipeline_mode<synchronous>, transform_indices = @transform_11, window_bounds = array<i64: 256, 128>}, {pipeline_mode = #tpu.pipeline_mode<synchronous>, transform_indices = @transform_12, window_bounds = array<i64: 1, 16>}, {pipeline_mode = #tpu.pipeline_mode<synchronous>, transform_indices = @transform_13, window_bounds = array<i64: 256, 10>}, {pipeline_mode = #tpu.pipeline_mode<synchronous>, transform_indices = @transform_14, window_bounds = array<i64: 10, 10>}, {transform_indices = @transform_15, window_bounds = array<i64: 1, 1, 10>}]} {
    %c0 = arith.constant 0 : index
    %c0_0 = arith.constant 0 : index
    %c0_1 = arith.constant 0 : index
    %0 = vector.load %arg1[%c0, %c0_0, %c0_1] : memref<1x32x128xf32, #tpu.memory_space<vmem>>, vector<1x32x128xf32>
    %1 = vector.shape_cast %0 : vector<1x32x128xf32> to vector<32x128xf32>
    %c31_i32 = arith.constant 31 : i32
    %2 = tpu.dynamic_rotate %1 by %c31_i32 dim 0 : vector<32x128xf32>, i32 -> vector<32x128xf32>
    %c30_i32 = arith.constant 30 : i32
    %3 = tpu.dynamic_rotate %1 by %c30_i32 dim 0 : vector<32x128xf32>, i32 -> vector<32x128xf32>
    %4 = tpu.concatenate %1, %2, %3 in 1 : vector<32x128xf32>, vector<32x128xf32>, vector<32x128xf32> -> vector<32x384xf32>
    %5 = arith.truncf %4 : vector<32x384xf32> to vector<32x384xbf16>
    %c0_2 = arith.constant 0 : index
    %c0_3 = arith.constant 0 : index
    %6 = vector.load %arg2[%c0_2, %c0_3] : memref<384x256xbf16, #tpu.memory_space<vmem>>, vector<384x256xbf16>
    %cst = arith.constant dense<0.000000e+00> : vector<32x256xf32>
    %7 = tpu.matmul %5, %6, %cst {dimension_numbers = #tpu.dot_dimension_numbers<[1], [0], [0], [1], [0, 0, 1, 1], [], []>} : vector<32x384xbf16>, vector<384x256xbf16>, vector<32x256xf32> -> vector<32x256xf32>
    %cst_4 = arith.constant 0.000000e+00 : f32
    %8 = vector.broadcast %cst_4 : f32 to vector<32x256xf32>
    %9 = arith.maximumf %7, %8 : vector<32x256xf32>
    %c0_5 = arith.constant 0 : index
    %c0_6 = arith.constant 0 : index
    %10 = vector.load %arg9[%c0_5, %c0_6] : memref<16x512xf32, #tpu.memory_space<vmem>>, vector<1x256xf32>
    %c1 = arith.constant 1 : index
    %c0_7 = arith.constant 0 : index
    %11 = vector.load %arg9[%c1, %c0_7] : memref<16x512xf32, #tpu.memory_space<vmem>>, vector<1x256xf32>
    %12 = vector.broadcast %10 : vector<1x256xf32> to vector<32x256xf32>
    %13 = arith.mulf %9, %12 : vector<32x256xf32>
    %14 = vector.broadcast %11 : vector<1x256xf32> to vector<32x256xf32>
    %15 = arith.addf %13, %14 : vector<32x256xf32>
    %c31_i32_8 = arith.constant 31 : i32
    %16 = tpu.dynamic_rotate %15 by %c31_i32_8 dim 0 : vector<32x256xf32>, i32 -> vector<32x256xf32>
    %c30_i32_9 = arith.constant 30 : i32
    %17 = tpu.dynamic_rotate %15 by %c30_i32_9 dim 0 : vector<32x256xf32>, i32 -> vector<32x256xf32>
    %18 = tpu.concatenate %15, %16, %17 in 1 : vector<32x256xf32>, vector<32x256xf32>, vector<32x256xf32> -> vector<32x768xf32>
    %19 = arith.truncf %18 : vector<32x768xf32> to vector<32x768xbf16>
    %c0_10 = arith.constant 0 : index
    %c0_11 = arith.constant 0 : index
    %20 = vector.load %arg3[%c0_10, %c0_11] : memref<768x512xbf16, #tpu.memory_space<vmem>>, vector<768x512xbf16>
    %cst_12 = arith.constant dense<0.000000e+00> : vector<32x512xf32>
    %21 = tpu.matmul %19, %20, %cst_12 {dimension_numbers = #tpu.dot_dimension_numbers<[1], [0], [0], [1], [0, 0, 1, 1], [], []>} : vector<32x768xbf16>, vector<768x512xbf16>, vector<32x512xf32> -> vector<32x512xf32>
    %cst_13 = arith.constant 0.000000e+00 : f32
    %22 = vector.broadcast %cst_13 : f32 to vector<32x512xf32>
    %23 = arith.maximumf %21, %22 : vector<32x512xf32>
    %c2 = arith.constant 2 : index
    %c0_14 = arith.constant 0 : index
    %24 = vector.load %arg9[%c2, %c0_14] : memref<16x512xf32, #tpu.memory_space<vmem>>, vector<1x512xf32>
    %c3 = arith.constant 3 : index
    %c0_15 = arith.constant 0 : index
    %25 = vector.load %arg9[%c3, %c0_15] : memref<16x512xf32, #tpu.memory_space<vmem>>, vector<1x512xf32>
    %26 = vector.broadcast %24 : vector<1x512xf32> to vector<32x512xf32>
    %27 = arith.mulf %23, %26 : vector<32x512xf32>
    %28 = vector.broadcast %25 : vector<1x512xf32> to vector<32x512xf32>
    %29 = arith.addf %27, %28 : vector<32x512xf32>
    %30 = arith.truncf %29 : vector<32x512xf32> to vector<32x512xbf16>
    %c0_16 = arith.constant 0 : index
    %c0_17 = arith.constant 0 : index
    %c0_18 = arith.constant 0 : index
    %31 = vector.load %arg10[%c0_16, %c0_17, %c0_18] : memref<2x512x256xbf16, #tpu.memory_space<vmem>>, vector<1x512x256xbf16>
    %32 = vector.shape_cast %31 : vector<1x512x256xbf16> to vector<512x256xbf16>
    %cst_19 = arith.constant dense<0.000000e+00> : vector<32x256xf32>
    %33 = tpu.matmul %30, %32, %cst_19 {dimension_numbers = #tpu.dot_dimension_numbers<[1], [0], [0], [1], [0, 0, 1, 1], [], []>} : vector<32x512xbf16>, vector<512x256xbf16>, vector<32x256xf32> -> vector<32x256xf32>
    %c1_20 = arith.constant 1 : index
    %c0_21 = arith.constant 0 : index
    %c0_22 = arith.constant 0 : index
    %34 = vector.load %arg10[%c1_20, %c0_21, %c0_22] : memref<2x512x256xbf16, #tpu.memory_space<vmem>>, vector<1x512x256xbf16>
    %35 = vector.shape_cast %34 : vector<1x512x256xbf16> to vector<512x256xbf16>
    %cst_23 = arith.constant dense<0.000000e+00> : vector<32x256xf32>
    %36 = tpu.matmul %30, %35, %cst_23 {dimension_numbers = #tpu.dot_dimension_numbers<[1], [0], [0], [1], [0, 0, 1, 1], [], []>} : vector<32x512xbf16>, vector<512x256xbf16>, vector<32x256xf32> -> vector<32x256xf32>
    %37 = arith.maximumf %33, %36 : vector<32x256xf32>
    %38 = arith.truncf %37 : vector<32x256xf32> to vector<32x256xbf16>
    %c0_24 = arith.constant 0 : index
    %c0_25 = arith.constant 0 : index
    %c0_26 = arith.constant 0 : index
    %39 = vector.load %arg11[%c0_24, %c0_25, %c0_26] : memref<2x16x32xbf16, #tpu.memory_space<vmem>>, vector<1x16x32xbf16>
    %40 = vector.shape_cast %39 : vector<1x16x32xbf16> to vector<16x32xbf16>
    %cst_27 = arith.constant dense<0.000000e+00> : vector<16x256xf32>
    %41 = tpu.matmul %40, %38, %cst_27 {dimension_numbers = #tpu.dot_dimension_numbers<[1], [0], [0], [1], [0, 0, 1, 1], [], []>} : vector<16x32xbf16>, vector<32x256xbf16>, vector<16x256xf32> -> vector<16x256xf32>
    %c1_28 = arith.constant 1 : index
    %c0_29 = arith.constant 0 : index
    %c0_30 = arith.constant 0 : index
    %42 = vector.load %arg11[%c1_28, %c0_29, %c0_30] : memref<2x16x32xbf16, #tpu.memory_space<vmem>>, vector<1x16x32xbf16>
    %43 = vector.shape_cast %42 : vector<1x16x32xbf16> to vector<16x32xbf16>
    %cst_31 = arith.constant dense<0.000000e+00> : vector<16x256xf32>
    %44 = tpu.matmul %43, %38, %cst_31 {dimension_numbers = #tpu.dot_dimension_numbers<[1], [0], [0], [1], [0, 0, 1, 1], [], []>} : vector<16x32xbf16>, vector<32x256xbf16>, vector<16x256xf32> -> vector<16x256xf32>
    %45 = arith.maximumf %41, %44 : vector<16x256xf32>
    %46 = arith.truncf %45 : vector<16x256xf32> to vector<16x256xbf16>
    %c0_32 = arith.constant 0 : index
    %c0_33 = arith.constant 0 : index
    %47 = vector.load %arg12[%c0_32, %c0_33] : memref<256x128xbf16, #tpu.memory_space<vmem>>, vector<256x128xbf16>
    %cst_34 = arith.constant dense<0.000000e+00> : vector<16x128xf32>
    %48 = tpu.matmul %46, %47, %cst_34 {dimension_numbers = #tpu.dot_dimension_numbers<[1], [0], [0], [1], [0, 0, 1, 1], [], []>} : vector<16x256xbf16>, vector<256x128xbf16>, vector<16x128xf32> -> vector<16x128xf32>
    %c15_i32 = arith.constant 15 : i32
    %49 = tpu.dynamic_rotate %48 by %c15_i32 dim 0 : vector<16x128xf32>, i32 -> vector<16x128xf32>
    %c14_i32 = arith.constant 14 : i32
    %50 = tpu.dynamic_rotate %48 by %c14_i32 dim 0 : vector<16x128xf32>, i32 -> vector<16x128xf32>
    %51 = tpu.concatenate %48, %49, %50 in 1 : vector<16x128xf32>, vector<16x128xf32>, vector<16x128xf32> -> vector<16x384xf32>
    %52 = arith.truncf %51 : vector<16x384xf32> to vector<16x384xbf16>
    %c0_35 = arith.constant 0 : index
    %c0_36 = arith.constant 0 : index
    %53 = vector.load %arg4[%c0_35, %c0_36] : memref<384x256xbf16, #tpu.memory_space<vmem>>, vector<384x256xbf16>
    %cst_37 = arith.constant dense<0.000000e+00> : vector<16x256xf32>
    %54 = tpu.matmul %52, %53, %cst_37 {dimension_numbers = #tpu.dot_dimension_numbers<[1], [0], [0], [1], [0, 0, 1, 1], [], []>} : vector<16x384xbf16>, vector<384x256xbf16>, vector<16x256xf32> -> vector<16x256xf32>
    %cst_38 = arith.constant 0.000000e+00 : f32
    %55 = vector.broadcast %cst_38 : f32 to vector<16x256xf32>
    %56 = arith.maximumf %54, %55 : vector<16x256xf32>
    %c4 = arith.constant 4 : index
    %c0_39 = arith.constant 0 : index
    %57 = vector.load %arg9[%c4, %c0_39] : memref<16x512xf32, #tpu.memory_space<vmem>>, vector<1x256xf32>
    %c5 = arith.constant 5 : index
    %c0_40 = arith.constant 0 : index
    %58 = vector.load %arg9[%c5, %c0_40] : memref<16x512xf32, #tpu.memory_space<vmem>>, vector<1x256xf32>
    %59 = vector.broadcast %57 : vector<1x256xf32> to vector<16x256xf32>
    %60 = arith.mulf %56, %59 : vector<16x256xf32>
    %61 = vector.broadcast %58 : vector<1x256xf32> to vector<16x256xf32>
    %62 = arith.addf %60, %61 : vector<16x256xf32>
    %c15_i32_41 = arith.constant 15 : i32
    %63 = tpu.dynamic_rotate %62 by %c15_i32_41 dim 0 : vector<16x256xf32>, i32 -> vector<16x256xf32>
    %c14_i32_42 = arith.constant 14 : i32
    %64 = tpu.dynamic_rotate %62 by %c14_i32_42 dim 0 : vector<16x256xf32>, i32 -> vector<16x256xf32>
    %65 = tpu.concatenate %62, %63, %64 in 1 : vector<16x256xf32>, vector<16x256xf32>, vector<16x256xf32> -> vector<16x768xf32>
    %66 = arith.truncf %65 : vector<16x768xf32> to vector<16x768xbf16>
    %c0_43 = arith.constant 0 : index
    %c0_44 = arith.constant 0 : index
    %67 = vector.load %arg5[%c0_43, %c0_44] : memref<768x256xbf16, #tpu.memory_space<vmem>>, vector<768x256xbf16>
    %cst_45 = arith.constant dense<0.000000e+00> : vector<16x256xf32>
    %68 = tpu.matmul %66, %67, %cst_45 {dimension_numbers = #tpu.dot_dimension_numbers<[1], [0], [0], [1], [0, 0, 1, 1], [], []>} : vector<16x768xbf16>, vector<768x256xbf16>, vector<16x256xf32> -> vector<16x256xf32>
    %cst_46 = arith.constant 0.000000e+00 : f32
    %69 = vector.broadcast %cst_46 : f32 to vector<16x256xf32>
    %70 = arith.maximumf %68, %69 : vector<16x256xf32>
    %c6 = arith.constant 6 : index
    %c0_47 = arith.constant 0 : index
    %71 = vector.load %arg9[%c6, %c0_47] : memref<16x512xf32, #tpu.memory_space<vmem>>, vector<1x256xf32>
    %c7 = arith.constant 7 : index
    %c0_48 = arith.constant 0 : index
    %72 = vector.load %arg9[%c7, %c0_48] : memref<16x512xf32, #tpu.memory_space<vmem>>, vector<1x256xf32>
    %73 = vector.broadcast %71 : vector<1x256xf32> to vector<16x256xf32>
    %74 = arith.mulf %70, %73 : vector<16x256xf32>
    %75 = vector.broadcast %72 : vector<1x256xf32> to vector<16x256xf32>
    %76 = arith.addf %74, %75 : vector<16x256xf32>
    %c15_i32_49 = arith.constant 15 : i32
    %77 = tpu.dynamic_rotate %76 by %c15_i32_49 dim 0 : vector<16x256xf32>, i32 -> vector<16x256xf32>
    %c14_i32_50 = arith.constant 14 : i32
    %78 = tpu.dynamic_rotate %76 by %c14_i32_50 dim 0 : vector<16x256xf32>, i32 -> vector<16x256xf32>
    %79 = tpu.concatenate %76, %77, %78 in 1 : vector<16x256xf32>, vector<16x256xf32>, vector<16x256xf32> -> vector<16x768xf32>
    %80 = arith.truncf %79 : vector<16x768xf32> to vector<16x768xbf16>
    %c0_51 = arith.constant 0 : index
    %c0_52 = arith.constant 0 : index
    %81 = vector.load %arg6[%c0_51, %c0_52] : memref<768x256xbf16, #tpu.memory_space<vmem>>, vector<768x256xbf16>
    %cst_53 = arith.constant dense<0.000000e+00> : vector<16x256xf32>
    %82 = tpu.matmul %80, %81, %cst_53 {dimension_numbers = #tpu.dot_dimension_numbers<[1], [0], [0], [1], [0, 0, 1, 1], [], []>} : vector<16x768xbf16>, vector<768x256xbf16>, vector<16x256xf32> -> vector<16x256xf32>
    %cst_54 = arith.constant 0.000000e+00 : f32
    %83 = vector.broadcast %cst_54 : f32 to vector<16x256xf32>
    %84 = arith.maximumf %82, %83 : vector<16x256xf32>
    %c8 = arith.constant 8 : index
    %c0_55 = arith.constant 0 : index
    %85 = vector.load %arg9[%c8, %c0_55] : memref<16x512xf32, #tpu.memory_space<vmem>>, vector<1x256xf32>
    %c9 = arith.constant 9 : index
    %c0_56 = arith.constant 0 : index
    %86 = vector.load %arg9[%c9, %c0_56] : memref<16x512xf32, #tpu.memory_space<vmem>>, vector<1x256xf32>
    %87 = vector.broadcast %85 : vector<1x256xf32> to vector<16x256xf32>
    %88 = arith.mulf %84, %87 : vector<16x256xf32>
    %89 = vector.broadcast %86 : vector<1x256xf32> to vector<16x256xf32>
    %90 = arith.addf %88, %89 : vector<16x256xf32>
    %c15_i32_57 = arith.constant 15 : i32
    %91 = tpu.dynamic_rotate %90 by %c15_i32_57 dim 0 : vector<16x256xf32>, i32 -> vector<16x256xf32>
    %c14_i32_58 = arith.constant 14 : i32
    %92 = tpu.dynamic_rotate %90 by %c14_i32_58 dim 0 : vector<16x256xf32>, i32 -> vector<16x256xf32>
    %93 = tpu.concatenate %90, %91, %92 in 1 : vector<16x256xf32>, vector<16x256xf32>, vector<16x256xf32> -> vector<16x768xf32>
    %94 = arith.truncf %93 : vector<16x768xf32> to vector<16x768xbf16>
    %c0_59 = arith.constant 0 : index
    %c0_60 = arith.constant 0 : index
    %95 = vector.load %arg7[%c0_59, %c0_60] : memref<768x128xbf16, #tpu.memory_space<vmem>>, vector<768x128xbf16>
    %cst_61 = arith.constant dense<0.000000e+00> : vector<16x128xf32>
    %96 = tpu.matmul %94, %95, %cst_61 {dimension_numbers = #tpu.dot_dimension_numbers<[1], [0], [0], [1], [0, 0, 1, 1], [], []>} : vector<16x768xbf16>, vector<768x128xbf16>, vector<16x128xf32> -> vector<16x128xf32>
    %cst_62 = arith.constant 0.000000e+00 : f32
    %97 = vector.broadcast %cst_62 : f32 to vector<16x128xf32>
    %98 = arith.maximumf %96, %97 : vector<16x128xf32>
    %c10 = arith.constant 10 : index
    %c0_63 = arith.constant 0 : index
    %99 = vector.load %arg9[%c10, %c0_63] : memref<16x512xf32, #tpu.memory_space<vmem>>, vector<1x128xf32>
    %c11 = arith.constant 11 : index
    %c0_64 = arith.constant 0 : index
    %100 = vector.load %arg9[%c11, %c0_64] : memref<16x512xf32, #tpu.memory_space<vmem>>, vector<1x128xf32>
    %101 = vector.broadcast %99 : vector<1x128xf32> to vector<16x128xf32>
    %102 = arith.mulf %98, %101 : vector<16x128xf32>
    %103 = vector.broadcast %100 : vector<1x128xf32> to vector<16x128xf32>
    %104 = arith.addf %102, %103 : vector<16x128xf32>
    %c15_i32_65 = arith.constant 15 : i32
    %105 = tpu.dynamic_rotate %104 by %c15_i32_65 dim 0 : vector<16x128xf32>, i32 -> vector<16x128xf32>
    %c14_i32_66 = arith.constant 14 : i32
    %106 = tpu.dynamic_rotate %104 by %c14_i32_66 dim 0 : vector<16x128xf32>, i32 -> vector<16x128xf32>
    %107 = tpu.concatenate %104, %105, %106 in 1 : vector<16x128xf32>, vector<16x128xf32>, vector<16x128xf32> -> vector<16x384xf32>
    %108 = arith.truncf %107 : vector<16x384xf32> to vector<16x384xbf16>
    %c0_67 = arith.constant 0 : index
    %c0_68 = arith.constant 0 : index
    %109 = vector.load %arg8[%c0_67, %c0_68] : memref<384x256xbf16, #tpu.memory_space<vmem>>, vector<384x256xbf16>
    %cst_69 = arith.constant dense<0.000000e+00> : vector<16x256xf32>
    %110 = tpu.matmul %108, %109, %cst_69 {dimension_numbers = #tpu.dot_dimension_numbers<[1], [0], [0], [1], [0, 0, 1, 1], [], []>} : vector<16x384xbf16>, vector<384x256xbf16>, vector<16x256xf32> -> vector<16x256xf32>
    %cst_70 = arith.constant 0.000000e+00 : f32
    %111 = vector.broadcast %cst_70 : f32 to vector<16x256xf32>
    %112 = arith.maximumf %110, %111 : vector<16x256xf32>
    %c12 = arith.constant 12 : index
    %c0_71 = arith.constant 0 : index
    %113 = vector.load %arg9[%c12, %c0_71] : memref<16x512xf32, #tpu.memory_space<vmem>>, vector<1x256xf32>
    %c13 = arith.constant 13 : index
    %c0_72 = arith.constant 0 : index
    %114 = vector.load %arg9[%c13, %c0_72] : memref<16x512xf32, #tpu.memory_space<vmem>>, vector<1x256xf32>
    %115 = vector.broadcast %113 : vector<1x256xf32> to vector<16x256xf32>
    %116 = arith.mulf %112, %115 : vector<16x256xf32>
    %117 = vector.broadcast %114 : vector<1x256xf32> to vector<16x256xf32>
    %118 = arith.addf %116, %117 : vector<16x256xf32>
    %c0_73 = arith.constant 0 : index
    %c0_74 = arith.constant 0 : index
    %119 = vector.load %arg13[%c0_73, %c0_74] : memref<1x16xf32, #tpu.memory_space<vmem>>, vector<1x16xf32>
    %cst_75 = arith.constant dense<0.000000e+00> : vector<1x256xf32>
    %120 = tpu.matmul %119, %118, %cst_75 {dimension_numbers = #tpu.dot_dimension_numbers<[1], [0], [0], [1], [0, 0, 1, 1], [], []>} : vector<1x16xf32>, vector<16x256xf32>, vector<1x256xf32> -> vector<1x256xf32>
    %c0_76 = arith.constant 0 : index
    %c0_77 = arith.constant 0 : index
    %121 = vector.load %arg14[%c0_76, %c0_77] : memref<256x10xf32, #tpu.memory_space<vmem>>, vector<256x10xf32>
    %cst_78 = arith.constant dense<0.000000e+00> : vector<1x10xf32>
    %122 = tpu.matmul %120, %121, %cst_78 {dimension_numbers = #tpu.dot_dimension_numbers<[1], [0], [0], [1], [0, 0, 1, 1], [], []>} : vector<1x256xf32>, vector<256x10xf32>, vector<1x10xf32> -> vector<1x10xf32>
    %cst_79 = arith.constant 6.250000e-02 : f32
    %123 = vector.broadcast %cst_79 : f32 to vector<1x10xf32>
    %124 = arith.mulf %122, %123 : vector<1x10xf32>
    %c0_80 = arith.constant 0 : index
    %c0_81 = arith.constant 0 : index
    %125 = vector.load %arg15[%c0_80, %c0_81] : memref<10x10xf32, #tpu.memory_space<vmem>>, vector<10x10xf32>
    %cst_82 = arith.constant dense<0.000000e+00> : vector<1x10xf32>
    %126 = tpu.matmul %124, %125, %cst_82 {dimension_numbers = #tpu.dot_dimension_numbers<[1], [0], [0], [1], [0, 0, 1, 1], [], []>} : vector<1x10xf32>, vector<10x10xf32>, vector<1x10xf32> -> vector<1x10xf32>
    %cst_83 = arith.constant dense<0xFF800000> : vector<1xf32>
    %127 = vector.multi_reduction <maximumf>, %126, %cst_83 [1] : vector<1x10xf32> to vector<1xf32>
    %128 = vector.shape_cast %127 : vector<1xf32> to vector<1x1xf32>
    %129 = vector.broadcast %128 : vector<1x1xf32> to vector<1x10xf32>
    %130 = arith.subf %126, %129 : vector<1x10xf32>
    %131 = math.exp %130 : vector<1x10xf32>
    %cst_84 = arith.constant dense<0.000000e+00> : vector<1xf32>
    %132 = vector.multi_reduction <add>, %131, %cst_84 [1] : vector<1x10xf32> to vector<1xf32>
    %133 = vector.shape_cast %132 : vector<1xf32> to vector<1x1xf32>
    %134 = math.log %133 : vector<1x1xf32>
    %135 = vector.broadcast %134 : vector<1x1xf32> to vector<1x10xf32>
    %136 = arith.subf %130, %135 : vector<1x10xf32>
    %c0_85 = arith.constant 0 : index
    %c0_86 = arith.constant 0 : index
    %c0_87 = arith.constant 0 : index
    %137 = vector.load %arg16[%c0_85, %c0_86, %c0_87] : memref<1x1x10xf32, #tpu.memory_space<vmem>>, vector<1x1x10xf32>
    %138 = vector.shape_cast %137 : vector<1x1x10xf32> to vector<1x10xf32>
    %139 = vector.shape_cast %136 : vector<1x10xf32> to vector<1x1x10xf32>
    tpu.vector_store %arg16[%c0_85, %c0_86, %c0_87], %139 {strides = array<i32>} : memref<1x1x10xf32, #tpu.memory_space<vmem>>, vector<1x1x10xf32>,
    return
  }
  func.func @transform_0(%arg0: i32) -> (i32, i32, i32) {
    %c0_i32 = arith.constant 0 : i32
    %c0_i32_0 = arith.constant 0 : i32
    %c0_i32_1 = arith.constant 0 : i32
    return %arg0, %c0_i32, %c0_i32_0 : i32, i32, i32
  }
  func.func @transform_1(%arg0: i32) -> (i32, i32) {
    %c0_i32 = arith.constant 0 : i32
    %c0_i32_0 = arith.constant 0 : i32
    %c0_i32_1 = arith.constant 0 : i32
    return %c0_i32, %c0_i32_0 : i32, i32
  }
  func.func @transform_2(%arg0: i32) -> (i32, i32) {
    %c0_i32 = arith.constant 0 : i32
    %c0_i32_0 = arith.constant 0 : i32
    %c0_i32_1 = arith.constant 0 : i32
    return %c0_i32, %c0_i32_0 : i32, i32
  }
  func.func @transform_3(%arg0: i32) -> (i32, i32) {
    %c0_i32 = arith.constant 0 : i32
    %c0_i32_0 = arith.constant 0 : i32
    %c0_i32_1 = arith.constant 0 : i32
    return %c0_i32, %c0_i32_0 : i32, i32
  }
  func.func @transform_4(%arg0: i32) -> (i32, i32) {
    %c0_i32 = arith.constant 0 : i32
    %c0_i32_0 = arith.constant 0 : i32
    %c0_i32_1 = arith.constant 0 : i32
    return %c0_i32, %c0_i32_0 : i32, i32
  }
  func.func @transform_5(%arg0: i32) -> (i32, i32) {
    %c0_i32 = arith.constant 0 : i32
    %c0_i32_0 = arith.constant 0 : i32
    %c0_i32_1 = arith.constant 0 : i32
    return %c0_i32, %c0_i32_0 : i32, i32
  }
  func.func @transform_6(%arg0: i32) -> (i32, i32) {
    %c0_i32 = arith.constant 0 : i32
    %c0_i32_0 = arith.constant 0 : i32
    %c0_i32_1 = arith.constant 0 : i32
    return %c0_i32, %c0_i32_0 : i32, i32
  }
  func.func @transform_7(%arg0: i32) -> (i32, i32) {
    %c0_i32 = arith.constant 0 : i32
    %c0_i32_0 = arith.constant 0 : i32
    %c0_i32_1 = arith.constant 0 : i32
    return %c0_i32, %c0_i32_0 : i32, i32
  }
  func.func @transform_8(%arg0: i32) -> (i32, i32) {
    %c0_i32 = arith.constant 0 : i32
    %c0_i32_0 = arith.constant 0 : i32
    %c0_i32_1 = arith.constant 0 : i32
    return %c0_i32, %c0_i32_0 : i32, i32
  }
  func.func @transform_9(%arg0: i32) -> (i32, i32, i32) {
    %c0_i32 = arith.constant 0 : i32
    %c0_i32_0 = arith.constant 0 : i32
    %c0_i32_1 = arith.constant 0 : i32
    %c0_i32_2 = arith.constant 0 : i32
    return %c0_i32, %c0_i32_0, %c0_i32_1 : i32, i32, i32
  }
  func.func @transform_10(%arg0: i32) -> (i32, i32, i32) {
    %c0_i32 = arith.constant 0 : i32
    %c0_i32_0 = arith.constant 0 : i32
    %c0_i32_1 = arith.constant 0 : i32
    %c0_i32_2 = arith.constant 0 : i32
    return %c0_i32, %c0_i32_0, %c0_i32_1 : i32, i32, i32
  }
  func.func @transform_11(%arg0: i32) -> (i32, i32) {
    %c0_i32 = arith.constant 0 : i32
    %c0_i32_0 = arith.constant 0 : i32
    %c0_i32_1 = arith.constant 0 : i32
    return %c0_i32, %c0_i32_0 : i32, i32
  }
  func.func @transform_12(%arg0: i32) -> (i32, i32) {
    %c0_i32 = arith.constant 0 : i32
    %c0_i32_0 = arith.constant 0 : i32
    %c0_i32_1 = arith.constant 0 : i32
    return %c0_i32, %c0_i32_0 : i32, i32
  }
  func.func @transform_13(%arg0: i32) -> (i32, i32) {
    %c0_i32 = arith.constant 0 : i32
    %c0_i32_0 = arith.constant 0 : i32
    %c0_i32_1 = arith.constant 0 : i32
    return %c0_i32, %c0_i32_0 : i32, i32
  }
  func.func @transform_14(%arg0: i32) -> (i32, i32) {
    %c0_i32 = arith.constant 0 : i32
    %c0_i32_0 = arith.constant 0 : i32
    %c0_i32_1 = arith.constant 0 : i32
    return %c0_i32, %c0_i32_0 : i32, i32
  }
  func.func @transform_15(%arg0: i32) -> (i32, i32, i32) {
    %c0_i32 = arith.constant 0 : i32
    %c0_i32_0 = arith.constant 0 : i32
    %c0_i32_1 = arith.constant 0 : i32
    return %arg0, %c0_i32, %c0_i32_0 : i32, i32, i32
  }
}

</mosaic_0001>

<bundles_post_ra>
// kernel: net_forward.1
= control target key start
LH: loop header
LB: loop body
LE: loop exit
PB: predicated region body
PF: predicated region fallthrough
CT: control target
= control target key end

     0   :  { %s10587_s0 = inlined_call_operand.vmem [shape: f32[2,32,128], index: 0, kind: input, shape index: {}]   ;;  %s10588_s1 = inlined_call_operand.vmem [shape: bf16[384,256], index: 1, kind: input, shape index: {}]   ;;  %s10589_s2 = inlined_call_operand.hbm [shape: bf16[768,512], index: 2, kind: input, shape index: {}]   ;;  %s10590_s3 = inlined_call_operand.hbm [shape: bf16[384,256], index: 3, kind: input, shape index: {}]   ;;  %s10591_s4 = inlined_call_operand.hbm [shape: bf16[768,256], index: 4, kind: input, shape index: {}]   ;;  %s10592_s5 = inlined_call_operand.hbm [shape: bf16[768,256], index: 5, kind: input, shape index: {}]   ;;  %s10593_s6 = inlined_call_operand.hbm [shape: bf16[768,128], index: 6, kind: input, shape index: {}]   ;;  %s10594_s7 = inlined_call_operand.hbm [shape: bf16[384,256], index: 7, kind: input, shape index: {}]   ;;  %s10595_s8 = inlined_call_operand.vmem [shape: f32[16,512], index: 8, kind: input, shape index: {}]   ;;  %s10596_s9 = inlined_call_operand.hbm [shape: bf16[2,512,256], index: 9, kind: input, shape index: {}]   ;;  %s10597_s10 = inlined_call_operand.vmem [shape: bf16[2,16,32], index: 10, kind: input, shape index: {}]   ;;  %s10598_s11 = inlined_call_operand.vmem [shape: bf16[256,128], index: 11, kind: input, shape index: {}]   ;;  %s10599_s12 = inlined_call_operand.vmem [shape: f32[1,16], index: 12, kind: input, shape index: {}]   ;;  %s10600_s13 = inlined_call_operand.vmem [shape: f32[256,10], index: 13, kind: input, shape index: {}]   ;;  %s10601_s14 = inlined_call_operand.vmem [shape: f32[10,10], index: 14, kind: input, shape index: {}]   ;;  %s10602_s15 = inlined_call_operand.hbm [shape: f32[2,1,10], index: 15, kind: output, shape index: {}]  }
   0x1   :  { %10615 = sst [smem:[#allocation26_spill]] %s10590_s3 }
   0x2   :  { %10616 = sst [smem:[#allocation27_spill]] %s10602_s15 }
   0x3   :  { %20 = vsyncpa [#allocation3], 0 }
   0x4   :  { %21 = vsyncpa [#allocation6], 0 }
   0x5   :  { %22 = vsyncpa [#allocation9], 0 }
   0x6   :  { %23 = vsyncpa [#allocation12], 0 }
   0x7   :  { %24 = vsyncpa [#allocation4], 0 }
   0x8   :  { %26 = vsyncpa [#allocation4 + $0x1], 0  ;;  %s9710_s18 = smov 0   ;;  %s9712_s19 = smov 0  }
   0x9   :  { %s9714_s20 = smov 0   ;;  %s9716_s21 = smov 0  }
   0xa LB: > { %10617 = sst [smem:[#allocation20_spill]] %s9599_s18  ;;  %s9731_s22 = sadd.s32 4294967295, %s9611_s21   ;;  %s9611_s21 = sphi %s9716_s21, %s10644_s21   ;;  %s9607_s20 = sphi %s9714_s20, %s10646_s20   ;;  %s9603_s19 = sphi %s9712_s19, %s10648_s19   ;;  %s9599_s18 = sphi %s9710_s18, %s10647_s18  }
   0xb   : > { %10618 = sst [smem:[#allocation21_spill]] %s9607_s20  ;;  %s7283_s23 = sadd.s32 4294967294, %s9611_s21  }
   0xc   : > { %10619 = sst [smem:[#allocation22_spill]] %s9611_s21  ;;  %s9735_s24 = sadd.s32 1, %s9611_s21  }
   0xd   : > { %10620 = sst [smem:[#allocation23_spill]] %s9735_s24  ;;  %s359_s25 = sadd.s32 1, %s9607_s20 }
   0xe   : > { %s356_s26 = ssub.s32 %s9611_s21, %s9735_s24  ;;  %p369_p0 = scmp.ne.s32.totalorder %s9607_s20, %s9603_s19 }
   0xf   : > { %p357_p1 = scmp.eq.s32.totalorder %s356_s26, 0  ;;  %p370_p2 = scmp.eq.s32.totalorder %s9731_s22, 1 }
  0x10   : > { %p375_p3 = scmp.ne.s32.totalorder %s9603_s19, %s9599_s18  ;;  %p376_p4 = scmp.eq.s32.totalorder %s7283_s23, 1 }
  0x11   : > { %s9746_s27 = scalar_select %p357_p1, %s9607_s20, %s359_s25  }
  0x12   : > { %p9748_p5 = por %p370_p2, %p369_p0  ;;  %p9752_p6 = por %p376_p4, %p375_p3 }
  0x13   : > { %10621 = sst [smem:[#allocation24_spill]] %s9746_s27  ;;  %p7284_p7 = scmp.ge.s32.totalorder %s9611_s21, 1 }
  0x14   : > { %s10623_s29 = scalar_select %p9752_p6, 1, 0 }
  0x15   : > { %p383_p8 = scmp.lt.s32.totalorder %s9611_s21, 3  ;;  %p10610_p9 = scmp.eq.s32.totalorder %s9731_s22, 0 }
  0x16   : > { %10624 = sst [smem:[#allocation25_spill]] %s10623_s29  ;;  %s9613_s16 = smov [#allocation5]  }
  0x17   : > { %p9759_p10 = pnand %p7284_p7, %p383_p8  ;;  %s411_s17 = sshll.u32 %s9613_s16, 4  ;;  %s412_s17 = int_to_ptr.vmem [resolvable:$true] %s411_s17 }
  0x18   : > { %s9614_s25 = smov [#allocation8]   ;;  %s9615_s27 = smov [#allocation11]  }
  0x19   : > { %p8210_p11 = pneg %p9759_p10  ;;  %s437_s26 = sshll.u32 %s9614_s25, 4  ;;  %s438_s26 = int_to_ptr.vmem [resolvable:$true] %s437_s26 }
  0x1a   : > { %s463_s20 = sshll.u32 %s9615_s27, 4  ;;  %s9364_s16 = scalar_lea.vmem %s412_s17, 6144  ;;  %s464_s20 = int_to_ptr.vmem [resolvable:$true] %s463_s20 }
  0x1b   : > { %p9767_p12 = pnand %p10610_p9, %p8210_p11  ;;  %p9365_p0 = scmp.ne.s32.totalorder %s412_s17, %s9364_s16 }
  0x1c   : > { %p9372_p3 = scmp.lt.s32.totalorder %s412_s17, %s412_s17  ;;  %p9373_p4 = scmp.lt.s32.totalorder %s9364_s16, %s9364_s16 }
  0x1d   : > { %p9773_p13 = pneg %p9767_p12 }
  0x1e   : > { %p9374_p7 = por %p9373_p4, %p9372_p3 }
  0x1f   : > { %p9367_p1 = pnand %p9365_p0, %p9773_p13 }
  0x21   : > { %p9368_p2 = pneg %p9367_p1 }
  0x23   : > { %p9375_p8 = pnand %p9374_p7, %p9368_p2 }
  0x25   : > { %9378 = shalt.err (!%p9375_p8)
}
  0x26   : > { %s10611_s25 = smov 128   ;;  %s10613_s27 = smov 8  }
  0x27   : > { %s10628_s3 = sld [smem:[#allocation26_spill]]  ;;  %s9390_s21 = scalar_lea.vmem %s438_s26, 12288 }
  0x28   : > { %p9391_p11 = scmp.ne.s32.totalorder %s438_s26, %s9390_s21  ;;  %p9398_p3 = scmp.lt.s32.totalorder %s438_s26, %s438_s26 }
  0x29   : > { %p9399_p2 = scmp.lt.s32.totalorder %s9390_s21, %s9390_s21 }
  0x2a   : > { %p9393_p0 = pnand %p9391_p11, %p9773_p13 }
  0x2b   : > { %p9400_p4 = por %p9399_p2, %p9398_p3 }
  0x2c   : > { %p9394_p1 = pneg %p9393_p0 }
  0x2d   : > { %8216 = dma.hbm_to_vmem [thread:$0]  (!%p9767_p12), %s10628_s3, 6144, %s412_s17, [#allocation6], %s10611_s25, %s10611_s25, %s10613_s27  }
  0x2e   : > { %p9401_p7 = pnand %p9400_p4, %p9394_p1 }
  0x30   : > { %9404 = shalt.err (!%p9401_p7)
}
  0x31   : > { %8222 = dma.hbm_to_vmem [thread:$0]  (!%p9767_p12), %s10592_s5, 12288, %s438_s26, [#allocation9], %s10611_s25, %s10611_s25, %s10613_s27  }
  0x32   : > { %s9416_s18 = scalar_lea.vmem %s464_s20, 6144  ;;  %p9424_p9 = scmp.lt.s32.totalorder %s464_s20, %s464_s20 }
  0x33   : > { %p9417_p8 = scmp.ne.s32.totalorder %s464_s20, %s9416_s18  ;;  %p9425_p3 = scmp.lt.s32.totalorder %s9416_s18, %s9416_s18 }
  0x35   : > { %p9419_p11 = pnand %p9417_p8, %p9773_p13  ;;  %p9426_p1 = por %p9425_p3, %p9424_p9 }
  0x37   : > { %p9420_p0 = pneg %p9419_p11 }
  0x39   : > { %p9427_p2 = pnand %p9426_p1, %p9420_p0 }
  0x3b   : > { %9430 = shalt.err (!%p9427_p2)
}
  0x3c   : > { %8228 = dma.hbm_to_vmem [thread:$0]  (!%p9767_p12), %s10594_s7, 6144, %s464_s20, [#allocation12], %s10611_s25, %s10611_s25, %s10613_s27  }
  0x3d   : > { %s9618_s29 = smov [#allocation2]  }
  0x3e   : > { %s398_s17 = sshll.u32 %s9618_s29, 4  ;;  %s399_s17 = int_to_ptr.vmem [resolvable:$true] %s398_s17 }
  0x3f   : > { %s9442_s26 = scalar_lea.vmem %s399_s17, 24576  ;;  %p9450_p8 = scmp.lt.s32.totalorder %s399_s17, %s399_s17 }
  0x40   : > { %p9443_p4 = scmp.ne.s32.totalorder %s399_s17, %s9442_s26  ;;  %p9451_p11 = scmp.lt.s32.totalorder %s9442_s26, %s9442_s26 }
  0x42   : > { %p9445_p7 = pnand %p9443_p4, %p9773_p13  ;;  %p9452_p0 = por %p9451_p11, %p9450_p8 }
  0x44   : > { %p9446_p9 = pneg %p9445_p7 }
  0x46   : > { %p9453_p3 = pnand %p9452_p0, %p9446_p9 }
  0x48   : > { %9456 = shalt.err (!%p9453_p3)
}
  0x49   : > { %s9619_s16 = smov 256   ;;  %s9620_s18 = smov 16  }
  0x4a   : > { %8213 = dma.hbm_to_vmem [thread:$0]  (!%p9767_p12), %s10589_s2, 24576, %s399_s17, [#allocation3], %s9619_s16, %s9619_s16, %s9620_s18  }
  0x4b   : > { %s9621_s15 = smov [#allocation7]   ;;  %s9622_s25 = smov [#allocation10]  }
  0x4c   : > { %s424_s29 = sshll.u32 %s9621_s15, 4  ;;  %s450_s27 = sshll.u32 %s9622_s25, 4  ;;  %s425_s29 = int_to_ptr.vmem [resolvable:$true] %s424_s29  ;;  %s451_s27 = int_to_ptr.vmem [resolvable:$true] %s450_s27 }
  0x4d   : > { %s9468_s3 = scalar_lea.vmem %s425_s29, 12288  ;;  %p9476_p7 = scmp.lt.s32.totalorder %s425_s29, %s425_s29 }
  0x4e   : > { %p9469_p1 = scmp.ne.s32.totalorder %s425_s29, %s9468_s3  ;;  %p9477_p9 = scmp.lt.s32.totalorder %s9468_s3, %s9468_s3 }
  0x50   : > { %p9471_p2 = pnand %p9469_p1, %p9773_p13  ;;  %p9478_p8 = por %p9477_p9, %p9476_p7 }
  0x52   : > { %p9472_p4 = pneg %p9471_p2 }
  0x54   : > { %p9479_p11 = pnand %p9478_p8, %p9472_p4 }
  0x56   : > { %9482 = shalt.err (!%p9479_p11)
}
  0x57   : > { %s10629_s26 = smov 8   ;;  %s10630_s17 = smov 128  }
  0x58   : > { %8219 = dma.hbm_to_vmem [thread:$0]  (!%p9767_p12), %s10591_s4, 12288, %s425_s29, [#allocation6], %s10630_s17, %s10630_s17, %s10629_s26  }
  0x59   : > { %s9494_s25 = scalar_lea.vmem %s451_s27, 6144  ;;  %p9502_p2 = scmp.lt.s32.totalorder %s451_s27, %s451_s27 }
  0x5a   : > { %p9495_p0 = scmp.ne.s32.totalorder %s451_s27, %s9494_s25  ;;  %p9503_p6 = scmp.lt.s32.totalorder %s9494_s25, %s9494_s25 }
  0x5c   : > { %p9497_p3 = pnand %p9495_p0, %p9773_p13  ;;  %p9504_p7 = por %p9503_p6, %p9502_p2 }
  0x5e   : > { %p9498_p1 = pneg %p9497_p3 }
  0x60   : > { %p9505_p4 = pnand %p9504_p7, %p9498_p1 }
  0x62   : > { %9508 = shalt.err (!%p9505_p4)
}
  0x63   : > { %s9623_s3 = smov 64   ;;  %s9624_s21 = smov 4  }
  0x64   : > { %8225 = dma.hbm_to_vmem [thread:$0]  (!%p9767_p12), %s10593_s6, 6144, %s451_s27, [#allocation9], %s9623_s3, %s9623_s3, %s9624_s21  }
  0x65   : > { %s9625_s29 = smov [#allocation13]  }
  0x66   : > { %s479_s16 = sshll.u32 %s9625_s29, 4  ;;  %s480_s16 = int_to_ptr.vmem [resolvable:$true] %s479_s16 }
  0x67   : > { %s9520_s18 = scalar_lea.vmem %s480_s16, 16384  ;;  %p9528_p6 = scmp.lt.s32.totalorder %s480_s16, %s480_s16 }
  0x68   : > { %p9521_p9 = scmp.ne.s32.totalorder %s480_s16, %s9520_s18  ;;  %p9529_p0 = scmp.lt.s32.totalorder %s9520_s18, %s9520_s18 }
  0x6a   : > { %p9523_p8 = pnand %p9521_p9, %p9773_p13  ;;  %p9530_p3 = por %p9529_p0, %p9528_p6 }
  0x6c   : > { %p9524_p11 = pneg %p9523_p8 }
  0x6e   : > { %p9531_p1 = pnand %p9530_p3, %p9524_p11 }
  0x70   : > { %9534 = shalt.err (!%p9531_p1)
}
  0x71   : > { %8231 = dma.hbm_to_vmem [thread:$0]  (!%p9767_p12), %s10596_s9, 16384, %s480_s16, [#allocation12], %s10630_s17, %s10630_s17, %s10629_s26  }
  0x72   : > { %518 = sbr.rel (%p9759_p10) target bundleno = 3585 (0xe01), region = 80  ;;  %p10631_p13 = scmp.eq.s32.totalorder (!%p9759_p10), %s9731_s22, 0 }
  0x77   : > { %9578 = dma.done.wait (%p10631_p13), [#allocation3], 24576   ;;  %p10632_p2 = pmov %p10631_p13 }
  0x79   : > { %9580 = vsyncadd (%p10632_p2), [#allocation3], 4294942720  ;;  %p10633_p7 = pmov %p10632_p2 }
  0x7a   : > { %p10634_p4 = pmov %p10632_p2 }
  0x7b   : > { %9582 = dma.done.wait (%p10633_p7), [#allocation6], 18432  }
  0x7c   : > { %9584 = vsyncadd (%p10634_p4), [#allocation6], 4294948864  ;;  %p10635_p9 = pmov %p10632_p2 }
  0x7d   : > { %p10636_p12 = pmov %p10632_p2 }
  0x7e   : > { %9586 = dma.done.wait (%p10635_p9), [#allocation9], 18432  }
  0x7f   : > { %9588 = vsyncadd (%p10636_p12), [#allocation9], 4294948864  ;;  %p10637_p10 = pmov %p10632_p2 }
  0x80   : > { %p10638_p8 = pmov %p10632_p2 }
  0x81   : > { %9590 = dma.done.wait (%p10637_p10), [#allocation12], 22528  }
  0x82   : > { %9592 = vsyncadd (%p10638_p8), [#allocation12], 4294944768  ;;  %v9626_v0 = vmov 0   ;;  %v8299_v1 = vld [vmem:[%s10588_s1 + $0x74] ss:$8 sps:$4 sm:$0xff]   ;;  %p589_p11 = scmp.lt.s32.totalorder %s9731_s22, 1  ;;  %v603_v26 = vlaneseq }
  0x83   : > { %998 = vmatprep.mubr.bf16.mxu1 %v9626_v0  ;;  %v8301_v2 = vld [vmem:[%s10588_s1 + $0x70] ss:$8 sps:$4 sm:$0xff]   ;;  %913 = vmatprep.subr.bf16.mxu0 %v8299_v1  ;;  %v8302_v3 = vld [vmem:[%s10588_s1 + $0x64] ss:$8 sps:$4 sm:$0xff]   ;;  %v8304_v4 = vld [vmem:[%s10588_s1 + $0x60] ss:$8 sps:$4 sm:$0xff]  }
  0x84   : > { %914 = vmatpush1.bf16.msra.mxu0 %v8301_v2  ;;  %v8305_v5 = vld [vmem:[%s10588_s1 + $0x54] ss:$8 sps:$4 sm:$0xff]   ;;  %v8307_v6 = vld [vmem:[%s10588_s1 + $0x50] ss:$8 sps:$4 sm:$0xff]   ;;  %v8308_v7 = vld [vmem:[%s10588_s1 + $0x44] ss:$8 sps:$4 sm:$0xff]  }
  0x85   : > { %915 = vmatprep.subr.bf16.mxu0 %v8302_v3  ;;  %v8320_v8 = vld [vmem:[%s10588_s1 + $0x174] ss:$8 sps:$4 sm:$0xff]   ;;  %v8322_v9 = vld [vmem:[%s10588_s1 + $0x170] ss:$8 sps:$4 sm:$0xff]   ;;  %v8310_v10 = vld [vmem:[%s10588_s1 + $0x40] ss:$8 sps:$4 sm:$0xff]  }
  0x86   : > { %v8311_v11 = vld [vmem:[%s10588_s1 + $0x34] ss:$8 sps:$4 sm:$0xff]   ;;  %966 = vmatprep.subr.bf16.mxu1 %v8320_v8  ;;  %v8326_v12 = vld [vmem:[%s10588_s1 + $0x164] ss:$8 sps:$4 sm:$0xff]   ;;  %v8328_v13 = vld [vmem:[%s10588_s1 + $0x160] ss:$8 sps:$4 sm:$0xff]  }
  0x87   : > { %967 = vmatpush1.bf16.msra.mxu1 %v8322_v9  ;;  %v8313_v14 = vld [vmem:[%s10588_s1 + $0x30] ss:$8 sps:$4 sm:$0xff]   ;;  %v8332_v15 = vld [vmem:[%s10588_s1 + $0x154] ss:$8 sps:$4 sm:$0xff]   ;;  %v8314_v16 = vld [vmem:[%s10588_s1 + $0x24] ss:$8 sps:$4 sm:$0xff]  }
  0x88   : > { %916 = vmatpush1.bf16.msra.mxu0 %v8304_v4  ;;  %968 = vmatprep.subr.bf16.mxu1 %v8326_v12  ;;  %v8334_v17 = vld [vmem:[%s10588_s1 + $0x150] ss:$8 sps:$4 sm:$0xff]   ;;  %v8338_v18 = vld [vmem:[%s10588_s1 + $0x144] ss:$8 sps:$4 sm:$0xff]   ;;  %v8316_v19 = vld [vmem:[%s10588_s1 + $0x20] ss:$8 sps:$4 sm:$0xff]  }
  0x89   : > { %917 = vmatprep.subr.bf16.mxu0 %v8305_v5  ;;  %v8317_v20 = vld [vmem:[%s10588_s1 + $0x14] ss:$8 sps:$4 sm:$0xff]   ;;  %s590_s25 = scalar_select %p589_p11, %s9731_s22, 1  ;;  %v8340_v21 = vld [vmem:[%s10588_s1 + $0x140] ss:$8 sps:$4 sm:$0xff]   ;;  %v9954_v31 = vshrl.u32 %v603_v26, 7 }
  0x8a   : > { %v8344_v22 = vld [vmem:[%s10588_s1 + $0x134] ss:$8 sps:$4 sm:$0xff]   ;;  %v8319_v23 = vld [vmem:[%s10588_s1 + $0x10] ss:$8 sps:$4 sm:$0xff]   ;;  %v8323_v24 = vld [vmem:[%s10588_s1 + $0x4] ss:$8 sps:$4 sm:$0xff]  }
  0x8b   : > { %969 = vmatpush1.bf16.msra.mxu1 %v8328_v13  ;;  %s8046_s20 = sshll.u32 %s590_s25, 5  ;;  %v8346_v25 = vld [vmem:[%s10588_s1 + $0x130] ss:$8 sps:$4 sm:$0xff]   ;;  %v8350_v27 = vld [vmem:[%s10588_s1 + $0x124] ss:$8 sps:$4 sm:$0xff]   ;;  %vm605_vm0 = vcmp.lt.s32.totalorder %v9954_v31, 7 }
  0x8c   : > { %918 = vmatpush1.bf16.msra.mxu0 %v8307_v6  ;;  %970 = vmatprep.subr.bf16.mxu1 %v8332_v15  ;;  %v8325_v28 = vld [vmem:[%s10588_s1] ss:$8 sps:$4 sm:$0xff]   ;;  %s9946_s25 = scalar_lea.vmem %s10587_s0, %s8046_s20  ;;  %v8329_v29 = vld [vmem:[%s10588_s1 + $0xf4] ss:$8 sps:$4 sm:$0xff]   ;;  %v8331_v32 = vld [vmem:[%s10588_s1 + $0xf0] ss:$8 sps:$4 sm:$0xff]  }
  0x8d   : > { %919 = vmatprep.subr.bf16.mxu0 %v8308_v7  ;;  %v8352_v30 = vld [vmem:[%s10588_s1 + $0x120] ss:$8 sps:$4 sm:$0xff]   ;;  %v8356_v33 = vld [vmem:[%s10588_s1 + $0x114] ss:$8 sps:$4 sm:$0xff]   ;;  %v8335_v38 = vld [vmem:[%s10588_s1 + $0xe4] ss:$8 sps:$4 sm:$0xff]  }
  0x8e   : > { %v9963_v34 = vld [vmem:[%s9946_s25] sm:$0xff]  ;;  %v9966_v35 = vld [vmem:[%s9946_s25 + $0x8] sm:$0xff]  ;;  %v9969_v36 = vld [vmem:[%s9946_s25 + $0x10] sm:$0xff]  ;;  %vm614_vm1 = vcmp.lt.s32.totalorder %v9954_v31, 6  ;;  %vm3684_vm2 = vcmask 261120   ;;  %vm6874_vm3 = vcmask 130048  }
  0x8f   : > { %971 = vmatpush1.bf16.msra.mxu1 %v8334_v17  ;;  %v599_v37 = vrot.slane %v9963_v34, 1  ;;  %v8358_v39 = vld [vmem:[%s10588_s1 + $0x110] ss:$8 sps:$4 sm:$0xff]   ;;  %v600_v40 = vrot.slane %v9966_v35, 1  ;;  %v610_v41 = vrot.slane %v9963_v34, 2  ;;  %v611_v42 = vrot.slane %v9966_v35, 2 }
  0x90   : > { %920 = vmatpush1.bf16.msra.mxu0 %v8310_v10  ;;  %972 = vmatprep.subr.bf16.mxu1 %v8338_v18  ;;  %v612_v43 = vrot.slane %v9969_v36, 2  ;;  %v601_v44 = vrot.slane %v9969_v36, 1  ;;  %v8362_v45 = vld [vmem:[%s10588_s1 + $0x104] ss:$8 sps:$4 sm:$0xff]   ;;  %v8337_v47 = vld [vmem:[%s10588_s1 + $0xe0] ss:$8 sps:$4 sm:$0xff]   ;;  %v619_v26 = vpack.c.bf16 %v9966_v35, %v9963_v34 }
  0x91   : > { %921 = vmatprep.subr.bf16.mxu0 %v8311_v11  ;;  %v608_v46 = vsel %vm605_vm0, %v599_v37, %v600_v40  ;;  %v8341_v49 = vld [vmem:[%s10588_s1 + $0xd4] ss:$8 sps:$4 sm:$0xff]   ;;  %v8364_v51 = vld [vmem:[%s10588_s1 + $0x100] ss:$8 sps:$4 sm:$0xff]   ;;  %v617_v53 = vsel %vm614_vm1, %v610_v41, %v611_v42  ;;  %v8343_v56 = vld [vmem:[%s10588_s1 + $0xd0] ss:$8 sps:$4 sm:$0xff]  }
  0x92   : > { %v607_v48 = vsel %vm605_vm0, %v600_v40, %v601_v44  ;;  %v616_v52 = vsel %vm614_vm1, %v611_v42, %v612_v43  ;;  %v10010_v54 = vld [vmem:[%s9946_s25 + $0x18] sm:$0xff]  ;;  %v8373_v55 = vld [vmem:[#allocation2 + $0xe4] ss:$16 sps:$4 sm:$0xff]   ;;  %v8371_v60 = vld [vmem:[#allocation2 + $0xe0] ss:$16 sps:$4 sm:$0xff]   ;;  %vm7058_vm4 = vcmask 1041408  }
  0x93   : > { %973 = vmatpush1.bf16.msra.mxu1 %v8340_v21  ;;  %v620_v50 = vpack.c.bf16 %v607_v48, %v608_v46  ;;  %v8347_v57 = vld [vmem:[%s10588_s1 + $0xc4] ss:$8 sps:$4 sm:$0xff]   ;;  %v621_v58 = vpack.c.bf16 %v616_v52, %v617_v53  ;;  %v613_v59 = vrot.slane %v10010_v54, 2  ;;  %v8349_v62 = vld [vmem:[%s10588_s1 + $0xc0] ss:$8 sps:$4 sm:$0xff]   ;;  %v622_v34 = vpack.c.bf16 %v10010_v54, %v9969_v36  ;;  %s587_s27 = sand.u32 1, %s9603_s19  }
  0x94   : > { %922 = vmatpush1.bf16.msra.mxu0 %v8313_v14  ;;  %974 = vmatprep.subr.bf16.mxu1 %v8344_v22  ;;  %v8376_v61 = vld [vmem:[#allocation2 + $0xc4] ss:$16 sps:$4 sm:$0xff]   ;;  %v8374_v3 = vld [vmem:[#allocation2 + $0xc0] ss:$16 sps:$4 sm:$0xff]   ;;  %vm9628_vm5 = vmmov 0   ;;  %vm7054_vm6 = vcmask 80896  }
  0x95   : > { %923 = vmatprep.subr.bf16.mxu0 %v8314_v16  ;;  %945 = vmatprep.mubr.bf16.mxu0 %v620_v50  ;;  %v8353_v63 = vld [vmem:[%s10588_s1 + $0xb4] ss:$8 sps:$4 sm:$0xff]   ;;  %v615_v1 = vsel %vm614_vm1, %v612_v43, %v613_v59  ;;  %v618_v2 = vsel %vm614_vm1, %v613_v59, %v610_v41  ;;  %v8355_v5 = vld [vmem:[%s10588_s1 + $0xb0] ss:$8 sps:$4 sm:$0xff]   ;;  %v8359_v6 = vld [vmem:[%s10588_s1 + $0xa4] ss:$8 sps:$4 sm:$0xff]  }
  0x96   : > { %v8382_v4 = vld [vmem:[#allocation2 + $0xa4] ss:$16 sps:$4 sm:$0xff]   ;;  %v624_v7 = vpack.c.bf16 %v618_v2, %v615_v1  ;;  %v8380_v8 = vld [vmem:[#allocation2 + $0xa0] ss:$16 sps:$4 sm:$0xff]   ;;  %v602_v16 = vrot.slane %v10010_v54, 1  ;;  %vm7132_vm7 = vcmask 73728  }
  0x97   : > { %975 = vmatpush1.bf16.msra.mxu1 %v8346_v25  ;;  %v8388_v9 = vld [vmem:[#allocation2 + $0x84] ss:$16 sps:$4 sm:$0xff]   ;;  %v8361_v10 = vld [vmem:[%s10588_s1 + $0xa0] ss:$8 sps:$4 sm:$0xff]   ;;  %v8367_v14 = vld [vmem:[%s10588_s1 + $0x90] ss:$8 sps:$4 sm:$0xff]  }
  0x98   : > { %924 = vmatpush1.bf16.msra.mxu0 %v8316_v19  ;;  %976 = vmatprep.subr.bf16.mxu1 %v8350_v27  ;;  %v8365_v11 = vld [vmem:[%s10588_s1 + $0x94] ss:$8 sps:$4 sm:$0xff]   ;;  %v8386_v12 = vld [vmem:[#allocation2 + $0x80] ss:$16 sps:$4 sm:$0xff]   ;;  %v8368_v15 = vld [vmem:[%s10588_s1 + $0x84] ss:$8 sps:$4 sm:$0xff]   ;;  %v606_v22 = vsel %vm605_vm0, %v601_v44, %v602_v16 }
  0x99   : > { %925 = vmatprep.subr.bf16.mxu0 %v8317_v20  ;;  %v8394_v13 = vld [vmem:[#allocation2 + $0x64] ss:$16 sps:$4 sm:$0xff]   ;;  %v8370_v17 = vld [vmem:[%s10588_s1 + $0x80] ss:$8 sps:$4 sm:$0xff]   ;;  %s8043_s24 = sshll.u32 %s9731_s22, 4  ;;  %s588_s25 = scalar_lea.vmem [#allocation14], %s587_s27 }
  0x9a   : > { %v8392_v18 = vld [vmem:[#allocation2 + $0x60] ss:$16 sps:$4 sm:$0xff]   ;;  %v8379_v19 = vld [vmem:[#allocation2 + $0x2e4] ss:$16 sps:$4 sm:$0xff]   ;;  %s7159_s30 = sshll.u32 %s588_s25, 4  ;;  %s10639_s17 = sld [smem:[#allocation27_spill]]  ;;  %s7160_s30 = int_to_ptr.vmem [resolvable:$true] %s7159_s30 }
  0x9b   : > { %977 = vmatpush1.bf16.msra.mxu1 %v8352_v30  ;;  %v8400_v20 = vld [vmem:[#allocation2 + $0x44] ss:$16 sps:$4 sm:$0xff]   ;;  %v8398_v21 = vld [vmem:[#allocation2 + $0x40] ss:$16 sps:$4 sm:$0xff]   ;;  %s7147_s21 = scalar_lea.sflag [#allocation4], %s587_s27  ;;  %s9535_s15 = scalar_lea.vmem %s7160_s30, 16 }
  0x9c   : > { %926 = vmatpush1.bf16.msra.mxu0 %v8319_v23  ;;  %978 = vmatprep.subr.bf16.mxu1 %v8356_v33  ;;  %v609_v23 = vsel %vm605_vm0, %v602_v16, %v599_v37  ;;  %v8377_v25 = vld [vmem:[#allocation2 + $0x2e0] ss:$16 sps:$4 sm:$0xff]   ;;  %v8385_v27 = vld [vmem:[#allocation2 + $0x2c4] ss:$16 sps:$4 sm:$0xff]   ;;  %p9536_p6 = scmp.ne.s32.totalorder %s7160_s30, %s9535_s15  ;;  %s9629_s29 = smov [#allocation14]  }
  0x9d   : > { %927 = vmatprep.subr.bf16.mxu0 %v8323_v24  ;;  %v8406_v24 = vld [vmem:[#allocation2 + $0x24] ss:$16 sps:$4 sm:$0xff]   ;;  %v8410_v37 = vld [vmem:[#allocation2] ss:$16 sps:$4 sm:$0xff]   ;;  %s9539_s20 = sshll.u32 %s9629_s29, 4  ;;  %s9540_s20 = int_to_ptr.vmem [resolvable:$false] %s9539_s20 }
  0x9e   : > { %v8412_v30 = vld [vmem:[#allocation2 + $0x4] ss:$16 sps:$4 sm:$0xff]   ;;  %v8416_v40 = vld [vmem:[#allocation2 + $0x1e0] ss:$16 sps:$4 sm:$0xff]   ;;  %p9537_p0 = pnand %p9536_p6, %p9748_p5  ;;  %s9541_s22 = scalar_lea.vmem %s9540_s20, 32 }
  0x9f   : > { %979 = vmatpush1.bf16.msra.mxu1 %v8358_v39  ;;  %v8391_v33 = vld [vmem:[#allocation2 + $0x2a4] ss:$16 sps:$4 sm:$0xff]   ;;  %v8389_v39 = vld [vmem:[#allocation2 + $0x2a0] ss:$16 sps:$4 sm:$0xff]   ;;  %p9542_p1 = scmp.lt.s32.totalorder %s7160_s30, %s9540_s20  ;;  %p9543_p13 = scmp.lt.s32.totalorder %s9541_s22, %s9535_s15 }
  0xa0   : > { %928 = vmatpush1.bf16.msra.mxu0 %v8325_v28  ;;  %980 = vmatprep.subr.bf16.mxu1 %v8362_v45  ;;  %v623_v28 = vpack.c.bf16 %v609_v23, %v606_v22  ;;  %v8397_v35 = vld [vmem:[#allocation2 + $0x284] ss:$16 sps:$4 sm:$0xff]   ;;  %v8395_v42 = vld [vmem:[#allocation2 + $0x280] ss:$16 sps:$4 sm:$0xff]   ;;  %s7157_s3 = scalar_lea.hbm %s10639_s17, %s8043_s24  ;;  %p9538_p3 = pneg %p9537_p0 }
  0xa1   : > { %929 = vmatprep.subr.bf16.mxu0 %v8329_v29  ;;  %v8404_v29 = vld [vmem:[#allocation2 + $0x20] ss:$16 sps:$4 sm:$0xff]   ;;  %v8424_v41 = vld [vmem:[#allocation2 + $0x1c4] ss:$16 sps:$4 sm:$0xff]   ;;  %p9544_p2 = por %p9543_p13, %p9542_p1 }
  0xa2   : > { %v8403_v43 = vld [vmem:[#allocation2 + $0x264] ss:$16 sps:$4 sm:$0xff]   ;;  %v8422_v44 = vld [vmem:[#allocation2 + $0x1c0] ss:$16 sps:$4 sm:$0xff]  }
  0xa3   : > { %981 = vmatpush1.bf16.msra.mxu1 %v8364_v51  ;;  %v8430_v45 = vld [vmem:[#allocation2 + $0x1a4] ss:$16 sps:$4 sm:$0xff]   ;;  %v8401_v46 = vld [vmem:[#allocation2 + $0x260] ss:$16 sps:$4 sm:$0xff]   ;;  %p9545_p7 = pnand %p9544_p2, %p9538_p3 }
  0xa4   : > { %930 = vmatpush2.bf16.msra.mxu0 %v8331_v32  ;;  %2264 = vmatprep.subr.bf16.mxu1 %v8373_v55  ;;  %v8383_v32 = vld [vmem:[#allocation2 + $0x2c0] ss:$16 sps:$4 sm:$0xff]   ;;  %v8421_v51 = vld [vmem:[#allocation2 + $0x204] ss:$16 sps:$4 sm:$0xff]  }
  0xa5   : > { %931 = vmatprep.subr.bf16.mxu0 %v8335_v38  ;;  %v8418_v38 = vld [vmem:[#allocation2 + $0x1e4] ss:$16 sps:$4 sm:$0xff]   ;;  %v8428_v36 = vld [vmem:[#allocation2 + $0x1a0] ss:$16 sps:$4 sm:$0xff]  }
  0xa6   : > { %999 = vmatmul.mubr.bf16.vlgmr.msra.gmra.mxu1 %v621_v58  ;;  %v8407_v48 = vld [vmem:[#allocation2 + $0x240] ss:$16 sps:$4 sm:$0xff]   ;;  %v8427_v53 = vld [vmem:[#allocation2 + $0x3e4] ss:$16 sps:$4 sm:$0xff]  }
  0xa7   : > { %1008 = vmatprep.mubr.bf16.mxu1 %v9626_v0  ;;  %2265 = vmatpush1.bf16.msra.mxu1 %v8371_v60  ;;  %v8413_v50 = vld [vmem:[#allocation2 + $0x220] ss:$16 sps:$4 sm:$0xff]   ;;  %v8436_v58 = vld [vmem:[#allocation2 + $0x184] ss:$16 sps:$4 sm:$0xff]  }
  0xa8   : > { %932 = vmatpush2.bf16.msra.mxu0 %v8337_v47  ;;  %2266 = vmatprep.subr.bf16.mxu1 %v8376_v61  ;;  %v8409_v47 = vld [vmem:[#allocation2 + $0x244] ss:$16 sps:$4 sm:$0xff]   ;;  %v8419_v52 = vld [vmem:[#allocation2 + $0x200] ss:$16 sps:$4 sm:$0xff]  }
  0xa9   : > { %933 = vmatprep.subr.bf16.mxu0 %v8341_v49  ;;  %v8415_v49 = vld [vmem:[#allocation2 + $0x224] ss:$16 sps:$4 sm:$0xff]   ;;  %v8425_v54 = vld [vmem:[#allocation2 + $0x3e0] ss:$16 sps:$4 sm:$0xff]  }
  0xaa   : > { %v8431_v55 = vld [vmem:[#allocation2 + $0x3c0] ss:$16 sps:$4 sm:$0xff]   ;;  %v8439_v59 = vld [vmem:[#allocation2 + $0x3a4] ss:$16 sps:$4 sm:$0xff]  }
  0xab   : > { %2267 = vmatpush1.bf16.msra.mxu1 %v8374_v3  ;;  %v8437_v60 = vld [vmem:[#allocation2 + $0x3a0] ss:$16 sps:$4 sm:$0xff]   ;;  %v8442_v61 = vld [vmem:[#allocation2 + $0x164] ss:$16 sps:$4 sm:$0xff]  }
  0xac   : > { %934 = vmatpush2.bf16.msra.mxu0 %v8343_v56  ;;  %2268 = vmatprep.subr.bf16.mxu1 %v8382_v4  ;;  %v8433_v56 = vld [vmem:[#allocation2 + $0x3c4] ss:$16 sps:$4 sm:$0xff]   ;;  %v8443_v1 = vld [vmem:[#allocation2 + $0x380] ss:$16 sps:$4 sm:$0xff]  }
  0xad   : > { %935 = vmatprep.subr.bf16.mxu0 %v8347_v57  ;;  %v8434_v57 = vld [vmem:[#allocation2 + $0x180] ss:$16 sps:$4 sm:$0xff]   ;;  %v8448_v3 = vld [vmem:[#allocation2 + $0x144] ss:$16 sps:$4 sm:$0xff]  }
  0xae   : > { %1009 = vmatmul.mubr.bf16.gmra.mxu1 %v624_v7  ;;  %v8446_v2 = vld [vmem:[#allocation2 + $0x140] ss:$16 sps:$4 sm:$0xff]   ;;  %v8451_v4 = vld [vmem:[#allocation2 + $0x364] ss:$16 sps:$4 sm:$0xff]  }
  0xaf   : > { %2269 = vmatpush1.bf16.msra.mxu1 %v8380_v8  ;;  %v8452_v7 = vld [vmem:[#allocation2 + $0x120] ss:$16 sps:$4 sm:$0xff]   ;;  %v8457_v8 = vld [vmem:[#allocation2 + $0x344] ss:$16 sps:$4 sm:$0xff]  }
  0xb0   : > { %936 = vmatpush2.bf16.msra.mxu0 %v8349_v62  ;;  %2270 = vmatprep.subr.bf16.mxu1 %v8388_v9  ;;  %v8440_v62 = vld [vmem:[#allocation2 + $0x160] ss:$16 sps:$4 sm:$0xff]  }
  0xb1   : > { %937 = vmatprep.subr.bf16.mxu0 %v8353_v63  ;;  %v8445_v63 = vld [vmem:[#allocation2 + $0x384] ss:$16 sps:$4 sm:$0xff]   ;;  %v8455_v9 = vld [vmem:[#allocation2 + $0x340] ss:$16 sps:$4 sm:$0xff]  }
  0xb2   : > { %v8467_v16 = vld [vmem:[#allocation2 + $0x300] ss:$16 sps:$4 sm:$0xff]  }
  0xb3   : > { %2271 = vmatpush1.bf16.msra.mxu1 %v8386_v12  ;;  %v8463_v12 = vld [vmem:[#allocation2 + $0x324] ss:$16 sps:$4 sm:$0xff]  }
  0xb4   : > { %938 = vmatpush2.bf16.msra.mxu0 %v8355_v5  ;;  %2272 = vmatprep.subr.bf16.mxu1 %v8394_v13  ;;  %v8449_v5 = vld [vmem:[#allocation2 + $0x360] ss:$16 sps:$4 sm:$0xff]  }
  0xb5   : > { %939 = vmatprep.subr.bf16.mxu0 %v8359_v6  ;;  %v8454_v6 = vld [vmem:[#allocation2 + $0x124] ss:$16 sps:$4 sm:$0xff]   ;;  %v8461_v13 = vld [vmem:[#allocation2 + $0x320] ss:$16 sps:$4 sm:$0xff]  }
  0xb7   : > { %2273 = vmatpush1.bf16.msra.mxu1 %v8392_v18 }
  0xb8   : > { %940 = vmatpush2.bf16.msra.mxu0 %v8361_v10  ;;  %2274 = vmatprep.subr.bf16.mxu1 %v8400_v20  ;;  %v8460_v10 = vld [vmem:[#allocation2 + $0x104] ss:$16 sps:$4 sm:$0xff]  }
  0xb9   : > { %941 = vmatprep.subr.bf16.mxu0 %v8365_v11  ;;  %v8458_v11 = vld [vmem:[#allocation2 + $0x100] ss:$16 sps:$4 sm:$0xff]  }
  0xbb   : > { %2275 = vmatpush1.bf16.msra.mxu1 %v8398_v21 }
  0xbc   : > { %942 = vmatpush2.bf16.msra.mxu0 %v8367_v14  ;;  %2276 = vmatprep.subr.bf16.mxu1 %v8406_v24  ;;  %v8466_v14 = vld [vmem:[#allocation2 + $0x4e4] ss:$16 sps:$4 sm:$0xff]   ;;  %v10065_v24 = vsub.s32 1, %v9954_v31 }
  0xbd   : > { %943 = vmatprep.subr.bf16.mxu0 %v8368_v15  ;;  %v8469_v15 = vld [vmem:[#allocation2 + $0x304] ss:$16 sps:$4 sm:$0xff]  }
  0xbf   : > { %2277 = vmatpush1.bf16.msra.mxu1 %v8404_v29  ;;  %v1027_v29 = vld [vmem:[%s10595_s8] ss:$8 sm:$0x3] }
  0xc0   : > { %944 = vmatpush2.bf16.msra.mxu0 %v8370_v17  ;;  %2278 = vmatprep.subr.bf16.mxu1 %v8412_v30  ;;  %v8475_v17 = vld [vmem:[#allocation2 + $0xec] ss:$16 sps:$4 sm:$0xff]  }
  0xc1   : > { %2317 = vmatprep.subr.bf16.mxu0 %v8379_v19 }
  0xc3   : > { %946 = vmatmul.mubr.bf16.vlgmr.msra.gmra.mxu0 %v619_v26  ;;  %2279 = vmatpush1.bf16.msra.mxu1 %v8410_v37  ;;  %v1038_v37 = vrot.slane %v1027_v29, %v10065_v24 }
  0xc4   : > { %955 = vmatprep.mubr.bf16.mxu0 %v623_v28  ;;  %2318 = vmatpush1.bf16.msra.mxu0 %v8377_v25 }
  0xc5   : > { %2319 = vmatprep.subr.bf16.mxu0 %v8385_v27  ;;  %2280 = vmatprep.subr.bf16.mxu1 %v8418_v38  ;;  %v10068_v27 = vsub.s32 0, %v9954_v31 }
  0xc7   : > { %2281 = vmatpush2.bf16.msra.mxu1 %v8416_v40 }
  0xc8   : > { %2320 = vmatpush1.bf16.msra.mxu0 %v8383_v32  ;;  %2282 = vmatprep.subr.bf16.mxu1 %v8424_v41 }
  0xc9   : > { %2321 = vmatprep.subr.bf16.mxu0 %v8391_v33 }
  0xcb   : > { %956 = vmatmul.mubr.bf16.gmra.mxu0 %v622_v34  ;;  %2283 = vmatpush2.bf16.msra.mxu1 %v8422_v44 }
  0xcc   : > { %2322 = vmatpush1.bf16.msra.mxu0 %v8389_v39  ;;  %2284 = vmatprep.subr.bf16.mxu1 %v8430_v45 }
  0xcd   : > { %2323 = vmatprep.subr.bf16.mxu0 %v8397_v35  ;;  %v1034_v35 = vrot.slane %v1027_v29, %v10068_v27 }
  0xcf   : > { %2285 = vmatpush2.bf16.msra.mxu1 %v8428_v36 }
  0xd0   : > { %2324 = vmatpush1.bf16.msra.mxu0 %v8395_v42  ;;  %2286 = vmatprep.subr.bf16.mxu1 %v8436_v58  ;;  %v7351_v42 = vld [vmem:[%s10595_s8 + $0x1] ss:$8 sm:$0x3] }
  0xd1   : > { %2325 = vmatprep.subr.bf16.mxu0 %v8403_v43 }
  0xd3   : > { %2287 = vmatpush2.bf16.msra.mxu1 %v8434_v57 }
  0xd4   : > { %2326 = vmatpush1.bf16.msra.mxu0 %v8401_v46  ;;  %2288 = vmatprep.subr.bf16.mxu1 %v8442_v61  ;;  %v1057_v46 = vrot.slane %v7351_v42, %v10065_v24 }
  0xd5   : > { %2327 = vmatprep.subr.bf16.mxu0 %v8409_v47 }
  0xd7   : > { %2289 = vmatpush2.bf16.msra.mxu1 %v8440_v62 }
  0xd8   : > { %2328 = vmatpush1.bf16.msra.mxu0 %v8407_v48  ;;  %2290 = vmatprep.subr.bf16.mxu1 %v8448_v3 }
  0xd9   : > { %2329 = vmatprep.subr.bf16.mxu0 %v8415_v49 }
  0xdb   : > { %2291 = vmatpush2.bf16.msra.mxu1 %v8446_v2 }
  0xdc   : > { %2330 = vmatpush1.bf16.msra.mxu0 %v8413_v50  ;;  %2292 = vmatprep.subr.bf16.mxu1 %v8454_v6 }
  0xdd   : > { %2331 = vmatprep.subr.bf16.mxu0 %v8421_v51  ;;  %v1053_v51 = vrot.slane %v7351_v42, %v10068_v27 }
  0xdf   : > { %2293 = vmatpush2.bf16.msra.mxu1 %v8452_v7  ;;  %v8464_v7 = vld [vmem:[#allocation2 + $0x4e0] ss:$16 sps:$4 sm:$0xff]  }
  0xe0   : > { %2332 = vmatpush1.bf16.msra.mxu0 %v8419_v52  ;;  %2294 = vmatprep.subr.bf16.mxu1 %v8460_v10 }
  0xe1   : > { %2333 = vmatprep.subr.bf16.mxu0 %v8427_v53 }
  0xe3   : > { %2295 = vmatpush2.bf16.msra.mxu1 %v8458_v11 }
  0xe4   : > { %2334 = vmatpush2.bf16.msra.mxu0 %v8425_v54  ;;  %2370 = vmatprep.subr.bf16.mxu1 %v8466_v14 }
  0xe5   : > { %2335 = vmatprep.subr.bf16.mxu0 %v8433_v56 }
  0xe8   : > { %2336 = vmatpush2.bf16.msra.mxu0 %v8431_v55 }
  0xe9   : > { %2337 = vmatprep.subr.bf16.mxu0 %v8439_v59 }
  0xec   : > { %2338 = vmatpush2.bf16.msra.mxu0 %v8437_v60 }
  0xed   : > { %2339 = vmatprep.subr.bf16.mxu0 %v8445_v63 }
  0xf0   : > { %2340 = vmatpush2.bf16.msra.mxu0 %v8443_v1 }
  0xf1   : > { %2341 = vmatprep.subr.bf16.mxu0 %v8451_v4 }
  0xf4   : > { %2342 = vmatpush2.bf16.msra.mxu0 %v8449_v5 }
  0xf5   : > { %2343 = vmatprep.subr.bf16.mxu0 %v8457_v8  ;;  %v8472_v8 = vld [vmem:[#allocation2 + $0x4c4] ss:$16 sps:$4 sm:$0xff]  }
  0xf8   : > { %2344 = vmatpush2.bf16.msra.mxu0 %v8455_v9 }
  0xf9   : > { %2345 = vmatprep.subr.bf16.mxu0 %v8463_v12 }
  0xfc   : > { %2346 = vmatpush2.bf16.msra.mxu0 %v8461_v13 }
  0xfd   : > { %2347 = vmatprep.subr.bf16.mxu0 %v8469_v15 }
 0x100   : > { %2348 = vmatpush2.bf16.msra.mxu0 %v8467_v16  ;;  %v8470_v16 = vld [vmem:[#allocation2 + $0x4c0] ss:$16 sps:$4 sm:$0xff]  }
 0x101   : > { %2423 = vmatprep.subr.bf16.mxu0 %v8475_v17 }
 0x166   : > { %v1000_v18 = vpop.f32.mrf.mxu1 }
 0x168   : > { %v1002_v19 = vpop.f32.mrf.mxu1 }
 0x16a   : > { %v1004_v20 = vpop.f32.mrf.mxu1 }
 0x16c   : > { %v1006_v21 = vpop.f32.mrf.mxu1 }
 0x16e   : > { %v1010_v25 = vpop.f32.mrf.mxu1 }
 0x170   : > { %v1012_v38 = vpop.f32.mrf.mxu1 }
 0x172   : > { %v1014_v36 = vpop.f32.mrf.mxu1 }
 0x174   : > { %v1016_v61 = vpop.f32.mrf.mxu1 }
 0x183   : > { %v947_v22 = vpop.f32.mrf.mxu0 }
 0x184   : > { %v1001_v26 = vadd.f32 %v1000_v18, %v947_v22 }
 0x185   : > { %v949_v23 = vpop.f32.mrf.mxu0 }
 0x186   : > { %v1003_v28 = vadd.f32 %v1002_v19, %v949_v23  ;;  %v1019_v34 = vmax.f32 %v1001_v26, 0.0  ;;  %v8473_v23 = vld [vmem:[#allocation2 + $0xe8] ss:$16 sps:$4 sm:$0xff]   ;;  %v8478_v26 = vld [vmem:[#allocation2 + $0x4a4] ss:$16 sps:$4 sm:$0xff]  }
 0x187   : > { %v951_v30 = vpop.f32.mrf.mxu0 }
 0x188   : > { %v1005_v32 = vadd.f32 %v1004_v20, %v951_v30  ;;  %v1020_v33 = vmax.f32 %v1003_v28, 0.0  ;;  %v1041_v50 = vmul.f32 %v1034_v35, %v1019_v34 }
 0x189   : > { %v953_v39 = vpop.f32.mrf.mxu0 }
 0x18a   : > { %v1021_v40 = vmax.f32 %v1005_v32, 0.0  ;;  %v1007_v41 = vadd.f32 %v1006_v21, %v953_v39  ;;  %v1042_v45 = vmul.f32 %v1038_v37, %v1020_v33  ;;  %v10084_v1 = vadd.f32 %v1053_v51, %v1041_v50  ;;  %v8481_v33 = vld [vmem:[#allocation2 + $0xcc] ss:$16 sps:$4 sm:$0xff]   ;;  %v8476_v39 = vld [vmem:[#allocation2 + $0x4a0] ss:$16 sps:$4 sm:$0xff]  }
 0x18b   : > { %v957_v43 = vpop.f32.mrf.mxu0 }
 0x18c   : > { %v1043_v44 = vmul.f32 %v1034_v35, %v1021_v40  ;;  %v1022_v47 = vmax.f32 %v1007_v41, 0.0  ;;  %v1011_v48 = vadd.f32 %v1010_v25, %v957_v43  ;;  %v10082_v58 = vadd.f32 %v1057_v46, %v1042_v45  ;;  %v8484_v43 = vld [vmem:[#allocation2 + $0x484] ss:$16 sps:$4 sm:$0xff]   ;;  %v8479_v45 = vld [vmem:[#allocation2 + $0xc8] ss:$16 sps:$4 sm:$0xff]  }
 0x18d   : > { %v959_v49 = vpop.f32.mrf.mxu0  ;;  %v1068_v21 = vrot.slane %v10084_v1, 1 }
 0x18e   : > { %v1013_v52 = vadd.f32 %v1012_v38, %v959_v49  ;;  %v1044_v53 = vmul.f32 %v1038_v37, %v1022_v47  ;;  %v1023_v54 = vmax.f32 %v1011_v48, 0.0  ;;  %v10080_v56 = vadd.f32 %v1053_v51, %v1043_v44  ;;  %v8487_v49 = vld [vmem:[#allocation2 + $0xac] ss:$16 sps:$4 sm:$0xff]  }
 0x18f   : > { %v961_v55 = vpop.f32.mrf.mxu0  ;;  %v1069_v18 = vrot.slane %v10082_v58, 1  ;;  %v1085_v34 = vrot.slane %v10082_v58, 2 }
 0x190   : > { %v1024_v57 = vmax.f32 %v1013_v52, 0.0  ;;  %v1063_v59 = vadd.f32 %v1057_v46, %v1044_v53  ;;  %v1045_v60 = vmul.f32 %v1034_v35, %v1023_v54  ;;  %v1015_v62 = vadd.f32 %v1014_v36, %v961_v55  ;;  %v8482_v52 = vld [vmem:[#allocation2 + $0x480] ss:$16 sps:$4 sm:$0xff]   ;;  %v8490_v53 = vld [vmem:[#allocation2 + $0x464] ss:$16 sps:$4 sm:$0xff]  }
 0x191   : > { %v963_v63 = vpop.f32.mrf.mxu0  ;;  %v10093_v9 = vpack.c.bf16 %v10080_v56, %v10084_v1  ;;  %v1070_v13 = vrot.slane %v10080_v56, 1  ;;  %v8485_v54 = vld [vmem:[#allocation2 + $0xa8] ss:$16 sps:$4 sm:$0xff]  }
 0x192   : > { %v1046_v2 = vmul.f32 %v1038_v37, %v1024_v57  ;;  %v1017_v3 = vadd.f32 %v1016_v61, %v963_v63  ;;  %v10086_v4 = vadd.f32 %v1053_v51, %v1045_v60  ;;  %v1025_v5 = vmax.f32 %v1015_v62, 0.0  ;;  %v8488_v60 = vld [vmem:[#allocation2 + $0x460] ss:$16 sps:$4 sm:$0xff]   ;;  %v8496_v62 = vld [vmem:[#allocation2 + $0x444] ss:$16 sps:$4 sm:$0xff]  }
 0x193   : > { %v10089_v6 = vpack.c.bf16 %v1063_v59, %v10082_v58  ;;  %v1071_v12 = vrot.slane %v1063_v59, 1  ;;  %v1087_v28 = vrot.slane %v1063_v59, 2  ;;  %v1080_v38 = vsel %vm605_vm0, %v1068_v21, %v1070_v13  ;;  %v8493_v59 = vld [vmem:[#allocation2 + $0x8c] ss:$16 sps:$4 sm:$0xff]   ;;  %v8491_v63 = vld [vmem:[#allocation2 + $0x88] ss:$16 sps:$4 sm:$0xff]  }
 0x194   : > { %v10095_v10 = vadd.f32 %v1057_v46, %v1046_v2  ;;  %v1026_v11 = vmax.f32 %v1017_v3, 0.0  ;;  %v1072_v14 = vrot.slane %v10086_v4, 1  ;;  %v1047_v15 = vmul.f32 %v1034_v35, %v1025_v5  ;;  %v8499_v2 = vld [vmem:[#allocation2 + $0x6c] ss:$16 sps:$4 sm:$0xff]   ;;  %v8494_v3 = vld [vmem:[#allocation2 + $0x440] ss:$16 sps:$4 sm:$0xff]  }
 0x195   : > { %2296 = vmatprep.mubr.bf16.mxu1 %v10089_v6  ;;  %v1081_v32 = vsel %vm605_vm0, %v1069_v18, %v1071_v12  ;;  %v1097_v44 = vsel %vm614_vm1, %v1085_v34, %v1087_v28  ;;  %v8502_v5 = vld [vmem:[#allocation2 + $0x424] ss:$16 sps:$4 sm:$0xff]   ;;  %v8574_v58 = vld [vmem:[#allocation2 + $0x2ac] ss:$16 sps:$4 sm:$0xff]  }
 0x196   : > { %v1048_v17 = vmul.f32 %v1038_v37, %v1026_v11  ;;  %2297 = vmatmul.mubr.bf16.vlgmr.msra.gmra.mxu1 %v10093_v9  ;;  %v1073_v19 = vrot.slane %v10095_v10, 1  ;;  %v1089_v20 = vrot.slane %v10095_v10, 2  ;;  %v10105_v22 = vadd.f32 %v1053_v51, %v1047_v15  ;;  %v8500_v11 = vld [vmem:[#allocation2 + $0x420] ss:$16 sps:$4 sm:$0xff]  }
 0x197   : > { %2371 = vmatpush1.bf16.msra.mxu1 %v8464_v7  ;;  %v1078_v25 = vsel %vm605_vm0, %v1070_v13, %v1072_v14  ;;  %v8497_v7 = vld [vmem:[#allocation2 + $0x68] ss:$16 sps:$4 sm:$0xff]   ;;  %v8506_v15 = vld [vmem:[#allocation2 + $0x400] ss:$16 sps:$4 sm:$0xff]  }
 0x198   : > { %v10109_v29 = vadd.f32 %v1057_v46, %v1048_v17  ;;  %2372 = vmatprep.subr.bf16.mxu1 %v8472_v8  ;;  %v1079_v30 = vsel %vm605_vm0, %v1071_v12, %v1073_v19  ;;  %v10124_v40 = vpack.c.bf16 %v1078_v25, %v1080_v38  ;;  %v1095_v41 = vsel %vm614_vm1, %v1087_v28, %v1089_v20  ;;  %v8505_v8 = vld [vmem:[#allocation2 + $0x4c] ss:$16 sps:$4 sm:$0xff]   ;;  %v8508_v12 = vld [vmem:[#allocation2 + $0x404] ss:$16 sps:$4 sm:$0xff]   ;;  %v8503_v13 = vld [vmem:[#allocation2 + $0x48] ss:$16 sps:$4 sm:$0xff]  }
 0x199   : > { %v10115_v37 = vpack.c.bf16 %v1079_v30, %v1081_v32  ;;  %v1074_v46 = vrot.slane %v10105_v22, 1  ;;  %v10141_v47 = vpack.c.bf16 %v10105_v22, %v10086_v4  ;;  %v10147_v50 = vpack.c.bf16 %v1095_v41, %v1097_v44  ;;  %v8517_v17 = vld [vmem:[#allocation2 + $0xc] ss:$16 sps:$4 sm:$0xff]   ;;  %v8518_v25 = vld [vmem:[#allocation2 + $0x5c0] ss:$16 sps:$4 sm:$0xff]  }
 0x19a   : > { %v10122_v35 = vpack.c.bf16 %v10109_v29, %v10095_v10  ;;  %v1075_v42 = vrot.slane %v10109_v29, 1  ;;  %v8521_v28 = vld [vmem:[#allocation2 + $0x1e8] ss:$16 sps:$4 sm:$0xff]   ;;  %v8529_v30 = vld [vmem:[#allocation2 + $0x1cc] ss:$16 sps:$4 sm:$0xff]  }
 0x19b   : > { %2373 = vmatpush1.bf16.msra.mxu1 %v8470_v16  ;;  %2349 = vmatprep.mubr.bf16.mxu0 %v10115_v37  ;;  %v1076_v55 = vsel %vm605_vm0, %v1072_v14, %v1074_v46  ;;  %v1082_v57 = vsel %vm605_vm0, %v1074_v46, %v1068_v21  ;;  %v8511_v14 = vld [vmem:[#allocation2 + $0x2c] ss:$16 sps:$4 sm:$0xff]   ;;  %v8514_v16 = vld [vmem:[#allocation2 + $0x5e4] ss:$16 sps:$4 sm:$0xff]   ;;  %v8515_v21 = vld [vmem:[#allocation2 + $0x8] ss:$16 sps:$4 sm:$0xff]  }
 0x19c   : > { %2306 = vmatprep.mubr.bf16.mxu1 %v10122_v35  ;;  %2350 = vmatmul.mubr.bf16.vlgmr.msra.gmra.mxu0 %v10124_v40  ;;  %v1077_v36 = vsel %vm605_vm0, %v1073_v19, %v1075_v42  ;;  %v1083_v48 = vsel %vm605_vm0, %v1075_v42, %v1069_v18  ;;  %v10158_v61 = vpack.c.bf16 %v1082_v57, %v1076_v55  ;;  %v8512_v18 = vld [vmem:[#allocation2 + $0x5e0] ss:$16 sps:$4 sm:$0xff]   ;;  %v8520_v19 = vld [vmem:[#allocation2 + $0x5c4] ss:$16 sps:$4 sm:$0xff]   ;;  %v8527_v38 = vld [vmem:[#allocation2 + $0x1c8] ss:$16 sps:$4 sm:$0xff]  }
 0x19d   : > { %2374 = vmatprep.subr.bf16.mxu1 %v8478_v26  ;;  %2424 = vmatpush1.bf16.msra.mxu0 %v8473_v23  ;;  %v10149_v51 = vpack.c.bf16 %v1083_v48, %v1077_v36  ;;  %v8523_v23 = vld [vmem:[#allocation2 + $0x1ec] ss:$16 sps:$4 sm:$0xff]   ;;  %v8526_v26 = vld [vmem:[#allocation2 + $0x5a4] ss:$16 sps:$4 sm:$0xff]   ;;  %v8524_v32 = vld [vmem:[#allocation2 + $0x5a0] ss:$16 sps:$4 sm:$0xff]  }
 0x19e   : > { %2307 = vmatmul.mubr.bf16.gmra.mxu1 %v10141_v47  ;;  %2425 = vmatprep.subr.bf16.mxu0 %v8481_v33  ;;  %v8532_v33 = vld [vmem:[#allocation2 + $0x584] ss:$16 sps:$4 sm:$0xff]   ;;  %v8530_v41 = vld [vmem:[#allocation2 + $0x580] ss:$16 sps:$4 sm:$0xff]   ;;  %v8541_v44 = vld [vmem:[#allocation2 + $0x18c] ss:$16 sps:$4 sm:$0xff]  }
 0x19f   : > { %2375 = vmatpush1.bf16.msra.mxu1 %v8476_v39  ;;  %2402 = vmatprep.mubr.bf16.mxu1 %v10147_v50  ;;  %v8535_v39 = vld [vmem:[#allocation2 + $0x1ac] ss:$16 sps:$4 sm:$0xff]   ;;  %v8538_v42 = vld [vmem:[#allocation2 + $0x564] ss:$16 sps:$4 sm:$0xff]   ;;  %v8539_v36 = vld [vmem:[#allocation2 + $0x188] ss:$16 sps:$4 sm:$0xff]  }
 0x1a0   : > { %2359 = vmatprep.mubr.bf16.mxu0 %v10149_v51  ;;  %2376 = vmatprep.subr.bf16.mxu1 %v8484_v43  ;;  %v8533_v43 = vld [vmem:[#allocation2 + $0x1a8] ss:$16 sps:$4 sm:$0xff]   ;;  %v8544_v46 = vld [vmem:[#allocation2 + $0x544] ss:$16 sps:$4 sm:$0xff]   ;;  %v8547_v48 = vld [vmem:[#allocation2 + $0x16c] ss:$16 sps:$4 sm:$0xff]  }
 0x1a1   : > { %2426 = vmatpush1.bf16.msra.mxu0 %v8479_v45  ;;  %v8536_v45 = vld [vmem:[#allocation2 + $0x560] ss:$16 sps:$4 sm:$0xff]   ;;  %v8556_v57 = vld [vmem:[#allocation2 + $0x504] ss:$16 sps:$4 sm:$0xff]  }
 0x1a2   : > { %2427 = vmatprep.subr.bf16.mxu0 %v8487_v49  ;;  %v8542_v49 = vld [vmem:[#allocation2 + $0x540] ss:$16 sps:$4 sm:$0xff]  }
 0x1a3   : > { %2377 = vmatpush1.bf16.msra.mxu1 %v8482_v52  ;;  %v8550_v52 = vld [vmem:[#allocation2 + $0x524] ss:$16 sps:$4 sm:$0xff]   ;;  %v8548_v55 = vld [vmem:[#allocation2 + $0x520] ss:$16 sps:$4 sm:$0xff]  }
 0x1a4   : > { %2360 = vmatmul.mubr.bf16.gmra.mxu0 %v10158_v61  ;;  %2378 = vmatprep.subr.bf16.mxu1 %v8490_v53  ;;  %v8545_v53 = vld [vmem:[#allocation2 + $0x168] ss:$16 sps:$4 sm:$0xff]  }
 0x1a5   : > { %2428 = vmatpush1.bf16.msra.mxu0 %v8485_v54  ;;  %2455 = vmatprep.mubr.bf16.mxu0 %v10089_v6  ;;  %v8509_v6 = vld [vmem:[#allocation2 + $0x28] ss:$16 sps:$4 sm:$0xff]   ;;  %v8553_v54 = vld [vmem:[#allocation2 + $0x14c] ss:$16 sps:$4 sm:$0xff]  }
 0x1a6   : > { %2429 = vmatprep.subr.bf16.mxu0 %v8493_v59  ;;  %v8551_v59 = vld [vmem:[#allocation2 + $0x148] ss:$16 sps:$4 sm:$0xff]  }
 0x1a7   : > { %2379 = vmatpush1.bf16.msra.mxu1 %v8488_v60  ;;  %v8559_v60 = vld [vmem:[#allocation2 + $0x12c] ss:$16 sps:$4 sm:$0xff]  }
 0x1a8   : > { %2380 = vmatprep.subr.bf16.mxu1 %v8496_v62  ;;  %v1088_v62 = vrot.slane %v10086_v4, 2 }
 0x1a9   : > { %2430 = vmatpush1.bf16.msra.mxu0 %v8491_v63  ;;  %v8554_v63 = vld [vmem:[#allocation2 + $0x500] ss:$16 sps:$4 sm:$0xff]  }
 0x1aa   : > { %2431 = vmatprep.subr.bf16.mxu0 %v8499_v2  ;;  %v8562_v2 = vld [vmem:[#allocation2 + $0x2ec] ss:$16 sps:$4 sm:$0xff]  }
 0x1ab   : > { %2381 = vmatpush1.bf16.msra.mxu1 %v8494_v3  ;;  %v1091_v3 = vrot.slane %v10109_v29, 2  ;;  %v8568_v29 = vld [vmem:[#allocation2 + $0x2cc] ss:$16 sps:$4 sm:$0xff]  }
 0x1ac   : > { %2382 = vmatprep.subr.bf16.mxu1 %v8502_v5  ;;  %v1086_v5 = vrot.slane %v10080_v56, 2 }
 0x1ad   : > { %2432 = vmatpush1.bf16.msra.mxu0 %v8497_v7  ;;  %v8557_v7 = vld [vmem:[#allocation2 + $0x128] ss:$16 sps:$4 sm:$0xff]   ;;  %v1093_v4 = vsel %vm614_vm1, %v1089_v20, %v1091_v3  ;;  %v1099_v56 = vsel %vm614_vm1, %v1091_v3, %v1085_v34  ;;  %v1090_v20 = vrot.slane %v10105_v22, 2 }
 0x1ae   : > { %2433 = vmatprep.subr.bf16.mxu0 %v8505_v8  ;;  %v8565_v8 = vld [vmem:[#allocation2 + $0x10c] ss:$16 sps:$4 sm:$0xff]   ;;  %v10180_v10 = vpack.c.bf16 %v1099_v56, %v1093_v4  ;;  %v8569_v34 = vld [vmem:[#allocation2 + $0x4e8] ss:$16 sps:$4 sm:$0xff]  }
 0x1af   : > { %2383 = vmatpush1.bf16.msra.mxu1 %v8500_v11  ;;  %v1084_v11 = vrot.slane %v10084_v1, 2  ;;  %v8572_v22 = vld [vmem:[#allocation2 + $0x2a8] ss:$16 sps:$4 sm:$0xff]   ;;  %v8640_v4 = vld [vmem:[#allocation2 + $0x34c] ss:$16 sps:$4 sm:$0xff]  }
 0x1b0   : > { %2384 = vmatprep.subr.bf16.mxu1 %v8508_v12  ;;  %v1094_v12 = vsel %vm614_vm1, %v1086_v5, %v1088_v62  ;;  %v8623_v3 = vld [vmem:[#allocation2 + $0x5c8] ss:$16 sps:$4 sm:$0xff]  }
 0x1b1   : > { %2434 = vmatpush1.bf16.msra.mxu0 %v8503_v13  ;;  %v8560_v13 = vld [vmem:[#allocation2 + $0x2e8] ss:$16 sps:$4 sm:$0xff]   ;;  %v1096_v1 = vsel %vm614_vm1, %v1084_v11, %v1086_v5  ;;  %v8631_v5 = vld [vmem:[#allocation2 + $0x5ac] ss:$16 sps:$4 sm:$0xff]  }
 0x1b2   : > { %2435 = vmatprep.subr.bf16.mxu0 %v8511_v14  ;;  %v8563_v14 = vld [vmem:[#allocation2 + $0x108] ss:$16 sps:$4 sm:$0xff]  }
 0x1b3   : > { %2385 = vmatpush1.bf16.msra.mxu1 %v8506_v15  ;;  %v10178_v15 = vpack.c.bf16 %v1094_v12, %v1096_v1  ;;  %v8637_v12 = vld [vmem:[#allocation2 + $0x58c] ss:$16 sps:$4 sm:$0xff]   ;;  %v8635_v56 = vld [vmem:[#allocation2 + $0x588] ss:$16 sps:$4 sm:$0xff]  }
 0x1b4   : > { %2386 = vmatprep.subr.bf16.mxu1 %v8514_v16  ;;  %v8571_v16 = vld [vmem:[#allocation2 + $0x4ec] ss:$16 sps:$4 sm:$0xff]   ;;  %v8638_v1 = vld [vmem:[#allocation2 + $0x348] ss:$16 sps:$4 sm:$0xff]  }
 0x1b5   : > { %2436 = vmatpush1.bf16.msra.mxu0 %v8509_v6  ;;  %v8566_v6 = vld [vmem:[#allocation2 + $0x2c8] ss:$16 sps:$4 sm:$0xff]  }
 0x1b6   : > { %2437 = vmatprep.subr.bf16.mxu0 %v8517_v17  ;;  %v8577_v17 = vld [vmem:[#allocation2 + $0x4cc] ss:$16 sps:$4 sm:$0xff]  }
 0x1b7   : > { %2387 = vmatpush2.bf16.msra.mxu1 %v8512_v18  ;;  %v1092_v18 = vsel %vm614_vm1, %v1088_v62, %v1090_v20  ;;  %v8625_v62 = vld [vmem:[#allocation2 + $0x5cc] ss:$16 sps:$4 sm:$0xff]  }
 0x1b8   : > { %2388 = vmatprep.subr.bf16.mxu1 %v8520_v19  ;;  %v1098_v19 = vsel %vm614_vm1, %v1090_v20, %v1084_v11  ;;  %v8629_v11 = vld [vmem:[#allocation2 + $0x5a8] ss:$16 sps:$4 sm:$0xff]  }
 0x1b9   : > { %2438 = vmatpush1.bf16.msra.mxu0 %v8515_v21  ;;  %v10190_v21 = vpack.c.bf16 %v1098_v19, %v1092_v18  ;;  %v8644_v20 = vld [vmem:[#allocation2 + $0x328] ss:$16 sps:$4 sm:$0xff]   ;;  %v8661_v19 = vld [vmem:[#allocation13 + $0x74] ss:$8 sps:$4 sm:$0xff]  }
 0x1ba   : > { %2439 = vmatprep.subr.bf16.mxu0 %v8523_v23  ;;  %v8580_v23 = vld [vmem:[#allocation2 + $0x28c] ss:$16 sps:$4 sm:$0xff]   ;;  %v8650_v18 = vld [vmem:[#allocation2 + $0x308] ss:$16 sps:$4 sm:$0xff]  }
 0x1bb   : > { %2389 = vmatpush2.bf16.msra.mxu1 %v8518_v25  ;;  %v8575_v25 = vld [vmem:[#allocation2 + $0x4c8] ss:$16 sps:$4 sm:$0xff]  }
 0x1bc   : > { %2390 = vmatprep.subr.bf16.mxu1 %v8526_v26  ;;  %v8583_v26 = vld [vmem:[#allocation2 + $0x4ac] ss:$16 sps:$4 sm:$0xff]  }
 0x1bd   : > { %2440 = vmatpush2.bf16.msra.mxu0 %v8521_v28  ;;  %v8578_v28 = vld [vmem:[#allocation2 + $0x288] ss:$16 sps:$4 sm:$0xff]  }
 0x1be   : > { %2441 = vmatprep.subr.bf16.mxu0 %v8529_v30  ;;  %v8586_v30 = vld [vmem:[#allocation2 + $0x26c] ss:$16 sps:$4 sm:$0xff]  }
 0x1bf   : > { %2391 = vmatpush2.bf16.msra.mxu1 %v8524_v32  ;;  %v8589_v32 = vld [vmem:[#allocation2 + $0x48c] ss:$16 sps:$4 sm:$0xff]  }
 0x1c0   : > { %2392 = vmatprep.subr.bf16.mxu1 %v8532_v33  ;;  %v8584_v33 = vld [vmem:[#allocation2 + $0x268] ss:$16 sps:$4 sm:$0xff]  }
 0x1c1   : > { %2442 = vmatpush2.bf16.msra.mxu0 %v8527_v38  ;;  %v8587_v38 = vld [vmem:[#allocation2 + $0x488] ss:$16 sps:$4 sm:$0xff]  }
 0x1c2   : > { %2443 = vmatprep.subr.bf16.mxu0 %v8535_v39  ;;  %v8595_v39 = vld [vmem:[#allocation2 + $0x46c] ss:$16 sps:$4 sm:$0xff]  }
 0x1c3   : > { %2393 = vmatpush2.bf16.msra.mxu1 %v8530_v41  ;;  %v8598_v41 = vld [vmem:[#allocation2 + $0x22c] ss:$16 sps:$4 sm:$0xff]  }
 0x1c4   : > { %2394 = vmatprep.subr.bf16.mxu1 %v8538_v42  ;;  %v8593_v42 = vld [vmem:[#allocation2 + $0x468] ss:$16 sps:$4 sm:$0xff]  }
 0x1c5   : > { %2444 = vmatpush2.bf16.msra.mxu0 %v8533_v43  ;;  %v8601_v43 = vld [vmem:[#allocation2 + $0x44c] ss:$16 sps:$4 sm:$0xff]  }
 0x1c6   : > { %2445 = vmatprep.subr.bf16.mxu0 %v8541_v44  ;;  %v8596_v44 = vld [vmem:[#allocation2 + $0x228] ss:$16 sps:$4 sm:$0xff]  }
 0x1c7   : > { %2395 = vmatpush2.bf16.msra.mxu1 %v8536_v45  ;;  %v8599_v45 = vld [vmem:[#allocation2 + $0x448] ss:$16 sps:$4 sm:$0xff]  }
 0x1c8   : > { %2396 = vmatprep.subr.bf16.mxu1 %v8544_v46  ;;  %v8607_v46 = vld [vmem:[#allocation2 + $0x42c] ss:$16 sps:$4 sm:$0xff]  }
 0x1c9   : > { %2446 = vmatpush2.bf16.msra.mxu0 %v8539_v36  ;;  %v8610_v36 = vld [vmem:[#allocation2 + $0x3ec] ss:$16 sps:$4 sm:$0xff]  }
 0x1ca   : > { %2447 = vmatprep.subr.bf16.mxu0 %v8547_v48  ;;  %v8605_v48 = vld [vmem:[#allocation2 + $0x428] ss:$16 sps:$4 sm:$0xff]  }
 0x1cb   : > { %2397 = vmatpush2.bf16.msra.mxu1 %v8542_v49  ;;  %v8613_v49 = vld [vmem:[#allocation2 + $0x40c] ss:$16 sps:$4 sm:$0xff]  }
 0x1cc   : > { %2398 = vmatprep.subr.bf16.mxu1 %v8550_v52  ;;  %v8608_v52 = vld [vmem:[#allocation2 + $0x3e8] ss:$16 sps:$4 sm:$0xff]  }
 0x1cd   : > { %2448 = vmatpush2.bf16.msra.mxu0 %v8545_v53  ;;  %v8616_v53 = vld [vmem:[#allocation2 + $0x3cc] ss:$16 sps:$4 sm:$0xff]  }
 0x1ce   : > { %2449 = vmatprep.subr.bf16.mxu0 %v8553_v54  ;;  %v8611_v54 = vld [vmem:[#allocation2 + $0x408] ss:$16 sps:$4 sm:$0xff]  }
 0x1cf   : > { %2399 = vmatpush2.bf16.msra.mxu1 %v8548_v55  ;;  %v8619_v55 = vld [vmem:[#allocation2 + $0x5ec] ss:$16 sps:$4 sm:$0xff]  }
 0x1d0   : > { %2400 = vmatprep.subr.bf16.mxu1 %v8556_v57  ;;  %v8614_v57 = vld [vmem:[#allocation2 + $0x3c8] ss:$16 sps:$4 sm:$0xff]  }
 0x1d1   : > { %2450 = vmatpush2.bf16.msra.mxu0 %v8551_v59  ;;  %v8622_v59 = vld [vmem:[#allocation2 + $0x3ac] ss:$16 sps:$4 sm:$0xff]  }
 0x1d2   : > { %2451 = vmatprep.subr.bf16.mxu0 %v8559_v60  ;;  %v8617_v60 = vld [vmem:[#allocation2 + $0x5e8] ss:$16 sps:$4 sm:$0xff]  }
 0x1d3   : > { %2401 = vmatpush2.bf16.msra.mxu1 %v8554_v63  ;;  %v8620_v63 = vld [vmem:[#allocation2 + $0x3a8] ss:$16 sps:$4 sm:$0xff]  }
 0x1d4   : > { %2476 = vmatprep.subr.bf16.mxu1 %v8562_v2  ;;  %v8628_v2 = vld [vmem:[#allocation2 + $0x38c] ss:$16 sps:$4 sm:$0xff]  }
 0x1d5   : > { %2452 = vmatpush2.bf16.msra.mxu0 %v8557_v7  ;;  %v8626_v7 = vld [vmem:[#allocation2 + $0x388] ss:$16 sps:$4 sm:$0xff]  }
 0x1d6   : > { %2403 = vmatmul.mubr.bf16.vlgmr.msra.gmra.mxu1 %v10178_v15  ;;  %2453 = vmatprep.subr.bf16.mxu0 %v8565_v8  ;;  %v8634_v8 = vld [vmem:[#allocation2 + $0x36c] ss:$16 sps:$4 sm:$0xff]  }
 0x1d7   : > { %2412 = vmatprep.mubr.bf16.mxu1 %v10180_v10  ;;  %2477 = vmatpush1.bf16.msra.mxu1 %v8560_v13  ;;  %v8632_v13 = vld [vmem:[#allocation2 + $0x368] ss:$16 sps:$4 sm:$0xff]  }
 0x1d8   : > { %2478 = vmatprep.subr.bf16.mxu1 %v8568_v29  ;;  %v8643_v29 = vld [vmem:[#allocation2 + $0x56c] ss:$16 sps:$4 sm:$0xff]  }
 0x1d9   : > { %2454 = vmatpush2.bf16.msra.mxu0 %v8563_v14  ;;  %v8646_v14 = vld [vmem:[#allocation2 + $0x32c] ss:$16 sps:$4 sm:$0xff]  }
 0x1da   : > { %2529 = vmatprep.subr.bf16.mxu0 %v8571_v16  ;;  %v8641_v16 = vld [vmem:[#allocation2 + $0x568] ss:$16 sps:$4 sm:$0xff]  }
 0x1db   : > { %2479 = vmatpush1.bf16.msra.mxu1 %v8566_v6  ;;  %v8649_v6 = vld [vmem:[#allocation2 + $0x54c] ss:$16 sps:$4 sm:$0xff]  }
 0x1dc   : > { %2456 = vmatmul.mubr.bf16.vlgmr.msra.gmra.mxu0 %v10093_v9  ;;  %2480 = vmatprep.subr.bf16.mxu1 %v8574_v58  ;;  %v8581_v9 = vld [vmem:[#allocation2 + $0x4a8] ss:$16 sps:$4 sm:$0xff]   ;;  %v8652_v58 = vld [vmem:[#allocation2 + $0x30c] ss:$16 sps:$4 sm:$0xff]  }
 0x1dd   : > { %2465 = vmatprep.mubr.bf16.mxu0 %v10122_v35  ;;  %2530 = vmatpush1.bf16.msra.mxu0 %v8569_v34  ;;  %v8592_v35 = vld [vmem:[#allocation2 + $0x24c] ss:$16 sps:$4 sm:$0xff]   ;;  %v8647_v34 = vld [vmem:[#allocation2 + $0x548] ss:$16 sps:$4 sm:$0xff]  }
 0x1de   : > { %2413 = vmatmul.mubr.bf16.gmra.mxu1 %v10190_v21  ;;  %2531 = vmatprep.subr.bf16.mxu0 %v8577_v17  ;;  %v8655_v17 = vld [vmem:[#allocation2 + $0x52c] ss:$16 sps:$4 sm:$0xff]  }
 0x1df   : > { %2481 = vmatpush1.bf16.msra.mxu1 %v8572_v22  ;;  %2508 = vmatprep.mubr.bf16.mxu1 %v10115_v37  ;;  %v8590_v37 = vld [vmem:[#allocation2 + $0x248] ss:$16 sps:$4 sm:$0xff]  }
 0x1e0   : > { %2482 = vmatprep.subr.bf16.mxu1 %v8580_v23  ;;  %v8653_v22 = vld [vmem:[#allocation2 + $0x528] ss:$16 sps:$4 sm:$0xff]   ;;  %v8658_v23 = vld [vmem:[#allocation2 + $0x50c] ss:$16 sps:$4 sm:$0xff]  }
 0x1e1   : > { %2532 = vmatpush1.bf16.msra.mxu0 %v8575_v25  ;;  %v8659_v25 = vld [vmem:[#allocation13 + $0x70] ss:$8 sps:$4 sm:$0xff]  }
 0x1e2   : > { %2533 = vmatprep.subr.bf16.mxu0 %v8583_v26  ;;  %v8664_v26 = vld [vmem:[#allocation13 + $0x64] ss:$8 sps:$4 sm:$0xff]  }
 0x1e3   : > { %2483 = vmatpush1.bf16.msra.mxu1 %v8578_v28  ;;  %v8656_v28 = vld [vmem:[#allocation2 + $0x508] ss:$16 sps:$4 sm:$0xff]  }
 0x1e4   : > { %2466 = vmatmul.mubr.bf16.gmra.mxu0 %v10141_v47  ;;  %2484 = vmatprep.subr.bf16.mxu1 %v8586_v30  ;;  %v8604_v47 = vld [vmem:[#allocation2 + $0x20c] ss:$16 sps:$4 sm:$0xff]   ;;  %v8662_v30 = vld [vmem:[#allocation13 + $0x60] ss:$8 sps:$4 sm:$0xff]  }
 0x1e5   : > { %2534 = vmatpush1.bf16.msra.mxu0 %v8581_v9  ;;  %2561 = vmatprep.mubr.bf16.mxu0 %v10147_v50  ;;  %v8602_v50 = vld [vmem:[#allocation2 + $0x208] ss:$16 sps:$4 sm:$0xff]   ;;  %v8667_v9 = vld [vmem:[#allocation13 + $0x54] ss:$8 sps:$4 sm:$0xff]  }
 0x1e6   : > { %2535 = vmatprep.subr.bf16.mxu0 %v8589_v32  ;;  %v8665_v32 = vld [vmem:[#allocation13 + $0x50] ss:$8 sps:$4 sm:$0xff]  }
 0x1e7   : > { %2485 = vmatpush1.bf16.msra.mxu1 %v8584_v33  ;;  %v8670_v33 = vld [vmem:[#allocation13 + $0x44] ss:$8 sps:$4 sm:$0xff]  }
 0x1e8   : > { %2486 = vmatprep.subr.bf16.mxu1 %v8592_v35  ;;  %v8673_v35 = vld [vmem:[#allocation13 + $0x34] ss:$8 sps:$4 sm:$0xff]  }
 0x1e9   : > { %2536 = vmatpush1.bf16.msra.mxu0 %v8587_v38  ;;  %v8676_v38 = vld [vmem:[#allocation13 + $0x24] ss:$8 sps:$4 sm:$0xff]  }
 0x1ea   : > { %2537 = vmatprep.subr.bf16.mxu0 %v8595_v39  ;;  %v8674_v39 = vld [vmem:[#allocation13 + $0x20] ss:$8 sps:$4 sm:$0xff]  }
 0x1eb   : > { %2487 = vmatpush1.bf16.msra.mxu1 %v8590_v37  ;;  %v8677_v37 = vld [vmem:[#allocation13 + $0x10] ss:$8 sps:$4 sm:$0xff]  }
 0x1ec   : > { %2488 = vmatprep.subr.bf16.mxu1 %v8598_v41  ;;  %v8713_v41 = vld [vmem:[#allocation13 + $0x170] ss:$8 sps:$4 sm:$0xff]  }
 0x1ed   : > { %2538 = vmatpush1.bf16.msra.mxu0 %v8593_v42  ;;  %v8680_v42 = vld [vmem:[#allocation13] ss:$8 sps:$4 sm:$0xff]  }
 0x1ee   : > { %2539 = vmatprep.subr.bf16.mxu0 %v8601_v43  ;;  %v8685_v43 = vld [vmem:[#allocation13 + $0xf4] ss:$8 sps:$4 sm:$0xff]  }
 0x1ef   : > { %2489 = vmatpush1.bf16.msra.mxu1 %v8596_v44  ;;  %v8719_v44 = vld [vmem:[#allocation13 + $0x160] ss:$8 sps:$4 sm:$0xff]  }
 0x1f0   : > { %2490 = vmatprep.subr.bf16.mxu1 %v8604_v47  ;;  %v8683_v47 = vld [vmem:[#allocation13 + $0xf0] ss:$8 sps:$4 sm:$0xff]  }
 0x1f1   : > { %2540 = vmatpush1.bf16.msra.mxu0 %v8599_v45  ;;  %v8688_v45 = vld [vmem:[#allocation13 + $0xe4] ss:$8 sps:$4 sm:$0xff]  }
 0x1f2   : > { %2541 = vmatprep.subr.bf16.mxu0 %v8607_v46  ;;  %v8725_v46 = vld [vmem:[#allocation13 + $0x150] ss:$8 sps:$4 sm:$0xff]  }
 0x1f3   : > { %2491 = vmatpush1.bf16.msra.mxu1 %v8602_v50  ;;  %v8727_v50 = vld [vmem:[#allocation13 + $0x154] ss:$8 sps:$4 sm:$0xff]  }
 0x1f4   : > { %2492 = vmatprep.subr.bf16.mxu1 %v8610_v36  ;;  %v8686_v36 = vld [vmem:[#allocation13 + $0xe0] ss:$8 sps:$4 sm:$0xff]  }
 0x1f5   : > { %2542 = vmatpush1.bf16.msra.mxu0 %v8605_v48  ;;  %v8691_v48 = vld [vmem:[#allocation13 + $0xd4] ss:$8 sps:$4 sm:$0xff]  }
 0x1f6   : > { %2543 = vmatprep.subr.bf16.mxu0 %v8613_v49  ;;  %v8731_v49 = vld [vmem:[#allocation13 + $0x140] ss:$8 sps:$4 sm:$0xff]  }
 0x1f7   : > { %2493 = vmatpush2.bf16.msra.mxu1 %v8608_v52  ;;  %v8733_v52 = vld [vmem:[#allocation13 + $0x144] ss:$8 sps:$4 sm:$0xff]  }
 0x1f8   : > { %2494 = vmatprep.subr.bf16.mxu1 %v8616_v53  ;;  %v8689_v53 = vld [vmem:[#allocation13 + $0xd0] ss:$8 sps:$4 sm:$0xff]  }
 0x1f9   : > { %2544 = vmatpush1.bf16.msra.mxu0 %v8611_v54  ;;  %v8694_v54 = vld [vmem:[#allocation13 + $0xc4] ss:$8 sps:$4 sm:$0xff]  }
 0x1fa   : > { %2545 = vmatprep.subr.bf16.mxu0 %v8619_v55  ;;  %v8737_v55 = vld [vmem:[#allocation13 + $0x130] ss:$8 sps:$4 sm:$0xff]  }
 0x1fb   : > { %2495 = vmatpush2.bf16.msra.mxu1 %v8614_v57  ;;  %v8739_v57 = vld [vmem:[#allocation13 + $0x134] ss:$8 sps:$4 sm:$0xff]  }
 0x1fc   : > { %2496 = vmatprep.subr.bf16.mxu1 %v8622_v59  ;;  %v8692_v59 = vld [vmem:[#allocation13 + $0xc0] ss:$8 sps:$4 sm:$0xff]  }
 0x1fd   : > { %2546 = vmatpush2.bf16.msra.mxu0 %v8617_v60  ;;  %v8697_v60 = vld [vmem:[#allocation13 + $0xb4] ss:$8 sps:$4 sm:$0xff]  }
 0x1fe   : > { %2547 = vmatprep.subr.bf16.mxu0 %v8625_v62  ;;  %v8743_v62 = vld [vmem:[#allocation13 + $0x120] ss:$8 sps:$4 sm:$0xff]  }
 0x1ff   : > { %2497 = vmatpush2.bf16.msra.mxu1 %v8620_v63  ;;  %v8745_v63 = vld [vmem:[#allocation13 + $0x124] ss:$8 sps:$4 sm:$0xff]  }
 0x200   : > { %2498 = vmatprep.subr.bf16.mxu1 %v8628_v2  ;;  %v8695_v2 = vld [vmem:[#allocation13 + $0xb0] ss:$8 sps:$4 sm:$0xff]  }
 0x201   : > { %2548 = vmatpush2.bf16.msra.mxu0 %v8623_v3  ;;  %v8700_v3 = vld [vmem:[#allocation13 + $0xa4] ss:$8 sps:$4 sm:$0xff]  }
 0x202   : > { %2549 = vmatprep.subr.bf16.mxu0 %v8631_v5  ;;  %v8749_v5 = vld [vmem:[#allocation13 + $0x110] ss:$8 sps:$4 sm:$0xff]  }
 0x203   : > { %2499 = vmatpush2.bf16.msra.mxu1 %v8626_v7  ;;  %v8751_v7 = vld [vmem:[#allocation13 + $0x114] ss:$8 sps:$4 sm:$0xff]  }
 0x204   : > { %2500 = vmatprep.subr.bf16.mxu1 %v8634_v8  ;;  %v8698_v8 = vld [vmem:[#allocation13 + $0xa0] ss:$8 sps:$4 sm:$0xff]  }
 0x205   : > { %2550 = vmatpush2.bf16.msra.mxu0 %v8629_v11  ;;  %v8703_v11 = vld [vmem:[#allocation13 + $0x94] ss:$8 sps:$4 sm:$0xff]  }
 0x206   : > { %2551 = vmatprep.subr.bf16.mxu0 %v8637_v12  ;;  %v8755_v12 = vld [vmem:[#allocation13 + $0x100] ss:$8 sps:$4 sm:$0xff]  }
 0x207   : > { %2501 = vmatpush2.bf16.msra.mxu1 %v8632_v13  ;;  %v8757_v13 = vld [vmem:[#allocation13 + $0x104] ss:$8 sps:$4 sm:$0xff]  }
 0x208   : > { %2502 = vmatprep.subr.bf16.mxu1 %v8640_v4  ;;  %v8701_v4 = vld [vmem:[#allocation13 + $0x90] ss:$8 sps:$4 sm:$0xff]  }
 0x209   : > { %2552 = vmatpush2.bf16.msra.mxu0 %v8635_v56  ;;  %v8706_v56 = vld [vmem:[#allocation13 + $0x84] ss:$8 sps:$4 sm:$0xff]  }
 0x20a   : > { %2553 = vmatprep.subr.bf16.mxu0 %v8643_v29  ;;  %v8761_v29 = vld [vmem:[#allocation13 + $0x1f0] ss:$8 sps:$4 sm:$0xff]  }
 0x20b   : > { %2503 = vmatpush2.bf16.msra.mxu1 %v8638_v1  ;;  %v8763_v1 = vld [vmem:[#allocation13 + $0x1f4] ss:$8 sps:$4 sm:$0xff]  }
 0x20c   : > { %2504 = vmatprep.subr.bf16.mxu1 %v8646_v14  ;;  %v8704_v14 = vld [vmem:[#allocation13 + $0x80] ss:$8 sps:$4 sm:$0xff]  }
 0x20d   : > { %2554 = vmatpush2.bf16.msra.mxu0 %v8641_v16  ;;  %v8709_v16 = vld [vmem:[#allocation13 + $0x274] ss:$8 sps:$4 sm:$0xff]  }
 0x20e   : > { %2555 = vmatprep.subr.bf16.mxu0 %v8649_v6  ;;  %v8767_v6 = vld [vmem:[#allocation13 + $0x1e0] ss:$8 sps:$4 sm:$0xff]  }
 0x20f   : > { %2505 = vmatpush2.bf16.msra.mxu1 %v8644_v20  ;;  %v8769_v20 = vld [vmem:[#allocation13 + $0x1e4] ss:$8 sps:$4 sm:$0xff]  }
 0x210   : > { %2506 = vmatprep.subr.bf16.mxu1 %v8652_v58  ;;  %v8775_v58 = vld [vmem:[#allocation13 + $0x1d4] ss:$8 sps:$4 sm:$0xff]  }
 0x211   : > { %2556 = vmatpush2.bf16.msra.mxu0 %v8647_v34  ;;  %v8773_v34 = vld [vmem:[#allocation13 + $0x1d0] ss:$8 sps:$4 sm:$0xff]  }
 0x212   : > { %2557 = vmatprep.subr.bf16.mxu0 %v8655_v17  ;;  %v8781_v17 = vld [vmem:[#allocation13 + $0x1c4] ss:$8 sps:$4 sm:$0xff]  }
 0x213   : > { %2507 = vmatpush2.bf16.msra.mxu1 %v8650_v18  ;;  %v8779_v18 = vld [vmem:[#allocation13 + $0x1c0] ss:$8 sps:$4 sm:$0xff]  }
 0x214   : > { %3068 = vmatprep.subr.bf16.mxu1 %v8661_v19  ;;  %v8787_v19 = vld [vmem:[#allocation13 + $0x1b4] ss:$8 sps:$4 sm:$0xff]  }
 0x215   : > { %2558 = vmatpush2.bf16.msra.mxu0 %v8653_v22  ;;  %v8785_v22 = vld [vmem:[#allocation13 + $0x1b0] ss:$8 sps:$4 sm:$0xff]  }
 0x216   : > { %2509 = vmatmul.mubr.bf16.vlgmr.msra.gmra.mxu1 %v10124_v40  ;;  %2559 = vmatprep.subr.bf16.mxu0 %v8658_v23  ;;  %v8668_v40 = vld [vmem:[#allocation13 + $0x40] ss:$8 sps:$4 sm:$0xff]   ;;  %v8793_v23 = vld [vmem:[#allocation13 + $0x1a4] ss:$8 sps:$4 sm:$0xff]  }
 0x217   : > { %2518 = vmatprep.mubr.bf16.mxu1 %v10149_v51  ;;  %3069 = vmatpush1.bf16.msra.mxu1 %v8659_v25  ;;  %v8671_v51 = vld [vmem:[#allocation13 + $0x30] ss:$8 sps:$4 sm:$0xff]   ;;  %v8791_v25 = vld [vmem:[#allocation13 + $0x1a0] ss:$8 sps:$4 sm:$0xff]  }
 0x218   : > { %3070 = vmatprep.subr.bf16.mxu1 %v8664_v26  ;;  %v8799_v26 = vld [vmem:[#allocation13 + $0x194] ss:$8 sps:$4 sm:$0xff]  }
 0x219   : > { %2560 = vmatpush2.bf16.msra.mxu0 %v8656_v28  ;;  %v8797_v28 = vld [vmem:[#allocation13 + $0x190] ss:$8 sps:$4 sm:$0xff]  }
 0x21b   : > { %3071 = vmatpush1.bf16.msra.mxu1 %v8662_v30  ;;  %v8802_v30 = vld [vmem:[#allocation13 + $0x184] ss:$8 sps:$4 sm:$0xff]  }
 0x21c   : > { %2562 = vmatmul.mubr.bf16.vlgmr.msra.gmra.mxu0 %v10178_v15  ;;  %3072 = vmatprep.subr.bf16.mxu1 %v8667_v9  ;;  %v8679_v15 = vld [vmem:[#allocation13 + $0x14] ss:$8 sps:$4 sm:$0xff]   ;;  %v8800_v9 = vld [vmem:[#allocation13 + $0x180] ss:$8 sps:$4 sm:$0xff]  }
 0x21d   : > { %2571 = vmatprep.mubr.bf16.mxu0 %v10180_v10  ;;  %v8682_v10 = vld [vmem:[#allocation13 + $0x4] ss:$8 sps:$4 sm:$0xff]  }
 0x21e   : > { %2519 = vmatmul.mubr.bf16.gmra.mxu1 %v10158_v61  ;;  %v8715_v61 = vld [vmem:[#allocation13 + $0x174] ss:$8 sps:$4 sm:$0xff]  }
 0x21f   : > { %3073 = vmatpush1.bf16.msra.mxu1 %v8665_v32  ;;  %3121 = vmatprep.subr.bf16.mxu0 %v8715_v61  ;;  %v8805_v32 = vld [vmem:[#allocation13 + $0x374] ss:$8 sps:$4 sm:$0xff]  }
 0x220   : > { %3074 = vmatprep.subr.bf16.mxu1 %v8670_v33  ;;  %3122 = vmatpush1.bf16.msra.mxu0 %v8713_v41 }
 0x223   : > { %3075 = vmatpush1.bf16.msra.mxu1 %v8668_v40 }
 0x224   : > { %2572 = vmatmul.mubr.bf16.gmra.mxu0 %v10190_v21  ;;  %3076 = vmatprep.subr.bf16.mxu1 %v8673_v35  ;;  %v8721_v21 = vld [vmem:[#allocation13 + $0x164] ss:$8 sps:$4 sm:$0xff]  }
 0x225   : > { %3123 = vmatprep.subr.bf16.mxu0 %v8721_v21 }
 0x226   : > { %3124 = vmatpush1.bf16.msra.mxu0 %v8719_v44 }
 0x227   : > { %3077 = vmatpush1.bf16.msra.mxu1 %v8671_v51  ;;  %3125 = vmatprep.subr.bf16.mxu0 %v8727_v50 }
 0x228   : > { %3078 = vmatprep.subr.bf16.mxu1 %v8676_v38 }
 0x22a   : > { %3126 = vmatpush1.bf16.msra.mxu0 %v8725_v46 }
 0x22b   : > { %3079 = vmatpush1.bf16.msra.mxu1 %v8674_v39  ;;  %3127 = vmatprep.subr.bf16.mxu0 %v8733_v52 }
 0x22c   : > { %3080 = vmatprep.subr.bf16.mxu1 %v8679_v15 }
 0x22e   : > { %3128 = vmatpush1.bf16.msra.mxu0 %v8731_v49 }
 0x22f   : > { %3081 = vmatpush1.bf16.msra.mxu1 %v8677_v37  ;;  %3129 = vmatprep.subr.bf16.mxu0 %v8739_v57 }
 0x230   : > { %3082 = vmatprep.subr.bf16.mxu1 %v8682_v10 }
 0x232   : > { %3130 = vmatpush1.bf16.msra.mxu0 %v8737_v55 }
 0x233   : > { %3083 = vmatpush1.bf16.msra.mxu1 %v8680_v42  ;;  %3131 = vmatprep.subr.bf16.mxu0 %v8745_v63 }
 0x234   : > { %3084 = vmatprep.subr.bf16.mxu1 %v8685_v43 }
 0x236   : > { %3132 = vmatpush1.bf16.msra.mxu0 %v8743_v62 }
 0x237   : > { %3085 = vmatpush2.bf16.msra.mxu1 %v8683_v47  ;;  %3133 = vmatprep.subr.bf16.mxu0 %v8751_v7 }
 0x238   : > { %3086 = vmatprep.subr.bf16.mxu1 %v8688_v45 }
 0x23a   : > { %3134 = vmatpush1.bf16.msra.mxu0 %v8749_v5 }
 0x23b   : > { %3087 = vmatpush2.bf16.msra.mxu1 %v8686_v36  ;;  %3135 = vmatprep.subr.bf16.mxu0 %v8757_v13 }
 0x23c   : > { %3088 = vmatprep.subr.bf16.mxu1 %v8691_v48  ;;  %v10206_v48 = vld [vmem:[%s10595_s8 + $0x2] ss:$8 sm:$0xf] }
 0x23d   : > { %v2610_v55 = vrot.slane %v10206_v48, %v10065_v24  ;;  %v2606_v62 = vrot.slane %v10206_v48, %v10068_v27 }
 0x23e   : > { %3136 = vmatpush1.bf16.msra.mxu0 %v8755_v12 }
 0x23f   : > { %3089 = vmatpush2.bf16.msra.mxu1 %v8689_v53  ;;  %3137 = vmatprep.subr.bf16.mxu0 %v8763_v1 }
 0x240   : > { %3090 = vmatprep.subr.bf16.mxu1 %v8694_v54 }
 0x242   : > { %3138 = vmatpush2.bf16.msra.mxu0 %v8761_v29 }
 0x243   : > { %3091 = vmatpush2.bf16.msra.mxu1 %v8692_v59  ;;  %3139 = vmatprep.subr.bf16.mxu0 %v8769_v20 }
 0x244   : > { %3092 = vmatprep.subr.bf16.mxu1 %v8697_v60 }
 0x246   : > { %3140 = vmatpush2.bf16.msra.mxu0 %v8767_v6 }
 0x247   : > { %3093 = vmatpush2.bf16.msra.mxu1 %v8695_v2  ;;  %3141 = vmatprep.subr.bf16.mxu0 %v8775_v58  ;;  %v10215_v2 = vld [vmem:[%s10595_s8 + $0x3] ss:$8 sm:$0xf] }
 0x248   : > { %3094 = vmatprep.subr.bf16.mxu1 %v8700_v3 }
 0x24a   : > { %3142 = vmatpush2.bf16.msra.mxu0 %v8773_v34 }
 0x24b   : > { %3095 = vmatpush2.bf16.msra.mxu1 %v8698_v8  ;;  %3143 = vmatprep.subr.bf16.mxu0 %v8781_v17  ;;  %v2647_v8 = vrot.slane %v10215_v2, %v10065_v24 }
 0x24c   : > { %3096 = vmatprep.subr.bf16.mxu1 %v8703_v11 }
 0x24e   : > { %3144 = vmatpush2.bf16.msra.mxu0 %v8779_v18 }
 0x24f   : > { %3097 = vmatpush2.bf16.msra.mxu1 %v8701_v4  ;;  %3145 = vmatprep.subr.bf16.mxu0 %v8787_v19 }
 0x250   : > { %3098 = vmatprep.subr.bf16.mxu1 %v8706_v56 }
 0x252   : > { %3146 = vmatpush2.bf16.msra.mxu0 %v8785_v22 }
 0x253   : > { %3099 = vmatpush2.bf16.msra.mxu1 %v8704_v14  ;;  %3147 = vmatprep.subr.bf16.mxu0 %v8793_v23  ;;  %v2643_v14 = vrot.slane %v10215_v2, %v10068_v27 }
 0x254   : > { %3559 = vmatprep.subr.bf16.mxu1 %v8709_v16 }
 0x256   : > { %3148 = vmatpush2.bf16.msra.mxu0 %v8791_v25  ;;  %v2298_v33 = vpop.f32.mrf.mxu1 }
 0x257   : > { %3149 = vmatprep.subr.bf16.mxu0 %v8799_v26 }
 0x258   : > { %v2300_v40 = vpop.f32.mrf.mxu1 }
 0x25a   : > { %3150 = vmatpush2.bf16.msra.mxu0 %v8797_v28  ;;  %v2302_v35 = vpop.f32.mrf.mxu1 }
 0x25b   : > { %3151 = vmatprep.subr.bf16.mxu0 %v8802_v30 }
 0x25c   : > { %v2304_v51 = vpop.f32.mrf.mxu1  ;;  %v2351_v38 = vpop.f32.mrf.mxu0 }
 0x25d   : > { %v2352_v44 = vadd.f32 %v2351_v38, %v2298_v33  ;;  %v8712_v38 = vld [vmem:[#allocation13 + $0x264] ss:$8 sps:$4 sm:$0xff]  }
 0x25e   : > { %3152 = vmatpush2.bf16.msra.mxu0 %v8800_v9  ;;  %v2308_v39 = vpop.f32.mrf.mxu1  ;;  %v2353_v15 = vpop.f32.mrf.mxu0 }
 0x25f   : > { %3612 = vmatprep.subr.bf16.mxu0 %v8805_v32  ;;  %v2354_v47 = vadd.f32 %v2353_v15, %v2300_v40  ;;  %v8707_v40 = vld [vmem:[#allocation13 + $0x270] ss:$8 sps:$4 sm:$0xff]  }
 0x260   : > { %v2310_v37 = vpop.f32.mrf.mxu1  ;;  %v2355_v10 = vpop.f32.mrf.mxu0 }
 0x261   : > { %v2356_v36 = vadd.f32 %v2355_v10, %v2302_v35 }
 0x262   : > { %v2312_v41 = vpop.f32.mrf.mxu1  ;;  %v2357_v61 = vpop.f32.mrf.mxu0 }
 0x263   : > { %v2358_v53 = vadd.f32 %v2357_v61, %v2304_v51  ;;  %v8710_v61 = vld [vmem:[#allocation13 + $0x260] ss:$8 sps:$4 sm:$0xff]  }
 0x264   : > { %v2314_v42 = vpop.f32.mrf.mxu1  ;;  %v2361_v43 = vpop.f32.mrf.mxu0 }
 0x265   : > { %v2362_v7 = vadd.f32 %v2361_v43, %v2308_v39  ;;  %v8718_v43 = vld [vmem:[#allocation13 + $0x254] ss:$8 sps:$4 sm:$0xff]  }
 0x266   : > { %v2363_v45 = vpop.f32.mrf.mxu0 }
 0x267   : > { %v2364_v12 = vadd.f32 %v2363_v45, %v2310_v37 }
 0x268   : > { %v2365_v59 = vpop.f32.mrf.mxu0 }
 0x269   : > { %v2366_v34 = vadd.f32 %v2365_v59, %v2312_v41  ;;  %v8740_v59 = vld [vmem:[#allocation13 + $0x210] ss:$8 sps:$4 sm:$0xff]  }
 0x26a   : > { %v2367_v29 = vpop.f32.mrf.mxu0 }
 0x26b   : > { %v2368_v19 = vadd.f32 %v2367_v29, %v2314_v42 }
 0x296   : > { %v2404_v21 = vpop.f32.mrf.mxu1 }
 0x297   : > { %v2405_v46 = vadd.f32 %v2404_v21, %v2352_v44 }
 0x298   : > { %v2406_v50 = vpop.f32.mrf.mxu1 }
 0x299   : > { %v2407_v49 = vadd.f32 %v2406_v50, %v2354_v47  ;;  %v2582_v60 = vmax.f32 %v2405_v46, 0.0  ;;  %v8716_v46 = vld [vmem:[#allocation13 + $0x250] ss:$8 sps:$4 sm:$0xff]  }
 0x29a   : > { %v2408_v52 = vpop.f32.mrf.mxu1 }
 0x29b   : > { %v2583_v54 = vmax.f32 %v2407_v49, 0.0  ;;  %v2409_v57 = vadd.f32 %v2408_v52, %v2356_v36  ;;  %v2623_v1 = vmul.f32 %v2606_v62, %v2582_v60  ;;  %v8724_v36 = vld [vmem:[#allocation13 + $0x244] ss:$8 sps:$4 sm:$0xff]   ;;  %v8722_v49 = vld [vmem:[#allocation13 + $0x240] ss:$8 sps:$4 sm:$0xff]  }
 0x29c   : > { %v2410_v63 = vpop.f32.mrf.mxu1  ;;  %v8730_v52 = vld [vmem:[#allocation13 + $0x234] ss:$8 sps:$4 sm:$0xff]   ;;  %v2457_v60 = vpop.f32.mrf.mxu0 }
 0x29d   : > { %v2586_v3 = vmax.f32 %v2409_v57, 0.0  ;;  %v2411_v5 = vadd.f32 %v2410_v63, %v2358_v53  ;;  %v2624_v13 = vmul.f32 %v2610_v55, %v2583_v54  ;;  %v2660_v26 = vadd.f32 %v2643_v14, %v2623_v1  ;;  %v8728_v53 = vld [vmem:[#allocation13 + $0x230] ss:$8 sps:$4 sm:$0xff]   ;;  %v8736_v54 = vld [vmem:[#allocation13 + $0x224] ss:$8 sps:$4 sm:$0xff]  }
 0x29e   : > { %v2414_v11 = vpop.f32.mrf.mxu1  ;;  %v8742_v57 = vld [vmem:[#allocation13 + $0x214] ss:$8 sps:$4 sm:$0xff]   ;;  %v8746_v63 = vld [vmem:[#allocation13 + $0x200] ss:$8 sps:$4 sm:$0xff]   ;;  %v8772_v1 = vld [vmem:[#allocation13 + $0x2c4] ss:$8 sps:$4 sm:$0xff]  }
 0x29f   : > { %v2627_v4 = vmul.f32 %v2606_v62, %v2586_v3  ;;  %v2587_v56 = vmax.f32 %v2411_v5, 0.0  ;;  %v2415_v16 = vadd.f32 %v2414_v11, %v2362_v7  ;;  %v2661_v22 = vadd.f32 %v2647_v8, %v2624_v13  ;;  %v2459_v3 = vpop.f32.mrf.mxu0  ;;  %v8754_v5 = vld [vmem:[#allocation13 + $0x2f4] ss:$8 sps:$4 sm:$0xff]   ;;  %v8752_v7 = vld [vmem:[#allocation13 + $0x2f0] ss:$8 sps:$4 sm:$0xff]  }
 0x2a0   : > { %v2416_v6 = vpop.f32.mrf.mxu1  ;;  %v8760_v11 = vld [vmem:[#allocation13 + $0x2e4] ss:$8 sps:$4 sm:$0xff]  }
 0x2a1   : > { %v2628_v20 = vmul.f32 %v2610_v55, %v2587_v56  ;;  %v2417_v58 = vadd.f32 %v2416_v6, %v2364_v12  ;;  %v2664_v17 = vadd.f32 %v2643_v14, %v2627_v4  ;;  %v2590_v28 = vmax.f32 %v2415_v16, 0.0  ;;  %v8758_v12 = vld [vmem:[#allocation13 + $0x2e0] ss:$8 sps:$4 sm:$0xff]   ;;  %v8766_v4 = vld [vmem:[#allocation13 + $0x2d4] ss:$8 sps:$4 sm:$0xff]  }
 0x2a2   : > { %v2418_v18 = vpop.f32.mrf.mxu1  ;;  %v8764_v56 = vld [vmem:[#allocation13 + $0x2d0] ss:$8 sps:$4 sm:$0xff]   ;;  %v8778_v6 = vld [vmem:[#allocation13 + $0x2b4] ss:$8 sps:$4 sm:$0xff]  }
 0x2a3   : > { %v2665_v23 = vadd.f32 %v2647_v8, %v2628_v20  ;;  %v2591_v25 = vmax.f32 %v2417_v58, 0.0  ;;  %v2419_v30 = vadd.f32 %v2418_v18, %v2366_v34  ;;  %v10221_v35 = vpack.c.bf16 %v2664_v17, %v2660_v26  ;;  %v8776_v20 = vld [vmem:[#allocation13 + $0x2b0] ss:$8 sps:$4 sm:$0xff]   ;;  %v8784_v17 = vld [vmem:[#allocation13 + $0x2a4] ss:$8 sps:$4 sm:$0xff]  }
 0x2a4   : > { %v2420_v9 = vpop.f32.mrf.mxu1  ;;  %v2631_v37 = vmul.f32 %v2606_v62, %v2590_v28 }
 0x2a5   : > { %v2421_v32 = vadd.f32 %v2420_v9, %v2368_v19  ;;  %v2677_v33 = vpack.c.bf16 %v2665_v23, %v2661_v22  ;;  %v2594_v51 = vmax.f32 %v2419_v30, 0.0  ;;  %v2632_v39 = vmul.f32 %v2610_v55, %v2591_v25  ;;  %v8782_v19 = vld [vmem:[#allocation13 + $0x2a0] ss:$8 sps:$4 sm:$0xff]   ;;  %v8790_v25 = vld [vmem:[#allocation13 + $0x294] ss:$8 sps:$4 sm:$0xff]  }
 0x2a6   : > { %v2668_v47 = vadd.f32 %v2643_v14, %v2631_v37  ;;  %v2613_v37 = vsub.s32 2, %v9954_v31 }
 0x2a7   : > { %v2595_v15 = vmax.f32 %v2421_v32, 0.0  ;;  %3100 = vmatprep.mubr.bf16.mxu1 %v2677_v33  ;;  %v2635_v10 = vmul.f32 %v2606_v62, %v2594_v51  ;;  %v2669_v44 = vadd.f32 %v2647_v8, %v2632_v39  ;;  %v8748_v62 = vld [vmem:[#allocation13 + $0x204] ss:$8 sps:$4 sm:$0xff]   ;;  %v8788_v32 = vld [vmem:[#allocation13 + $0x290] ss:$8 sps:$4 sm:$0xff]   ;;  %v2617_v51 = vsub.s32 3, %v9954_v31 }
 0x2a8   : > { %3101 = vmatmul.mubr.bf16.vlgmr.msra.gmra.mxu1 %v10221_v35  ;;  %v6979_v31 = vld [vmem:[%s10600_s13 + $0xf0] sm:$0xff] }
 0x2a9   : > { %v2636_v41 = vmul.f32 %v2610_v55, %v2595_v15  ;;  %3560 = vmatpush1.bf16.msra.mxu1 %v8707_v40  ;;  %v2672_v42 = vadd.f32 %v2643_v14, %v2635_v10  ;;  %v8734_v55 = vld [vmem:[#allocation13 + $0x220] ss:$8 sps:$4 sm:$0xff]  }
 0x2aa   : > { %3561 = vmatprep.subr.bf16.mxu1 %v8712_v38  ;;  %v8770_v14 = vld [vmem:[#allocation13 + $0x2c0] ss:$8 sps:$4 sm:$0xff]   ;;  %v8796_v38 = vld [vmem:[#allocation13 + $0x284] ss:$8 sps:$4 sm:$0xff]  }
 0x2ab   : > { %v2673_v21 = vadd.f32 %v2647_v8, %v2636_v41  ;;  %v10226_v50 = vpack.c.bf16 %v2672_v42, %v2668_v47  ;;  %v2461_v8 = vpop.f32.mrf.mxu0  ;;  %v2618_v47 = vrot.slane %v10206_v48, %v2617_v51 }
 0x2ad   : > { %3562 = vmatpush1.bf16.msra.mxu1 %v8710_v61  ;;  %v10224_v45 = vpack.c.bf16 %v2673_v21, %v2669_v44  ;;  %v2463_v13 = vpop.f32.mrf.mxu0 }
 0x2ae   : > { %3563 = vmatprep.subr.bf16.mxu1 %v8718_v43  ;;  %v8794_v43 = vld [vmem:[#allocation13 + $0x280] ss:$8 sps:$4 sm:$0xff]  }
 0x2af   : > { %3110 = vmatprep.mubr.bf16.mxu1 %v10224_v45  ;;  %v2467_v29 = vpop.f32.mrf.mxu0 }
 0x2b0   : > { %3111 = vmatmul.mubr.bf16.gmra.mxu1 %v10226_v50 }
 0x2b1   : > { %3564 = vmatpush1.bf16.msra.mxu1 %v8716_v46  ;;  %3591 = vmatprep.mubr.bf16.mxu1 %v2677_v33  ;;  %v2469_v16 = vpop.f32.mrf.mxu0 }
 0x2b2   : > { %3565 = vmatprep.subr.bf16.mxu1 %v8724_v36 }
 0x2b3   : > { %v2471_v58 = vpop.f32.mrf.mxu0 }
 0x2b5   : > { %3566 = vmatpush1.bf16.msra.mxu1 %v8722_v49  ;;  %v2473_v22 = vpop.f32.mrf.mxu0 }
 0x2b6   : > { %3567 = vmatprep.subr.bf16.mxu1 %v8730_v52  ;;  %v2614_v52 = vrot.slane %v10206_v48, %v2613_v37 }
 0x2b9   : > { %3568 = vmatpush1.bf16.msra.mxu1 %v8728_v53 }
 0x2ba   : > { %3569 = vmatprep.subr.bf16.mxu1 %v8736_v54 }
 0x2bd   : > { %3570 = vmatpush1.bf16.msra.mxu1 %v8734_v55 }
 0x2be   : > { %3571 = vmatprep.subr.bf16.mxu1 %v8742_v57 }
 0x2c1   : > { %3572 = vmatpush1.bf16.msra.mxu1 %v8740_v59 }
 0x2c2   : > { %3573 = vmatprep.subr.bf16.mxu1 %v8748_v62  ;;  %v2651_v62 = vrot.slane %v10215_v2, %v2613_v37 }
 0x2c5   : > { %3574 = vmatpush1.bf16.msra.mxu1 %v8746_v63 }
 0x2c6   : > { %3575 = vmatprep.subr.bf16.mxu1 %v8754_v5 }
 0x2c9   : > { %3576 = vmatpush2.bf16.msra.mxu1 %v8752_v7 }
 0x2ca   : > { %3577 = vmatprep.subr.bf16.mxu1 %v8760_v11 }
 0x2cd   : > { %3578 = vmatpush2.bf16.msra.mxu1 %v8758_v12 }
 0x2ce   : > { %3579 = vmatprep.subr.bf16.mxu1 %v8766_v4 }
 0x2d1   : > { %3580 = vmatpush2.bf16.msra.mxu1 %v8764_v56 }
 0x2d2   : > { %3581 = vmatprep.subr.bf16.mxu1 %v8772_v1 }
 0x2d5   : > { %3582 = vmatpush2.bf16.msra.mxu1 %v8770_v14 }
 0x2d6   : > { %v2510_v34 = vpop.f32.mrf.mxu1  ;;  %3583 = vmatprep.subr.bf16.mxu1 %v8778_v6 }
 0x2d7   : > { %v2511_v30 = vadd.f32 %v2510_v34, %v2457_v60 }
 0x2d8   : > { %v2512_v18 = vpop.f32.mrf.mxu1 }
 0x2d9   : > { %3584 = vmatpush2.bf16.msra.mxu1 %v8776_v20  ;;  %v2513_v9 = vadd.f32 %v2512_v18, %v2459_v3  ;;  %v2655_v3 = vrot.slane %v10215_v2, %v2617_v51  ;;  %v8811_v51 = vld [vmem:[#allocation13 + $0x354] ss:$8 sps:$4 sm:$0xff]  }
 0x2da   : > { %v2514_v23 = vpop.f32.mrf.mxu1  ;;  %3585 = vmatprep.subr.bf16.mxu1 %v8784_v17 }
 0x2db   : > { %v2515_v39 = vadd.f32 %v2514_v23, %v2461_v8  ;;  %v8803_v23 = vld [vmem:[#allocation13 + $0x370] ss:$8 sps:$4 sm:$0xff]  }
 0x2dc   : > { %v2516_v26 = vpop.f32.mrf.mxu1  ;;  %v2563_v28 = vpop.f32.mrf.mxu0 }
 0x2dd   : > { %3586 = vmatpush2.bf16.msra.mxu1 %v8782_v19  ;;  %v2564_v15 = vadd.f32 %v2563_v28, %v2511_v30  ;;  %v2517_v44 = vadd.f32 %v2516_v26, %v2463_v13  ;;  %v8808_v30 = vld [vmem:[#allocation13 + $0x364] ss:$8 sps:$4 sm:$0xff]  }
 0x2de   : > { %v2520_v33 = vpop.f32.mrf.mxu1  ;;  %v2565_v40 = vpop.f32.mrf.mxu0  ;;  %3587 = vmatprep.subr.bf16.mxu1 %v8790_v25 }
 0x2df   : > { %v2566_v10 = vadd.f32 %v2565_v40, %v2513_v9  ;;  %v2584_v49 = vmax.f32 %v2564_v15, 0.0  ;;  %v2521_v57 = vadd.f32 %v2520_v33, %v2467_v29  ;;  %v8809_v15 = vld [vmem:[#allocation13 + $0x350] ss:$8 sps:$4 sm:$0xff]  }
 0x2e0   : > { %v2522_v41 = vpop.f32.mrf.mxu1  ;;  %v2567_v61 = vpop.f32.mrf.mxu0 }
 0x2e1   : > { %3588 = vmatpush2.bf16.msra.mxu1 %v8788_v32  ;;  %v2568_v42 = vadd.f32 %v2567_v61, %v2515_v39  ;;  %v2585_v21 = vmax.f32 %v2566_v10, 0.0  ;;  %v2523_v59 = vadd.f32 %v2522_v41, %v2469_v16  ;;  %v2625_v11 = vmul.f32 %v2614_v52, %v2584_v49  ;;  %v8814_v10 = vld [vmem:[#allocation13 + $0x344] ss:$8 sps:$4 sm:$0xff]   ;;  %v8817_v41 = vld [vmem:[#allocation13 + $0x334] ss:$8 sps:$4 sm:$0xff]  }
 0x2e2   : > { %v2524_v46 = vpop.f32.mrf.mxu1  ;;  %v2569_v36 = vpop.f32.mrf.mxu0  ;;  %3589 = vmatprep.subr.bf16.mxu1 %v8796_v38  ;;  %v8815_v61 = vld [vmem:[#allocation13 + $0x330] ss:$8 sps:$4 sm:$0xff]  }
 0x2e3   : > { %v2588_v53 = vmax.f32 %v2568_v42, 0.0  ;;  %v2570_v54 = vadd.f32 %v2569_v36, %v2517_v44  ;;  %v2626_v63 = vmul.f32 %v2618_v47, %v2585_v21  ;;  %v2525_v12 = vadd.f32 %v2524_v46, %v2471_v58  ;;  %v8820_v42 = vld [vmem:[#allocation13 + $0x324] ss:$8 sps:$4 sm:$0xff]   ;;  %v8823_v44 = vld [vmem:[#allocation13 + $0x314] ss:$8 sps:$4 sm:$0xff]  }
 0x2e4   : > { %v2573_v55 = vpop.f32.mrf.mxu0  ;;  %v2526_v7 = vpop.f32.mrf.mxu1  ;;  %v2662_v34 = vadd.f32 %v2651_v62, %v2625_v11  ;;  %v8821_v21 = vld [vmem:[#allocation13 + $0x310] ss:$8 sps:$4 sm:$0xff]   ;;  %v8824_v46 = vld [vmem:[#allocation13 + $0x300] ss:$8 sps:$4 sm:$0xff]   ;;  %v8829_v36 = vld [vmem:[#allocation13 + $0x3f4] ss:$8 sps:$4 sm:$0xff]  }
 0x2e5   : > { %v2629_v60 = vmul.f32 %v2614_v52, %v2588_v53  ;;  %3590 = vmatpush2.bf16.msra.mxu1 %v8794_v43  ;;  %v2589_v5 = vmax.f32 %v2570_v54, 0.0  ;;  %v2574_v13 = vadd.f32 %v2573_v55, %v2521_v57  ;;  %v2527_v1 = vadd.f32 %v2526_v7, %v2473_v22  ;;  %v8818_v43 = vld [vmem:[#allocation13 + $0x320] ss:$8 sps:$4 sm:$0xff]   ;;  %v8827_v49 = vld [vmem:[#allocation13 + $0x3f0] ss:$8 sps:$4 sm:$0xff]  }
 0x2e6   : > { %v2575_v8 = vpop.f32.mrf.mxu0  ;;  %v2663_v6 = vadd.f32 %v2655_v3, %v2626_v63  ;;  %v8830_v53 = vld [vmem:[#allocation13 + $0x3e0] ss:$8 sps:$4 sm:$0xff]   ;;  %v8835_v54 = vld [vmem:[#allocation13 + $0x3d4] ss:$8 sps:$4 sm:$0xff]   ;;  %v8833_v55 = vld [vmem:[#allocation13 + $0x3d0] ss:$8 sps:$4 sm:$0xff]  }
 0x2e7   : > { %v2576_v4 = vadd.f32 %v2575_v8, %v2523_v59  ;;  %v2630_v48 = vmul.f32 %v2618_v47, %v2589_v5  ;;  %v2666_v29 = vadd.f32 %v2651_v62, %v2629_v60  ;;  %v2592_v17 = vmax.f32 %v2574_v13, 0.0  ;;  %v8838_v57 = vld [vmem:[#allocation13 + $0x3c4] ss:$8 sps:$4 sm:$0xff]   ;;  %v8836_v59 = vld [vmem:[#allocation13 + $0x3c0] ss:$8 sps:$4 sm:$0xff]  }
 0x2e8   : > { %3592 = vmatmul.mubr.bf16.vlgmr.msra.gmra.mxu1 %v10221_v35  ;;  %v2577_v56 = vpop.f32.mrf.mxu0  ;;  %v8841_v60 = vld [vmem:[#allocation13 + $0x3b4] ss:$8 sps:$4 sm:$0xff]   ;;  %v8844_v63 = vld [vmem:[#allocation13 + $0x3a4] ss:$8 sps:$4 sm:$0xff]   ;;  %v8845_v7 = vld [vmem:[#allocation13 + $0x390] ss:$8 sps:$4 sm:$0xff]  }
 0x2e9   : > { %v2593_v14 = vmax.f32 %v2576_v4, 0.0  ;;  %3601 = vmatprep.mubr.bf16.mxu1 %v10224_v45  ;;  %v2578_v16 = vadd.f32 %v2577_v56, %v2525_v12  ;;  %v2667_v20 = vadd.f32 %v2655_v3, %v2630_v48  ;;  %v10238_v25 = vpack.c.bf16 %v2666_v29, %v2662_v34  ;;  %v8806_v45 = vld [vmem:[#allocation13 + $0x360] ss:$8 sps:$4 sm:$0xff]   ;;  %v8847_v5 = vld [vmem:[#allocation13 + $0x394] ss:$8 sps:$4 sm:$0xff]  }
 0x2ea   : > { %v2579_v2 = vpop.f32.mrf.mxu0  ;;  %v2633_v22 = vmul.f32 %v2614_v52, %v2592_v17  ;;  %v8850_v8 = vld [vmem:[#allocation13 + $0x384] ss:$8 sps:$4 sm:$0xff]   ;;  %v8848_v11 = vld [vmem:[#allocation13 + $0x380] ss:$8 sps:$4 sm:$0xff]  }
 0x2eb   : > { %v2596_v18 = vmax.f32 %v2578_v16, 0.0  ;;  %v2580_v19 = vadd.f32 %v2579_v2, %v2527_v1  ;;  %v2679_v58 = vpack.c.bf16 %v2667_v20, %v2663_v6  ;;  %v2634_v26 = vmul.f32 %v2618_v47, %v2593_v14 }
 0x2ec   : > { %v2670_v38 = vadd.f32 %v2651_v62, %v2633_v22 }
 0x2ed   : > { %v2637_v35 = vmul.f32 %v2614_v52, %v2596_v18  ;;  %v2597_v28 = vmax.f32 %v2580_v19, 0.0  ;;  %3153 = vmatprep.mubr.bf16.mxu0 %v2679_v58  ;;  %v2671_v32 = vadd.f32 %v2655_v3, %v2634_v26  ;;  %v8832_v52 = vld [vmem:[#allocation13 + $0x3e4] ss:$8 sps:$4 sm:$0xff]  }
 0x2ee   : > { %3154 = vmatmul.mubr.bf16.vlgmr.msra.gmra.mxu0 %v10238_v25 }
 0x2ef   : > { %v2638_v9 = vmul.f32 %v2618_v47, %v2597_v28  ;;  %3613 = vmatpush1.bf16.msra.mxu0 %v8803_v23  ;;  %v2674_v33 = vadd.f32 %v2651_v62, %v2637_v35  ;;  %v8826_v47 = vld [vmem:[#allocation13 + $0x304] ss:$8 sps:$4 sm:$0xff]   ;;  %v8839_v62 = vld [vmem:[#allocation13 + $0x3b0] ss:$8 sps:$4 sm:$0xff]  }
 0x2f0   : > { %3602 = vmatmul.mubr.bf16.gmra.mxu1 %v10226_v50  ;;  %3614 = vmatprep.subr.bf16.mxu0 %v8808_v30  ;;  %v8812_v50 = vld [vmem:[#allocation13 + $0x340] ss:$8 sps:$4 sm:$0xff]  }
 0x2f1   : > { %v2675_v40 = vadd.f32 %v2655_v3, %v2638_v9  ;;  %3720 = vmatprep.mubr.bf16.mxu1 %v9626_v0  ;;  %v2682_v37 = vpack.c.bf16 %v2674_v33, %v2670_v38  ;;  %v8842_v3 = vld [vmem:[#allocation13 + $0x3a0] ss:$8 sps:$4 sm:$0xff]  }
 0x2f3   : > { %v2683_v39 = vpack.c.bf16 %v2675_v40, %v2671_v32  ;;  %3615 = vmatpush1.bf16.msra.mxu0 %v8806_v45 }
 0x2f4   : > { %3616 = vmatprep.subr.bf16.mxu0 %v8811_v51 }
 0x2f5   : > { %3163 = vmatprep.mubr.bf16.mxu0 %v2683_v39 }
 0x2f6   : > { %3164 = vmatmul.mubr.bf16.gmra.mxu0 %v2682_v37 }
 0x2f7   : > { %3617 = vmatpush1.bf16.msra.mxu0 %v8809_v15  ;;  %3644 = vmatprep.mubr.bf16.mxu0 %v2679_v58 }
 0x2f8   : > { %3618 = vmatprep.subr.bf16.mxu0 %v8814_v10 }
 0x2fb   : > { %3619 = vmatpush1.bf16.msra.mxu0 %v8812_v50 }
 0x2fc   : > { %3620 = vmatprep.subr.bf16.mxu0 %v8817_v41 }
 0x2ff   : > { %3621 = vmatpush1.bf16.msra.mxu0 %v8815_v61 }
 0x300   : > { %3622 = vmatprep.subr.bf16.mxu0 %v8820_v42 }
 0x303   : > { %3623 = vmatpush1.bf16.msra.mxu0 %v8818_v43 }
 0x304   : > { %3624 = vmatprep.subr.bf16.mxu0 %v8823_v44 }
 0x307   : > { %3625 = vmatpush1.bf16.msra.mxu0 %v8821_v21 }
 0x308   : > { %3626 = vmatprep.subr.bf16.mxu0 %v8826_v47 }
 0x30b   : > { %3627 = vmatpush1.bf16.msra.mxu0 %v8824_v46 }
 0x30c   : > { %3628 = vmatprep.subr.bf16.mxu0 %v8829_v36 }
 0x30f   : > { %3629 = vmatpush2.bf16.msra.mxu0 %v8827_v49 }
 0x310   : > { %3630 = vmatprep.subr.bf16.mxu0 %v8832_v52 }
 0x313   : > { %3631 = vmatpush2.bf16.msra.mxu0 %v8830_v53 }
 0x314   : > { %3632 = vmatprep.subr.bf16.mxu0 %v8835_v54 }
 0x317   : > { %3633 = vmatpush2.bf16.msra.mxu0 %v8833_v55 }
 0x318   : > { %3634 = vmatprep.subr.bf16.mxu0 %v8838_v57 }
 0x31b   : > { %3635 = vmatpush2.bf16.msra.mxu0 %v8836_v59 }
 0x31c   : > { %3636 = vmatprep.subr.bf16.mxu0 %v8841_v60 }
 0x31f   : > { %3637 = vmatpush2.bf16.msra.mxu0 %v8839_v62 }
 0x320   : > { %3638 = vmatprep.subr.bf16.mxu0 %v8844_v63 }
 0x323   : > { %3639 = vmatpush2.bf16.msra.mxu0 %v8842_v3 }
 0x324   : > { %3640 = vmatprep.subr.bf16.mxu0 %v8847_v5 }
 0x327   : > { %3641 = vmatpush2.bf16.msra.mxu0 %v8845_v7 }
 0x328   : > { %3642 = vmatprep.subr.bf16.mxu0 %v8850_v8 }
 0x32b   : > { %3643 = vmatpush2.bf16.msra.mxu0 %v8848_v11 }
 0x32e   : > { %3645 = vmatmul.mubr.bf16.vlgmr.msra.gmra.mxu0 %v10238_v25 }
 0x32f   : > { %3654 = vmatprep.mubr.bf16.mxu0 %v2683_v39 }
 0x336   : > { %3655 = vmatmul.mubr.bf16.gmra.mxu0 %v2682_v37 }
 0x368   : > { %v3102_v12 = vpop.f32.mrf.mxu1 }
 0x36a   : > { %v3104_v13 = vpop.f32.mrf.mxu1 }
 0x36c   : > { %v3106_v4 = vpop.f32.mrf.mxu1 }
 0x36e   : > { %v3108_v48 = vpop.f32.mrf.mxu1 }
 0x370   : > { %v3112_v29 = vpop.f32.mrf.mxu1 }
 0x372   : > { %v3114_v14 = vpop.f32.mrf.mxu1 }
 0x374   : > { %v3116_v6 = vpop.f32.mrf.mxu1 }
 0x376   : > { %v3118_v2 = vpop.f32.mrf.mxu1 }
 0x3a8   : > { %v3593_v34 = vpop.f32.mrf.mxu1 }
 0x3aa   : > { %v3595_v18 = vpop.f32.mrf.mxu1 }
 0x3ac   : > { %v3597_v58 = vpop.f32.mrf.mxu1 }
 0x3ae   : > { %v3155_v56 = vpop.f32.mrf.mxu0  ;;  %v3599_v25 = vpop.f32.mrf.mxu1 }
 0x3af   : > { %v3156_v63 = vadd.f32 %v3155_v56, %v3102_v12  ;;  %v8853_v12 = vld [vmem:[%s10598_s11 + $0x78] sm:$0xff]   ;;  %v8855_v56 = vld [vmem:[%s10598_s11 + $0x70] sm:$0xff]  }
 0x3b0   : > { %v3157_v1 = vpop.f32.mrf.mxu0  ;;  %v3603_v28 = vpop.f32.mrf.mxu1 }
 0x3b1   : > { %v3158_v49 = vadd.f32 %v3157_v1, %v3104_v13  ;;  %v8851_v13 = vld [vmem:[%s10597_s10] sm:$0xff]   ;;  %v8857_v1 = vld [vmem:[%s10598_s11 + $0x68] sm:$0xff]  }
 0x3b2   : > { %v3159_v16 = vpop.f32.mrf.mxu0  ;;  %v3605_v9 = vpop.f32.mrf.mxu1 }
 0x3b3   : > { %v3160_v55 = vadd.f32 %v3159_v16, %v3106_v4  ;;  %v8852_v4 = vld [vmem:[%s10597_s10 + $0x8] sm:$0xff]   ;;  %v8859_v16 = vld [vmem:[%s10598_s11 + $0x60] sm:$0xff]  }
 0x3b4   : > { %v3161_v20 = vpop.f32.mrf.mxu0  ;;  %v3607_v33 = vpop.f32.mrf.mxu1 }
 0x3b5   : > { %v3162_v37 = vadd.f32 %v3161_v20, %v3108_v48  ;;  %v8854_v48 = vld [vmem:[%s10598_s11 + $0x38] sm:$0xff]  }
 0x3b6   : > { %v3165_v17 = vpop.f32.mrf.mxu0  ;;  %v3609_v10 = vpop.f32.mrf.mxu1  ;;  %v8861_v20 = vld [vmem:[%s10598_s11 + $0x58] sm:$0xff]  }
 0x3b7   : > { %v3166_v47 = vadd.f32 %v3165_v17, %v3112_v29  ;;  %v8856_v29 = vld [vmem:[%s10598_s11 + $0x30] sm:$0xff]  }
 0x3b8   : > { %v3167_v19 = vpop.f32.mrf.mxu0  ;;  %v8864_v17 = vld [vmem:[%s10598_s11 + $0x10] sm:$0xff]  }
 0x3b9   : > { %v3168_v42 = vadd.f32 %v3167_v19, %v3114_v14  ;;  %v8858_v14 = vld [vmem:[%s10598_s11 + $0x28] sm:$0xff]  }
 0x3ba   : > { %v3169_v23 = vpop.f32.mrf.mxu0  ;;  %v8866_v19 = vld [vmem:[%s10598_s11 + $0x8] sm:$0xff]  }
 0x3bb   : > { %v3170_v50 = vadd.f32 %v3169_v23, %v3116_v6  ;;  %v8860_v6 = vld [vmem:[%s10598_s11 + $0x20] sm:$0xff]  }
 0x3bc   : > { %v3171_v26 = vpop.f32.mrf.mxu0  ;;  %v8868_v23 = vld [vmem:[%s10598_s11] sm:$0xff]  }
 0x3bd   : > { %v3172_v43 = vadd.f32 %v3171_v26, %v3118_v2  ;;  %v8862_v2 = vld [vmem:[%s10598_s11 + $0x18] sm:$0xff]  }
 0x3be   : > { %v8871_v26 = vld [vmem:[#allocation5 + $0x74] ss:$8 sps:$4 sm:$0xff]  }
 0x3bf   : > { %4259 = vmatprep.subr.bf16.mxu0 %v8871_v26  ;;  %v8940_v26 = vld [vmem:[#allocation5 + $0x84] ss:$8 sps:$4 sm:$0xff]  }
 0x3ee   : > { %v3646_v35 = vpop.f32.mrf.mxu0 }
 0x3ef   : > { %v3647_v57 = vadd.f32 %v3646_v35, %v3593_v34  ;;  %v8863_v34 = vld [vmem:[%s10598_s11 + $0x50] sm:$0xff]   ;;  %v8874_v35 = vld [vmem:[#allocation5 + $0x64] ss:$8 sps:$4 sm:$0xff]  }
 0x3f0   : > { %v3648_v30 = vpop.f32.mrf.mxu0 }
 0x3f1   : > { %v3649_v44 = vadd.f32 %v3648_v30, %v3595_v18  ;;  %v3665_v8 = vmax.f32 %v3156_v63, %v3647_v57  ;;  %v8865_v18 = vld [vmem:[%s10598_s11 + $0x48] sm:$0xff]   ;;  %v8877_v30 = vld [vmem:[#allocation5 + $0x54] ss:$8 sps:$4 sm:$0xff]  }
 0x3f2   : > { %v3650_v22 = vpop.f32.mrf.mxu0 }
 0x3f3   : > { %v3651_v46 = vadd.f32 %v3650_v22, %v3597_v58  ;;  %v3666_v60 = vmax.f32 %v3158_v49, %v3649_v44  ;;  %v8867_v58 = vld [vmem:[%s10598_s11 + $0x40] sm:$0xff]   ;;  %v8895_v22 = vld [vmem:[#allocation5 + $0x174] ss:$8 sps:$4 sm:$0xff]   ;;  %v8908_v44 = vld [vmem:[#allocation5 + $0xd0] ss:$8 sps:$4 sm:$0xff]  }
 0x3f4   : > { %v3652_v45 = vpop.f32.mrf.mxu0 }
 0x3f5   : > { %v3653_v38 = vadd.f32 %v3652_v45, %v3599_v25  ;;  %v3667_v3 = vmax.f32 %v3160_v55, %v3651_v46  ;;  %v8869_v25 = vld [vmem:[#allocation5 + $0x70] ss:$8 sps:$4 sm:$0xff]   ;;  %v8880_v45 = vld [vmem:[#allocation5 + $0x44] ss:$8 sps:$4 sm:$0xff]   ;;  %v8922_v46 = vld [vmem:[#allocation5 + $0xb4] ss:$8 sps:$4 sm:$0xff]  }
 0x3f6   : > { %v3656_v32 = vpop.f32.mrf.mxu0  ;;  %4260 = vmatpush1.bf16.msra.mxu0 %v8869_v25  ;;  %v8938_v25 = vld [vmem:[#allocation5 + $0x80] ss:$8 sps:$4 sm:$0xff]  }
 0x3f7   : > { %v3657_v41 = vadd.f32 %v3656_v32, %v3603_v28  ;;  %v3668_v52 = vmax.f32 %v3162_v37, %v3653_v38  ;;  %v3673_v11 = vpack.c.bf16 %v3667_v3, %v3665_v8  ;;  %v8872_v28 = vld [vmem:[#allocation5 + $0x60] ss:$8 sps:$4 sm:$0xff]   ;;  %4261 = vmatprep.subr.bf16.mxu0 %v8874_v35  ;;  %v8892_v37 = vld [vmem:[#allocation5 + $0x4] ss:$8 sps:$4 sm:$0xff]   ;;  %v8893_v8 = vld [vmem:[#allocation5 + $0x170] ss:$8 sps:$4 sm:$0xff]  }
 0x3f8   : > { %v3658_v40 = vpop.f32.mrf.mxu0  ;;  %v8878_v32 = vld [vmem:[#allocation5 + $0x40] ss:$8 sps:$4 sm:$0xff]   ;;  %v8943_v35 = vld [vmem:[#allocation7 + $0x74] ss:$8 sps:$4 sm:$0xff]  }
 0x3f9   : > { %v3659_v39 = vadd.f32 %v3658_v40, %v3605_v9  ;;  %v3669_v59 = vmax.f32 %v3166_v47, %v3657_v41  ;;  %v3674_v7 = vpack.c.bf16 %v3668_v52, %v3666_v60  ;;  %v8875_v9 = vld [vmem:[#allocation5 + $0x50] ss:$8 sps:$4 sm:$0xff]   ;;  %v8884_v38 = vld [vmem:[#allocation5 + $0x20] ss:$8 sps:$4 sm:$0xff]  }
 0x3fa   : > { %v3660_v51 = vpop.f32.mrf.mxu0  ;;  %4262 = vmatpush1.bf16.msra.mxu0 %v8872_v28  ;;  %v8881_v40 = vld [vmem:[#allocation5 + $0x30] ss:$8 sps:$4 sm:$0xff]   ;;  %v8914_v47 = vld [vmem:[#allocation5 + $0xc0] ss:$8 sps:$4 sm:$0xff]   ;;  %v8949_v28 = vld [vmem:[#allocation7 + $0x174] ss:$8 sps:$4 sm:$0xff]  }
 0x3fb   : > { %v3661_v15 = vadd.f32 %v3660_v51, %v3607_v33  ;;  %v3670_v53 = vmax.f32 %v3168_v42, %v3659_v39  ;;  %4263 = vmatprep.subr.bf16.mxu0 %v8877_v30  ;;  %v8883_v33 = vld [vmem:[#allocation5 + $0x34] ss:$8 sps:$4 sm:$0xff]   ;;  %v8886_v51 = vld [vmem:[#allocation5 + $0x24] ss:$8 sps:$4 sm:$0xff]   ;;  %v8896_v41 = vld [vmem:[#allocation5 + $0xf0] ss:$8 sps:$4 sm:$0xff]  }
 0x3fc   : > { %v3662_v61 = vpop.f32.mrf.mxu0  ;;  %v8889_v39 = vld [vmem:[#allocation5 + $0x14] ss:$8 sps:$4 sm:$0xff]   ;;  %v8902_v42 = vld [vmem:[#allocation5 + $0xe0] ss:$8 sps:$4 sm:$0xff]  }
 0x3fd   : > { %v3663_v21 = vadd.f32 %v3662_v61, %v3609_v10  ;;  %v3671_v36 = vmax.f32 %v3170_v50, %v3661_v15  ;;  %v8887_v15 = vld [vmem:[#allocation5 + $0x10] ss:$8 sps:$4 sm:$0xff]   ;;  %v8890_v10 = vld [vmem:[#allocation5] ss:$8 sps:$4 sm:$0xff]   ;;  %v8898_v50 = vld [vmem:[#allocation5 + $0xf4] ss:$8 sps:$4 sm:$0xff]  }
 0x3fe   : > { %4264 = vmatpush1.bf16.msra.mxu0 %v8875_v9  ;;  %v8904_v61 = vld [vmem:[#allocation5 + $0xe4] ss:$8 sps:$4 sm:$0xff]  }
 0x3ff   : > { %v3672_v54 = vmax.f32 %v3172_v43, %v3663_v21  ;;  %v3675_v5 = vpack.c.bf16 %v3671_v36, %v3669_v59  ;;  %4265 = vmatprep.subr.bf16.mxu0 %v8880_v45  ;;  %v8910_v43 = vld [vmem:[#allocation5 + $0xd4] ss:$8 sps:$4 sm:$0xff]   ;;  %v8916_v21 = vld [vmem:[#allocation5 + $0xc4] ss:$8 sps:$4 sm:$0xff]   ;;  %v8920_v36 = vld [vmem:[#allocation5 + $0xb0] ss:$8 sps:$4 sm:$0xff]  }
 0x401   : > { %v3676_v62 = vpack.c.bf16 %v3672_v54, %v3670_v53 }
 0x402   : > { %4266 = vmatpush1.bf16.msra.mxu0 %v8878_v32 }
 0x403   : > { %3700 = vmatprep.subr.bf16.mxu1 %v3676_v62  ;;  %4267 = vmatprep.subr.bf16.mxu0 %v8883_v33 }
 0x404   : > { %3701 = vmatpush1.bf16.msra.mxu1 %v3675_v5 }
 0x405   : > { %3702 = vmatprep.subr.bf16.mxu1 %v3674_v7 }
 0x406   : > { %4268 = vmatpush1.bf16.msra.mxu0 %v8881_v40 }
 0x407   : > { %4269 = vmatprep.subr.bf16.mxu0 %v8886_v51 }
 0x408   : > { %3703 = vmatpush1.bf16.msra.mxu1 %v3673_v11 }
 0x409   : > { %3754 = vmatprep.subr.bf16.mxu1 %v3676_v62 }
 0x40a   : > { %4270 = vmatpush1.bf16.msra.mxu0 %v8884_v38 }
 0x40b   : > { %7675 = vmatmul.mubr.msk.bf16.vlgmr.msra.gmra.mxu1 %vm3684_vm2, %v8851_v13  ;;  %4271 = vmatprep.subr.bf16.mxu0 %v8889_v39  ;;  %v8901_v13 = vld [vmem:[#allocation5 + $0x164] ss:$8 sps:$4 sm:$0xff]  }
 0x40c   : > { %3755 = vmatpush1.bf16.msra.mxu1 %v3675_v5  ;;  %3774 = vmatprep.mubr.bf16.mxu1 %v9626_v0 }
 0x40d   : > { %3756 = vmatprep.subr.bf16.mxu1 %v3674_v7 }
 0x40e   : > { %4272 = vmatpush1.bf16.msra.mxu0 %v8887_v15 }
 0x40f   : > { %4273 = vmatprep.subr.bf16.mxu0 %v8892_v37 }
 0x410   : > { %3757 = vmatpush1.bf16.msra.mxu1 %v3673_v11 }
 0x411   : > { %8047 = vmatprep.subr.bf16.mxu1 %v8853_v12  ;;  %v8899_v12 = vld [vmem:[#allocation5 + $0x160] ss:$8 sps:$4 sm:$0xff]  }
 0x412   : > { %4274 = vmatpush1.bf16.msra.mxu0 %v8890_v10 }
 0x413   : > { %7679 = vmatmul.mubr.msk.bf16.vlgmr.msra.gmra.mxu1 %vm3684_vm2, %v8852_v4  ;;  %4275 = vmatprep.subr.bf16.mxu0 %v8898_v50  ;;  %v8907_v4 = vld [vmem:[#allocation5 + $0x154] ss:$8 sps:$4 sm:$0xff]  }
 0x414   : > { %8048 = vmatpush3.bf16.msra.mxu1 %v8854_v48  ;;  %v8905_v48 = vld [vmem:[#allocation5 + $0x150] ss:$8 sps:$4 sm:$0xff]  }
 0x415   : > { %8049 = vmatprep.subr.bf16.mxu1 %v8855_v56  ;;  %v8913_v56 = vld [vmem:[#allocation5 + $0x144] ss:$8 sps:$4 sm:$0xff]  }
 0x416   : > { %4276 = vmatpush2.bf16.msra.mxu0 %v8896_v41  ;;  %v8941_v41 = vld [vmem:[#allocation7 + $0x70] ss:$8 sps:$4 sm:$0xff]  }
 0x417   : > { %4277 = vmatprep.subr.bf16.mxu0 %v8904_v61 }
 0x418   : > { %8050 = vmatpush3.bf16.msra.mxu1 %v8856_v29  ;;  %v8911_v29 = vld [vmem:[#allocation5 + $0x140] ss:$8 sps:$4 sm:$0xff]  }
 0x419   : > { %8051 = vmatprep.subr.bf16.mxu1 %v8857_v1  ;;  %v8919_v1 = vld [vmem:[#allocation5 + $0x134] ss:$8 sps:$4 sm:$0xff]  }
 0x41a   : > { %4278 = vmatpush2.bf16.msra.mxu0 %v8902_v42 }
 0x41b   : > { %4279 = vmatprep.subr.bf16.mxu0 %v8910_v43  ;;  %v8946_v43 = vld [vmem:[#allocation7 + $0x64] ss:$8 sps:$4 sm:$0xff]  }
 0x41c   : > { %8052 = vmatpush3.bf16.msra.mxu1 %v8858_v14  ;;  %v8917_v14 = vld [vmem:[#allocation5 + $0x130] ss:$8 sps:$4 sm:$0xff]  }
 0x41d   : > { %8053 = vmatprep.subr.bf16.mxu1 %v8859_v16  ;;  %v8925_v16 = vld [vmem:[#allocation5 + $0x124] ss:$8 sps:$4 sm:$0xff]  }
 0x41e   : > { %4280 = vmatpush2.bf16.msra.mxu0 %v8908_v44  ;;  %v8947_v44 = vld [vmem:[#allocation7 + $0x170] ss:$8 sps:$4 sm:$0xff]  }
 0x41f   : > { %4281 = vmatprep.subr.bf16.mxu0 %v8916_v21 }
 0x420   : > { %8054 = vmatpush3.bf16.msra.mxu1 %v8860_v6  ;;  %v8923_v6 = vld [vmem:[#allocation5 + $0x120] ss:$8 sps:$4 sm:$0xff]  }
 0x421   : > { %8055 = vmatprep.subr.bf16.mxu1 %v8861_v20  ;;  %v8928_v20 = vld [vmem:[#allocation5 + $0xa4] ss:$8 sps:$4 sm:$0xff]  }
 0x422   : > { %4282 = vmatpush2.bf16.msra.mxu0 %v8914_v47  ;;  %v8955_v47 = vld [vmem:[#allocation7 + $0x164] ss:$8 sps:$4 sm:$0xff]  }
 0x423   : > { %4283 = vmatprep.subr.bf16.mxu0 %v8922_v46  ;;  %v8944_v46 = vld [vmem:[#allocation7 + $0x60] ss:$8 sps:$4 sm:$0xff]  }
 0x424   : > { %8056 = vmatpush3.bf16.msra.mxu1 %v8862_v2  ;;  %v8926_v2 = vld [vmem:[#allocation5 + $0xa0] ss:$8 sps:$4 sm:$0xff]  }
 0x425   : > { %8057 = vmatprep.subr.bf16.mxu1 %v8863_v34  ;;  %v8931_v34 = vld [vmem:[#allocation5 + $0x114] ss:$8 sps:$4 sm:$0xff]  }
 0x426   : > { %4284 = vmatpush2.bf16.msra.mxu0 %v8920_v36  ;;  %v8952_v36 = vld [vmem:[#allocation7 + $0x54] ss:$8 sps:$4 sm:$0xff]  }
 0x427   : > { %4285 = vmatprep.subr.bf16.mxu0 %v8928_v20  ;;  %v8997_v20 = vld [vmem:[#allocation7 + $0x1f4] ss:$8 sps:$4 sm:$0xff]  }
 0x428   : > { %8058 = vmatpush3.bf16.msra.mxu1 %v8864_v17  ;;  %v8929_v17 = vld [vmem:[#allocation5 + $0x110] ss:$8 sps:$4 sm:$0xff]  }
 0x429   : > { %8059 = vmatprep.subr.bf16.mxu1 %v8865_v18  ;;  %v8934_v18 = vld [vmem:[#allocation5 + $0x94] ss:$8 sps:$4 sm:$0xff]  }
 0x42a   : > { %4286 = vmatpush2.bf16.msra.mxu0 %v8926_v2  ;;  %v8986_v2 = vld [vmem:[#allocation7 + $0xf0] ss:$8 sps:$4 sm:$0xff]  }
 0x42b   : > { %4287 = vmatprep.subr.bf16.mxu0 %v8934_v18  ;;  %v9003_v18 = vld [vmem:[#allocation7 + $0x1e4] ss:$8 sps:$4 sm:$0xff]  }
 0x42c   : > { %8060 = vmatpush3.bf16.msra.mxu1 %v8866_v19  ;;  %v8932_v19 = vld [vmem:[#allocation5 + $0x90] ss:$8 sps:$4 sm:$0xff]  }
 0x42d   : > { %8061 = vmatprep.subr.bf16.mxu1 %v8867_v58  ;;  %v8935_v58 = vld [vmem:[#allocation5 + $0x100] ss:$8 sps:$4 sm:$0xff]  }
 0x42e   : > { %4288 = vmatpush2.bf16.msra.mxu0 %v8932_v19  ;;  %v8992_v19 = vld [vmem:[#allocation7 + $0xe0] ss:$8 sps:$4 sm:$0xff]  }
 0x42f   : > { %4289 = vmatprep.subr.bf16.mxu0 %v8940_v26  ;;  %v8998_v26 = vld [vmem:[#allocation7 + $0xd0] ss:$8 sps:$4 sm:$0xff]  }
 0x430   : > { %8062 = vmatpush3.bf16.msra.mxu1 %v8868_v23  ;;  %v8937_v23 = vld [vmem:[#allocation5 + $0x104] ss:$8 sps:$4 sm:$0xff]  }
 0x431   : > { %4302 = vmatprep.subr.bf16.mxu1 %v8895_v22 }
 0x432   : > { %4290 = vmatpush2.bf16.msra.mxu0 %v8938_v25  ;;  %v9009_v25 = vld [vmem:[#allocation7 + $0x1d4] ss:$8 sps:$4 sm:$0xff]  }
 0x433   : > { %5024 = vmatprep.subr.bf16.mxu0 %v8949_v28  ;;  %v9007_v28 = vld [vmem:[#allocation7 + $0x1d0] ss:$8 sps:$4 sm:$0xff]  }
 0x4cb   : > { %v3722_v49 = vpop.f32.mrf.mxu1 }
 0x4cd   : > { %v3724_v52 = vpop.f32.mrf.mxu1 }
 0x4cf   : > { %v3726_v53 = vpop.f32.mrf.mxu1 }
 0x4d1   : > { %v3728_v54 = vpop.f32.mrf.mxu1 }
 0x4d3   : > { %v3776_v55 = vpop.f32.mrf.mxu1 }
 0x4d4   : > { %v3785_v5 = vmax.f32 %v3722_v49, %v3776_v55  ;;  %v8953_v49 = vld [vmem:[#allocation7 + $0x160] ss:$8 sps:$4 sm:$0xff]   ;;  %v8959_v55 = vld [vmem:[#allocation7 + $0x150] ss:$8 sps:$4 sm:$0xff]  }
 0x4d5   : > { %v3778_v57 = vpop.f32.mrf.mxu1 }
 0x4d6   : > { %v3786_v63 = vmax.f32 %v3724_v52, %v3778_v57  ;;  %v8961_v52 = vld [vmem:[#allocation7 + $0x154] ss:$8 sps:$4 sm:$0xff]   ;;  %v8967_v57 = vld [vmem:[#allocation7 + $0x144] ss:$8 sps:$4 sm:$0xff]  }
 0x4d7   : > { %v3780_v59 = vpop.f32.mrf.mxu1 }
 0x4d8   : > { %v3787_v60 = vmax.f32 %v3726_v53, %v3780_v59  ;;  %v8950_v53 = vld [vmem:[#allocation7 + $0x50] ss:$8 sps:$4 sm:$0xff]   ;;  %v8956_v59 = vld [vmem:[#allocation7 + $0x40] ss:$8 sps:$4 sm:$0xff]  }
 0x4d9   : > { %v3782_v62 = vpop.f32.mrf.mxu1 }
 0x4da   : > { %v3788_v3 = vmax.f32 %v3728_v54, %v3782_v62  ;;  %v3789_v11 = vpack.c.bf16 %v3787_v60, %v3785_v5  ;;  %v8958_v54 = vld [vmem:[#allocation7 + $0x44] ss:$8 sps:$4 sm:$0xff]   ;;  %v8964_v60 = vld [vmem:[#allocation7 + $0x34] ss:$8 sps:$4 sm:$0xff]   ;;  %v8965_v62 = vld [vmem:[#allocation7 + $0x140] ss:$8 sps:$4 sm:$0xff]  }
 0x4db   : > { %v8970_v5 = vld [vmem:[#allocation7 + $0x24] ss:$8 sps:$4 sm:$0xff]  }
 0x4dc   : > { %v3790_v7 = vpack.c.bf16 %v3788_v3, %v3786_v63  ;;  %v8973_v63 = vld [vmem:[#allocation7 + $0x134] ss:$8 sps:$4 sm:$0xff]   ;;  %v8962_v3 = vld [vmem:[#allocation7 + $0x30] ss:$8 sps:$4 sm:$0xff]  }
 0x4de   : > { %3951 = vmatprep.mubr.bf16.mxu1 %v3790_v7  ;;  %v8971_v7 = vld [vmem:[#allocation7 + $0x130] ss:$8 sps:$4 sm:$0xff]  }
 0x4df   : > { %3952 = vmatmul.mubr.bf16.vlgmr.msra.gmra.mxu1 %v3789_v11  ;;  %v8968_v11 = vld [vmem:[#allocation7 + $0x20] ss:$8 sps:$4 sm:$0xff]  }
 0x4e0   : > { %4303 = vmatpush1.bf16.msra.mxu1 %v8893_v8  ;;  %4334 = vmatprep.mubr.bf16.mxu1 %v9626_v0  ;;  %v8979_v8 = vld [vmem:[#allocation7 + $0x124] ss:$8 sps:$4 sm:$0xff]  }
 0x4e1   : > { %4304 = vmatprep.subr.bf16.mxu1 %v8901_v13  ;;  %v8976_v13 = vld [vmem:[#allocation7 + $0x14] ss:$8 sps:$4 sm:$0xff]  }
 0x4e4   : > { %4305 = vmatpush1.bf16.msra.mxu1 %v8899_v12  ;;  %v8977_v12 = vld [vmem:[#allocation7 + $0x120] ss:$8 sps:$4 sm:$0xff]  }
 0x4e5   : > { %4306 = vmatprep.subr.bf16.mxu1 %v8907_v4  ;;  %v8985_v4 = vld [vmem:[#allocation7 + $0x114] ss:$8 sps:$4 sm:$0xff]  }
 0x4e8   : > { %4307 = vmatpush1.bf16.msra.mxu1 %v8905_v48  ;;  %v8974_v48 = vld [vmem:[#allocation7 + $0x10] ss:$8 sps:$4 sm:$0xff]  }
 0x4e9   : > { %4308 = vmatprep.subr.bf16.mxu1 %v8913_v56  ;;  %v8982_v56 = vld [vmem:[#allocation7 + $0x4] ss:$8 sps:$4 sm:$0xff]  }
 0x4ec   : > { %4309 = vmatpush1.bf16.msra.mxu1 %v8911_v29  ;;  %v8983_v29 = vld [vmem:[#allocation7 + $0x110] ss:$8 sps:$4 sm:$0xff]  }
 0x4ed   : > { %4310 = vmatprep.subr.bf16.mxu1 %v8919_v1  ;;  %v8991_v1 = vld [vmem:[#allocation7 + $0x104] ss:$8 sps:$4 sm:$0xff]  }
 0x4f0   : > { %4311 = vmatpush1.bf16.msra.mxu1 %v8917_v14  ;;  %v8980_v14 = vld [vmem:[#allocation7] ss:$8 sps:$4 sm:$0xff]  }
 0x4f1   : > { %4312 = vmatprep.subr.bf16.mxu1 %v8925_v16  ;;  %v8988_v16 = vld [vmem:[#allocation7 + $0xf4] ss:$8 sps:$4 sm:$0xff]  }
 0x4f4   : > { %4313 = vmatpush1.bf16.msra.mxu1 %v8923_v6  ;;  %v8989_v6 = vld [vmem:[#allocation7 + $0x100] ss:$8 sps:$4 sm:$0xff]  }
 0x4f5   : > { %4314 = vmatprep.subr.bf16.mxu1 %v8931_v34  ;;  %v8994_v34 = vld [vmem:[#allocation7 + $0xe4] ss:$8 sps:$4 sm:$0xff]  }
 0x4f8   : > { %4315 = vmatpush1.bf16.msra.mxu1 %v8929_v17  ;;  %v8995_v17 = vld [vmem:[#allocation7 + $0x1f0] ss:$8 sps:$4 sm:$0xff]  }
 0x4f9   : > { %4316 = vmatprep.subr.bf16.mxu1 %v8937_v23  ;;  %v9001_v23 = vld [vmem:[#allocation7 + $0x1e0] ss:$8 sps:$4 sm:$0xff]  }
 0x4fc   : > { %4317 = vmatpush1.bf16.msra.mxu1 %v8935_v58  ;;  %v9000_v58 = vld [vmem:[#allocation7 + $0xd4] ss:$8 sps:$4 sm:$0xff]  }
 0x4fd   : > { %4981 = vmatprep.subr.bf16.mxu1 %v8943_v35  ;;  %v9006_v35 = vld [vmem:[#allocation7 + $0xc4] ss:$8 sps:$4 sm:$0xff]  }
 0x59f   : > { %v8063_v30 = vpop.f32.mrf.mxu1 }
 0x5a1   : > { %v8064_v22 = vpop.f32.mrf.mxu1 }
 0x5a2   : > { %v8065_v45 = vadd.f32 %v8064_v22, %v8063_v30  ;;  %v9004_v30 = vld [vmem:[#allocation7 + $0xc0] ss:$8 sps:$4 sm:$0xff]   ;;  %v9012_v22 = vld [vmem:[#allocation7 + $0xb4] ss:$8 sps:$4 sm:$0xff]  }
 0x5a3   : > { %v8066_v9 = vpop.f32.mrf.mxu1 }
 0x5a4   : > { %v3960_v40 = vrot.slane %v8065_v45, 1  ;;  %v3964_v51 = vrot.slane %v8065_v45, 2 }
 0x5a5   : > { %v8067_v32 = vpop.f32.mrf.mxu1 }
 0x5a6   : > { %v8068_v33 = vadd.f32 %v8067_v32, %v8066_v9  ;;  %v9015_v9 = vld [vmem:[#allocation7 + $0x1c4] ss:$8 sps:$4 sm:$0xff]   ;;  %v9013_v32 = vld [vmem:[#allocation7 + $0x1c0] ss:$8 sps:$4 sm:$0xff]  }
 0x5a8   : > { %v3961_v38 = vrot.slane %v8068_v33, 1  ;;  %v3965_v39 = vrot.slane %v8068_v33, 2  ;;  %v3968_v21 = vpack.c.bf16 %v8068_v33, %v8065_v45  ;;  %v9010_v45 = vld [vmem:[#allocation7 + $0xb0] ss:$8 sps:$4 sm:$0xff]   ;;  %v9018_v33 = vld [vmem:[#allocation7 + $0xa4] ss:$8 sps:$4 sm:$0xff]  }
 0x5aa   : > { %v3962_v15 = vsel %vm605_vm0, %v3960_v40, %v3961_v38  ;;  %v3963_v37 = vsel %vm605_vm0, %v3961_v38, %v3960_v40  ;;  %v3966_v10 = vsel %vm614_vm1, %v3964_v51, %v3965_v39  ;;  %v3967_v50 = vsel %vm614_vm1, %v3965_v39, %v3964_v51  ;;  %v9021_v40 = vld [vmem:[#allocation7 + $0x1b4] ss:$8 sps:$4 sm:$0xff]   ;;  %v9016_v51 = vld [vmem:[#allocation7 + $0xa0] ss:$8 sps:$4 sm:$0xff]   ;;  %v9019_v38 = vld [vmem:[#allocation7 + $0x1b0] ss:$8 sps:$4 sm:$0xff]  }
 0x5ab   : > { %v3969_v61 = vpack.c.bf16 %v3963_v37, %v3962_v15  ;;  %v3970_v42 = vpack.c.bf16 %v3967_v50, %v3966_v10  ;;  %v9024_v39 = vld [vmem:[#allocation7 + $0x94] ss:$8 sps:$4 sm:$0xff]   ;;  %v9027_v15 = vld [vmem:[#allocation7 + $0x1a4] ss:$8 sps:$4 sm:$0xff]   ;;  %v9022_v37 = vld [vmem:[#allocation7 + $0x90] ss:$8 sps:$4 sm:$0xff]  }
 0x5ac   : > { %v9025_v10 = vld [vmem:[#allocation7 + $0x1a0] ss:$8 sps:$4 sm:$0xff]   ;;  %v9030_v50 = vld [vmem:[#allocation7 + $0x84] ss:$8 sps:$4 sm:$0xff]  }
 0x5ad   : > { %4291 = vmatprep.mubr.bf16.mxu0 %v3969_v61  ;;  %4335 = vmatmul.mubr.bf16.vlgmr.msra.gmra.mxu1 %v3970_v42  ;;  %v9028_v61 = vld [vmem:[#allocation7 + $0x80] ss:$8 sps:$4 sm:$0xff]   ;;  %v9031_v42 = vld [vmem:[#allocation7 + $0x190] ss:$8 sps:$4 sm:$0xff]  }
 0x5ae   : > { %4292 = vmatmul.mubr.bf16.vlgmr.msra.gmra.mxu0 %v3968_v21  ;;  %4982 = vmatpush1.bf16.msra.mxu1 %v8941_v41  ;;  %v9033_v41 = vld [vmem:[#allocation7 + $0x194] ss:$8 sps:$4 sm:$0xff]   ;;  %v9034_v21 = vld [vmem:[#allocation7 + $0x180] ss:$8 sps:$4 sm:$0xff]  }
 0x5af   : > { %4983 = vmatprep.subr.bf16.mxu1 %v8946_v43  ;;  %5025 = vmatpush1.bf16.msra.mxu0 %v8947_v44  ;;  %v9036_v43 = vld [vmem:[#allocation7 + $0x184] ss:$8 sps:$4 sm:$0xff]   ;;  %v9039_v44 = vld [vmem:[#allocation7 + $0x274] ss:$8 sps:$4 sm:$0xff]  }
 0x5b0   : > { %5026 = vmatprep.subr.bf16.mxu0 %v8955_v47 }
 0x5b2   : > { %4984 = vmatpush1.bf16.msra.mxu1 %v8944_v46 }
 0x5b3   : > { %4985 = vmatprep.subr.bf16.mxu1 %v8952_v36  ;;  %5027 = vmatpush1.bf16.msra.mxu0 %v8953_v49  ;;  %v7744_v36 = vld [vmem:[%s10595_s8 + $0x4] ss:$8 sm:$0x3] }
 0x5b4   : > { %5028 = vmatprep.subr.bf16.mxu0 %v8961_v52 }
 0x5b6   : > { %4986 = vmatpush1.bf16.msra.mxu1 %v8950_v53 }
 0x5b7   : > { %4987 = vmatprep.subr.bf16.mxu1 %v8958_v54  ;;  %5029 = vmatpush1.bf16.msra.mxu0 %v8959_v55  ;;  %v7745_v55 = vld [vmem:[%s10595_s8 + $0x5] ss:$8 sm:$0x3] }
 0x5b8   : > { %5030 = vmatprep.subr.bf16.mxu0 %v8967_v57  ;;  %v4357_v57 = vrot.slane %v7744_v36, %v10068_v27 }
 0x5ba   : > { %4988 = vmatpush1.bf16.msra.mxu1 %v8956_v59 }
 0x5bb   : > { %4989 = vmatprep.subr.bf16.mxu1 %v8964_v60  ;;  %5031 = vmatpush1.bf16.msra.mxu0 %v8965_v62  ;;  %v4361_v60 = vrot.slane %v7744_v36, %v10065_v24  ;;  %v9063_v36 = vld [vmem:[#allocation7 + $0x2f4] ss:$8 sps:$4 sm:$0xff]  }
 0x5bc   : > { %5032 = vmatprep.subr.bf16.mxu0 %v8973_v63 }
 0x5be   : > { %4990 = vmatpush1.bf16.msra.mxu1 %v8962_v3 }
 0x5bf   : > { %4991 = vmatprep.subr.bf16.mxu1 %v8970_v5  ;;  %5033 = vmatpush1.bf16.msra.mxu0 %v8971_v7 }
 0x5c0   : > { %5034 = vmatprep.subr.bf16.mxu0 %v8979_v8  ;;  %v4372_v8 = vrot.slane %v7745_v55, %v10068_v27 }
 0x5c2   : > { %4992 = vmatpush1.bf16.msra.mxu1 %v8968_v11  ;;  %v4376_v11 = vrot.slane %v7745_v55, %v10065_v24  ;;  %v9067_v55 = vld [vmem:[#allocation7 + $0x2d0] ss:$8 sps:$4 sm:$0xff]  }
 0x5c3   : > { %4993 = vmatprep.subr.bf16.mxu1 %v8976_v13  ;;  %5035 = vmatpush1.bf16.msra.mxu0 %v8977_v12 }
 0x5c4   : > { %5036 = vmatprep.subr.bf16.mxu0 %v8985_v4 }
 0x5c6   : > { %4994 = vmatpush1.bf16.msra.mxu1 %v8974_v48 }
 0x5c7   : > { %4995 = vmatprep.subr.bf16.mxu1 %v8982_v56  ;;  %5037 = vmatpush1.bf16.msra.mxu0 %v8983_v29 }
 0x5c8   : > { %5038 = vmatprep.subr.bf16.mxu0 %v8991_v1 }
 0x5ca   : > { %4996 = vmatpush1.bf16.msra.mxu1 %v8980_v14 }
 0x5cb   : > { %4997 = vmatprep.subr.bf16.mxu1 %v8988_v16  ;;  %5039 = vmatpush1.bf16.msra.mxu0 %v8989_v6 }
 0x5cc   : > { %5040 = vmatprep.subr.bf16.mxu0 %v8997_v20 }
 0x5ce   : > { %4998 = vmatpush2.bf16.msra.mxu1 %v8986_v2 }
 0x5cf   : > { %4999 = vmatprep.subr.bf16.mxu1 %v8994_v34  ;;  %5041 = vmatpush2.bf16.msra.mxu0 %v8995_v17 }
 0x5d0   : > { %5042 = vmatprep.subr.bf16.mxu0 %v9003_v18 }
 0x5d2   : > { %5000 = vmatpush2.bf16.msra.mxu1 %v8992_v19 }
 0x5d3   : > { %5001 = vmatprep.subr.bf16.mxu1 %v9000_v58  ;;  %5043 = vmatpush2.bf16.msra.mxu0 %v9001_v23  ;;  %v9037_v58 = vld [vmem:[#allocation7 + $0x270] ss:$8 sps:$4 sm:$0xff]  }
 0x5d4   : > { %5044 = vmatprep.subr.bf16.mxu0 %v9009_v25 }
 0x5d6   : > { %5002 = vmatpush2.bf16.msra.mxu1 %v8998_v26 }
 0x5d7   : > { %5003 = vmatprep.subr.bf16.mxu1 %v9006_v35  ;;  %5045 = vmatpush2.bf16.msra.mxu0 %v9007_v28 }
 0x5d8   : > { %5046 = vmatprep.subr.bf16.mxu0 %v9015_v9 }
 0x5da   : > { %5004 = vmatpush2.bf16.msra.mxu1 %v9004_v30 }
 0x5db   : > { %5005 = vmatprep.subr.bf16.mxu1 %v9012_v22  ;;  %5047 = vmatpush2.bf16.msra.mxu0 %v9013_v32 }
 0x5dc   : > { %5048 = vmatprep.subr.bf16.mxu0 %v9021_v40 }
 0x5de   : > { %5006 = vmatpush2.bf16.msra.mxu1 %v9010_v45 }
 0x5df   : > { %5007 = vmatprep.subr.bf16.mxu1 %v9018_v33  ;;  %5049 = vmatpush2.bf16.msra.mxu0 %v9019_v38  ;;  %v9042_v33 = vld [vmem:[#allocation7 + $0x264] ss:$8 sps:$4 sm:$0xff]  }
 0x5e0   : > { %5050 = vmatprep.subr.bf16.mxu0 %v9027_v15  ;;  %v9045_v15 = vld [vmem:[#allocation7 + $0x254] ss:$8 sps:$4 sm:$0xff]  }
 0x5e2   : > { %5008 = vmatpush2.bf16.msra.mxu1 %v9016_v51 }
 0x5e3   : > { %5009 = vmatprep.subr.bf16.mxu1 %v9024_v39  ;;  %5051 = vmatpush2.bf16.msra.mxu0 %v9025_v10  ;;  %v9040_v39 = vld [vmem:[#allocation7 + $0x260] ss:$8 sps:$4 sm:$0xff]   ;;  %v9048_v10 = vld [vmem:[#allocation7 + $0x244] ss:$8 sps:$4 sm:$0xff]  }
 0x5e4   : > { %5052 = vmatprep.subr.bf16.mxu0 %v9033_v41  ;;  %v9051_v41 = vld [vmem:[#allocation7 + $0x234] ss:$8 sps:$4 sm:$0xff]  }
 0x5e6   : > { %5010 = vmatpush2.bf16.msra.mxu1 %v9022_v37  ;;  %v9043_v37 = vld [vmem:[#allocation7 + $0x250] ss:$8 sps:$4 sm:$0xff]  }
 0x5e7   : > { %5011 = vmatprep.subr.bf16.mxu1 %v9030_v50  ;;  %5053 = vmatpush2.bf16.msra.mxu0 %v9031_v42  ;;  %v9046_v50 = vld [vmem:[#allocation7 + $0x240] ss:$8 sps:$4 sm:$0xff]   ;;  %v9054_v42 = vld [vmem:[#allocation7 + $0x224] ss:$8 sps:$4 sm:$0xff]  }
 0x5e8   : > { %5054 = vmatprep.subr.bf16.mxu0 %v9036_v43  ;;  %v9052_v43 = vld [vmem:[#allocation7 + $0x220] ss:$8 sps:$4 sm:$0xff]  }
 0x5ea   : > { %5012 = vmatpush2.bf16.msra.mxu1 %v9028_v61  ;;  %v9049_v61 = vld [vmem:[#allocation7 + $0x230] ss:$8 sps:$4 sm:$0xff]  }
 0x5eb   : > { %5067 = vmatprep.subr.bf16.mxu1 %v9039_v44  ;;  %5055 = vmatpush2.bf16.msra.mxu0 %v9034_v21  ;;  %v9057_v44 = vld [vmem:[#allocation7 + $0x214] ss:$8 sps:$4 sm:$0xff]   ;;  %v9055_v21 = vld [vmem:[#allocation7 + $0x210] ss:$8 sps:$4 sm:$0xff]  }
 0x66d   : > { %v4336_v47 = vpop.f32.mrf.mxu1 }
 0x66e   : > { %v4293_v46 = vpop.f32.mrf.mxu0 }
 0x66f   : > { %v4337_v49 = vadd.f32 %v4336_v47, %v4293_v46  ;;  %v4338_v52 = vpop.f32.mrf.mxu1  ;;  %v9060_v47 = vld [vmem:[#allocation7 + $0x204] ss:$8 sps:$4 sm:$0xff]   ;;  %v9058_v46 = vld [vmem:[#allocation7 + $0x200] ss:$8 sps:$4 sm:$0xff]  }
 0x670   : > { %v4295_v53 = vpop.f32.mrf.mxu0 }
 0x671   : > { %v4345_v54 = vmax.f32 %v4337_v49, 0.0  ;;  %v4339_v59 = vadd.f32 %v4338_v52, %v4295_v53  ;;  %v4340_v62 = vpop.f32.mrf.mxu1  ;;  %v9061_v49 = vld [vmem:[#allocation7 + $0x2f0] ss:$8 sps:$4 sm:$0xff]   ;;  %v9066_v52 = vld [vmem:[#allocation7 + $0x2e4] ss:$8 sps:$4 sm:$0xff]  }
 0x672   : > { %v4297_v63 = vpop.f32.mrf.mxu0  ;;  %v9064_v53 = vld [vmem:[#allocation7 + $0x2e0] ss:$8 sps:$4 sm:$0xff]  }
 0x673   : > { %v4346_v3 = vmax.f32 %v4339_v59, 0.0  ;;  %v4341_v5 = vadd.f32 %v4340_v62, %v4297_v63  ;;  %v4342_v7 = vpop.f32.mrf.mxu1  ;;  %v4364_v12 = vmul.f32 %v4357_v57, %v4345_v54  ;;  %v9069_v54 = vld [vmem:[#allocation7 + $0x2d4] ss:$8 sps:$4 sm:$0xff]   ;;  %v9070_v59 = vld [vmem:[#allocation7 + $0x2c0] ss:$8 sps:$4 sm:$0xff]  }
 0x674   : > { %v4299_v13 = vpop.f32.mrf.mxu0  ;;  %v9073_v62 = vld [vmem:[#allocation7 + $0x2b0] ss:$8 sps:$4 sm:$0xff]   ;;  %v9078_v63 = vld [vmem:[#allocation7 + $0x2a4] ss:$8 sps:$4 sm:$0xff]  }
 0x675   : > { %v4365_v4 = vmul.f32 %v4361_v60, %v4346_v3  ;;  %v4347_v48 = vmax.f32 %v4341_v5, 0.0  ;;  %v4343_v56 = vadd.f32 %v4342_v7, %v4299_v13  ;;  %v10318_v14 = vadd.f32 %v4372_v8, %v4364_v12  ;;  %v9076_v3 = vld [vmem:[#allocation7 + $0x2a0] ss:$8 sps:$4 sm:$0xff]   ;;  %v9081_v5 = vld [vmem:[#allocation7 + $0x294] ss:$8 sps:$4 sm:$0xff]  }
 0x676   : > { %v9079_v7 = vld [vmem:[#allocation7 + $0x290] ss:$8 sps:$4 sm:$0xff]   ;;  %v9082_v12 = vld [vmem:[#allocation7 + $0x280] ss:$8 sps:$4 sm:$0xff]  }
 0x677   : > { %v4366_v29 = vmul.f32 %v4357_v57, %v4347_v48  ;;  %v4348_v1 = vmax.f32 %v4343_v56, 0.0  ;;  %v4380_v16 = vadd.f32 %v4376_v11, %v4365_v4  ;;  %v4383_v17 = vrot.slane %v10318_v14, 1  ;;  %v9072_v57 = vld [vmem:[#allocation7 + $0x2c4] ss:$8 sps:$4 sm:$0xff]  }
 0x678   : > { %v4391_v13 = vrot.slane %v10318_v14, 2 }
 0x679   : > { %v10320_v6 = vadd.f32 %v4372_v8, %v4366_v29  ;;  %v4367_v20 = vmul.f32 %v4361_v60, %v4348_v1  ;;  %v4384_v18 = vrot.slane %v4380_v16, 1  ;;  %v4392_v25 = vrot.slane %v4380_v16, 2  ;;  %v9075_v60 = vld [vmem:[#allocation7 + $0x2b4] ss:$8 sps:$4 sm:$0xff]   ;;  %v9084_v8 = vld [vmem:[#allocation7 + $0x284] ss:$8 sps:$4 sm:$0xff]  }
 0x67a   : > { %v9085_v29 = vld [vmem:[#allocation8 + $0x70] ss:$8 sps:$4 sm:$0xff]   ;;  %v9087_v1 = vld [vmem:[#allocation8 + $0x74] ss:$8 sps:$4 sm:$0xff]  }
 0x67b   : > { %v4385_v2 = vrot.slane %v10320_v6, 1  ;;  %v4382_v34 = vadd.f32 %v4376_v11, %v4367_v20  ;;  %v4399_v35 = vpack.c.bf16 %v10320_v6, %v10318_v14  ;;  %v4393_v11 = vrot.slane %v10320_v6, 2  ;;  %v9091_v20 = vld [vmem:[#allocation8 + $0x170] ss:$8 sps:$4 sm:$0xff]   ;;  %5746 = vmatprep.subr.bf16.mxu0 %v9087_v1  ;;  %v9088_v14 = vld [vmem:[#allocation8 + $0x60] ss:$8 sps:$4 sm:$0xff]  }
 0x67c   : > { %v9099_v6 = vld [vmem:[#allocation8 + $0x164] ss:$8 sps:$4 sm:$0xff]   ;;  %v9175_v1 = vld [vmem:[#allocation8 + $0x190] ss:$8 sps:$4 sm:$0xff]  }
 0x67d   : > { %v4400_v19 = vpack.c.bf16 %v4382_v34, %v4380_v16  ;;  %v4386_v23 = vrot.slane %v4382_v34, 1  ;;  %v4394_v26 = vrot.slane %v4382_v34, 2  ;;  %v4387_v28 = vsel %vm605_vm0, %v4383_v17, %v4385_v2  ;;  %v9090_v16 = vld [vmem:[#allocation8 + $0x64] ss:$8 sps:$4 sm:$0xff]   ;;  %v9096_v34 = vld [vmem:[#allocation8 + $0x54] ss:$8 sps:$4 sm:$0xff]  }
 0x67e   : > { %v4389_v30 = vsel %vm605_vm0, %v4385_v2, %v4383_v17  ;;  %v4395_v4 = vsel %vm614_vm1, %v4391_v13, %v4393_v11  ;;  %v4397_v48 = vsel %vm614_vm1, %v4393_v11, %v4391_v13  ;;  %v9093_v2 = vld [vmem:[#allocation8 + $0x174] ss:$8 sps:$4 sm:$0xff]   ;;  %v9097_v17 = vld [vmem:[#allocation8 + $0x160] ss:$8 sps:$4 sm:$0xff]   ;;  %v9171_v13 = vld [vmem:[#allocation8 + $0x1a4] ss:$8 sps:$4 sm:$0xff]  }
 0x67f   : > { %5013 = vmatprep.mubr.bf16.mxu1 %v4400_v19  ;;  %v4388_v22 = vsel %vm605_vm0, %v4384_v18, %v4386_v23  ;;  %v4390_v9 = vsel %vm605_vm0, %v4386_v23, %v4384_v18  ;;  %v4396_v45 = vsel %vm614_vm1, %v4392_v25, %v4394_v26  ;;  %v4398_v32 = vsel %vm614_vm1, %v4394_v26, %v4392_v25  ;;  %v9105_v18 = vld [vmem:[#allocation8 + $0x154] ss:$8 sps:$4 sm:$0xff]   ;;  %v9094_v19 = vld [vmem:[#allocation8 + $0x50] ss:$8 sps:$4 sm:$0xff]   ;;  %v9111_v25 = vld [vmem:[#allocation8 + $0x144] ss:$8 sps:$4 sm:$0xff]  }
 0x680   : > { %5014 = vmatmul.mubr.bf16.vlgmr.msra.gmra.mxu1 %v4399_v35  ;;  %v4402_v40 = vpack.c.bf16 %v4390_v9, %v4388_v22  ;;  %v4404_v51 = vpack.c.bf16 %v4398_v32, %v4396_v45  ;;  %v4401_v38 = vpack.c.bf16 %v4389_v30, %v4387_v28  ;;  %v4403_v56 = vpack.c.bf16 %v4397_v48, %v4395_v4  ;;  %v9103_v23 = vld [vmem:[#allocation8 + $0x150] ss:$8 sps:$4 sm:$0xff]   ;;  %v9100_v26 = vld [vmem:[#allocation8 + $0x40] ss:$8 sps:$4 sm:$0xff]   ;;  %v9108_v35 = vld [vmem:[#allocation8 + $0x34] ss:$8 sps:$4 sm:$0xff]  }
 0x681   : > { %5068 = vmatpush1.bf16.msra.mxu1 %v9037_v58  ;;  %v9102_v58 = vld [vmem:[#allocation8 + $0x44] ss:$8 sps:$4 sm:$0xff]   ;;  %v9109_v28 = vld [vmem:[#allocation8 + $0x140] ss:$8 sps:$4 sm:$0xff]   ;;  %v9117_v30 = vld [vmem:[#allocation8 + $0x134] ss:$8 sps:$4 sm:$0xff]  }
 0x682   : > { %5056 = vmatprep.mubr.bf16.mxu0 %v4402_v40  ;;  %5099 = vmatprep.mubr.bf16.mxu1 %v4404_v51  ;;  %v9106_v22 = vld [vmem:[#allocation8 + $0x30] ss:$8 sps:$4 sm:$0xff]   ;;  %v9114_v9 = vld [vmem:[#allocation8 + $0x24] ss:$8 sps:$4 sm:$0xff]   ;;  %v9120_v40 = vld [vmem:[#allocation8 + $0x14] ss:$8 sps:$4 sm:$0xff]  }
 0x683   : > { %5057 = vmatmul.mubr.bf16.vlgmr.msra.gmra.mxu0 %v4401_v38  ;;  %5069 = vmatprep.subr.bf16.mxu1 %v9042_v33  ;;  %v9115_v45 = vld [vmem:[#allocation8 + $0x130] ss:$8 sps:$4 sm:$0xff]   ;;  %v9123_v32 = vld [vmem:[#allocation8 + $0x124] ss:$8 sps:$4 sm:$0xff]   ;;  %v9112_v33 = vld [vmem:[#allocation8 + $0x20] ss:$8 sps:$4 sm:$0xff]  }
 0x684   : > { %5747 = vmatpush1.bf16.msra.mxu0 %v9085_v29  ;;  %v9121_v51 = vld [vmem:[#allocation8 + $0x120] ss:$8 sps:$4 sm:$0xff]   ;;  %v9129_v38 = vld [vmem:[#allocation8 + $0x114] ss:$8 sps:$4 sm:$0xff]   ;;  %v9174_v48 = vld [vmem:[#allocation8 + $0x84] ss:$8 sps:$4 sm:$0xff]  }
 0x685   : > { %5070 = vmatpush1.bf16.msra.mxu1 %v9040_v39  ;;  %5748 = vmatprep.subr.bf16.mxu0 %v9090_v16  ;;  %v9118_v39 = vld [vmem:[#allocation8 + $0x10] ss:$8 sps:$4 sm:$0xff]   ;;  %v9168_v11 = vld [vmem:[#allocation8 + $0x94] ss:$8 sps:$4 sm:$0xff]   ;;  %v9169_v4 = vld [vmem:[#allocation8 + $0x1a0] ss:$8 sps:$4 sm:$0xff]  }
 0x686   : > { %5071 = vmatprep.subr.bf16.mxu1 %v9045_v15  ;;  %v9126_v15 = vld [vmem:[#allocation8 + $0x4] ss:$8 sps:$4 sm:$0xff]   ;;  %v9172_v29 = vld [vmem:[#allocation8 + $0x80] ss:$8 sps:$4 sm:$0xff]  }
 0x687   : > { %v9180_v16 = vld [vmem:[#allocation8 + $0x184] ss:$8 sps:$4 sm:$0xff]  }
 0x688   : > { %5749 = vmatpush1.bf16.msra.mxu0 %v9088_v14 }
 0x689   : > { %5072 = vmatpush1.bf16.msra.mxu1 %v9043_v37  ;;  %5750 = vmatprep.subr.bf16.mxu0 %v9096_v34  ;;  %v9127_v37 = vld [vmem:[#allocation8 + $0x110] ss:$8 sps:$4 sm:$0xff]  }
 0x68a   : > { %5073 = vmatprep.subr.bf16.mxu1 %v9048_v10  ;;  %v9135_v10 = vld [vmem:[#allocation8 + $0x104] ss:$8 sps:$4 sm:$0xff]  }
 0x68c   : > { %5751 = vmatpush1.bf16.msra.mxu0 %v9094_v19 }
 0x68d   : > { %5074 = vmatpush1.bf16.msra.mxu1 %v9046_v50  ;;  %5752 = vmatprep.subr.bf16.mxu0 %v9102_v58  ;;  %v9124_v50 = vld [vmem:[#allocation8] ss:$8 sps:$4 sm:$0xff]  }
 0x68e   : > { %5075 = vmatprep.subr.bf16.mxu1 %v9051_v41  ;;  %v9132_v41 = vld [vmem:[#allocation8 + $0xf4] ss:$8 sps:$4 sm:$0xff]  }
 0x690   : > { %5753 = vmatpush1.bf16.msra.mxu0 %v9100_v26 }
 0x691   : > { %5076 = vmatpush1.bf16.msra.mxu1 %v9049_v61  ;;  %5754 = vmatprep.subr.bf16.mxu0 %v9108_v35  ;;  %v9133_v61 = vld [vmem:[#allocation8 + $0x100] ss:$8 sps:$4 sm:$0xff]  }
 0x692   : > { %5077 = vmatprep.subr.bf16.mxu1 %v9054_v42  ;;  %v9141_v42 = vld [vmem:[#allocation8 + $0x1f4] ss:$8 sps:$4 sm:$0xff]  }
 0x694   : > { %5755 = vmatpush1.bf16.msra.mxu0 %v9106_v22 }
 0x695   : > { %5078 = vmatpush1.bf16.msra.mxu1 %v9052_v43  ;;  %5756 = vmatprep.subr.bf16.mxu0 %v9114_v9  ;;  %v9130_v43 = vld [vmem:[#allocation8 + $0xf0] ss:$8 sps:$4 sm:$0xff]  }
 0x696   : > { %5079 = vmatprep.subr.bf16.mxu1 %v9057_v44  ;;  %v9138_v44 = vld [vmem:[#allocation8 + $0xe4] ss:$8 sps:$4 sm:$0xff]  }
 0x698   : > { %5757 = vmatpush1.bf16.msra.mxu0 %v9112_v33  ;;  %v7843_v33 = vld [vmem:[%s10595_s8 + $0x7] ss:$8 sm:$0x3] }
 0x699   : > { %5080 = vmatpush1.bf16.msra.mxu1 %v9055_v21  ;;  %5758 = vmatprep.subr.bf16.mxu0 %v9120_v40  ;;  %v9139_v21 = vld [vmem:[#allocation8 + $0x1f0] ss:$8 sps:$4 sm:$0xff]  }
 0x69a   : > { %5081 = vmatprep.subr.bf16.mxu1 %v9060_v47  ;;  %v9147_v47 = vld [vmem:[#allocation8 + $0x1e4] ss:$8 sps:$4 sm:$0xff]  }
 0x69c   : > { %5759 = vmatpush1.bf16.msra.mxu0 %v9118_v39 }
 0x69d   : > { %5082 = vmatpush1.bf16.msra.mxu1 %v9058_v46  ;;  %5760 = vmatprep.subr.bf16.mxu0 %v9126_v15  ;;  %v9136_v46 = vld [vmem:[#allocation8 + $0xe0] ss:$8 sps:$4 sm:$0xff]  }
 0x69e   : > { %5083 = vmatprep.subr.bf16.mxu1 %v9063_v36  ;;  %v9144_v36 = vld [vmem:[#allocation8 + $0xd4] ss:$8 sps:$4 sm:$0xff]  }
 0x6a0   : > { %5761 = vmatpush1.bf16.msra.mxu0 %v9124_v50  ;;  %v5141_v50 = vrot.slane %v7843_v33, %v10065_v24 }
 0x6a1   : > { %5084 = vmatpush2.bf16.msra.mxu1 %v9061_v49  ;;  %5762 = vmatprep.subr.bf16.mxu0 %v9132_v41  ;;  %v9145_v49 = vld [vmem:[#allocation8 + $0x1e0] ss:$8 sps:$4 sm:$0xff]  }
 0x6a2   : > { %5085 = vmatprep.subr.bf16.mxu1 %v9066_v52  ;;  %v9153_v52 = vld [vmem:[#allocation8 + $0x1d4] ss:$8 sps:$4 sm:$0xff]  }
 0x6a4   : > { %5763 = vmatpush2.bf16.msra.mxu0 %v9130_v43 }
 0x6a5   : > { %5086 = vmatpush2.bf16.msra.mxu1 %v9064_v53  ;;  %5764 = vmatprep.subr.bf16.mxu0 %v9138_v44  ;;  %v9142_v53 = vld [vmem:[#allocation8 + $0xd0] ss:$8 sps:$4 sm:$0xff]  }
 0x6a6   : > { %5087 = vmatprep.subr.bf16.mxu1 %v9069_v54  ;;  %v9150_v54 = vld [vmem:[#allocation8 + $0xc4] ss:$8 sps:$4 sm:$0xff]  }
 0x6a8   : > { %5765 = vmatpush2.bf16.msra.mxu0 %v9136_v46 }
 0x6a9   : > { %5088 = vmatpush2.bf16.msra.mxu1 %v9067_v55  ;;  %5766 = vmatprep.subr.bf16.mxu0 %v9144_v36  ;;  %v9151_v55 = vld [vmem:[#allocation8 + $0x1d0] ss:$8 sps:$4 sm:$0xff]  }
 0x6aa   : > { %5089 = vmatprep.subr.bf16.mxu1 %v9072_v57  ;;  %v9148_v57 = vld [vmem:[#allocation8 + $0xc0] ss:$8 sps:$4 sm:$0xff]  }
 0x6ac   : > { %5767 = vmatpush2.bf16.msra.mxu0 %v9142_v53 }
 0x6ad   : > { %5090 = vmatpush2.bf16.msra.mxu1 %v9070_v59  ;;  %5768 = vmatprep.subr.bf16.mxu0 %v9150_v54  ;;  %v9156_v59 = vld [vmem:[#allocation8 + $0xb4] ss:$8 sps:$4 sm:$0xff]  }
 0x6ae   : > { %5091 = vmatprep.subr.bf16.mxu1 %v9075_v60  ;;  %v9159_v60 = vld [vmem:[#allocation8 + $0x1c4] ss:$8 sps:$4 sm:$0xff]  }
 0x6b0   : > { %5769 = vmatpush2.bf16.msra.mxu0 %v9148_v57 }
 0x6b1   : > { %5092 = vmatpush2.bf16.msra.mxu1 %v9073_v62  ;;  %v9154_v62 = vld [vmem:[#allocation8 + $0xb0] ss:$8 sps:$4 sm:$0xff]   ;;  %5770 = vmatprep.subr.bf16.mxu0 %v9156_v59 }
 0x6b2   : > { %5093 = vmatprep.subr.bf16.mxu1 %v9078_v63  ;;  %v9157_v63 = vld [vmem:[#allocation8 + $0x1c0] ss:$8 sps:$4 sm:$0xff]  }
 0x6b4   : > { %5771 = vmatpush2.bf16.msra.mxu0 %v9154_v62 }
 0x6b5   : > { %5094 = vmatpush2.bf16.msra.mxu1 %v9076_v3  ;;  %v9162_v3 = vld [vmem:[#allocation8 + $0xa4] ss:$8 sps:$4 sm:$0xff]  }
 0x6b6   : > { %5095 = vmatprep.subr.bf16.mxu1 %v9081_v5  ;;  %v9160_v5 = vld [vmem:[#allocation8 + $0xa0] ss:$8 sps:$4 sm:$0xff]   ;;  %5772 = vmatprep.subr.bf16.mxu0 %v9162_v3 }
 0x6b8   : > { %5773 = vmatpush2.bf16.msra.mxu0 %v9160_v5 }
 0x6b9   : > { %5096 = vmatpush2.bf16.msra.mxu1 %v9079_v7  ;;  %v9163_v7 = vld [vmem:[#allocation8 + $0x1b0] ss:$8 sps:$4 sm:$0xff]   ;;  %5774 = vmatprep.subr.bf16.mxu0 %v9168_v11 }
 0x6ba   : > { %5097 = vmatprep.subr.bf16.mxu1 %v9084_v8  ;;  %v9165_v8 = vld [vmem:[#allocation8 + $0x1b4] ss:$8 sps:$4 sm:$0xff]  }
 0x6bd   : > { %5098 = vmatpush2.bf16.msra.mxu1 %v9082_v12  ;;  %v9166_v12 = vld [vmem:[#allocation8 + $0x90] ss:$8 sps:$4 sm:$0xff]  }
 0x6be   : > { %5789 = vmatprep.subr.bf16.mxu1 %v9093_v2  ;;  %5775 = vmatpush2.bf16.msra.mxu0 %v9166_v12  ;;  %v9178_v2 = vld [vmem:[#allocation8 + $0x180] ss:$8 sps:$4 sm:$0xff]  }
 0x6bf   : > { %5776 = vmatprep.subr.bf16.mxu0 %v9174_v48  ;;  %v9186_v48 = vld [vmem:[#allocation8 + $0x264] ss:$8 sps:$4 sm:$0xff]  }
 0x6c0   : > { %5100 = vmatmul.mubr.bf16.vlgmr.msra.gmra.mxu1 %v4403_v56  ;;  %v9177_v56 = vld [vmem:[#allocation8 + $0x194] ss:$8 sps:$4 sm:$0xff]  }
 0x6c1   : > { %5790 = vmatpush1.bf16.msra.mxu1 %v9091_v20  ;;  %v9183_v20 = vld [vmem:[#allocation8 + $0x274] ss:$8 sps:$4 sm:$0xff]  }
 0x6c2   : > { %5791 = vmatprep.subr.bf16.mxu1 %v9099_v6  ;;  %5777 = vmatpush2.bf16.msra.mxu0 %v9172_v29 }
 0x6c3   : > { %5832 = vmatprep.subr.bf16.mxu0 %v9183_v20  ;;  %v9189_v20 = vld [vmem:[#allocation8 + $0x254] ss:$8 sps:$4 sm:$0xff]  }
 0x6c5   : > { %5792 = vmatpush1.bf16.msra.mxu1 %v9097_v17 }
 0x6c6   : > { %5793 = vmatprep.subr.bf16.mxu1 %v9105_v18 }
 0x6c9   : > { %5794 = vmatpush1.bf16.msra.mxu1 %v9103_v23 }
 0x6ca   : > { %5795 = vmatprep.subr.bf16.mxu1 %v9111_v25  ;;  %v7842_v25 = vld [vmem:[%s10595_s8 + $0x6] ss:$8 sm:$0x3] }
 0x6cb   : > { %v5122_v22 = vrot.slane %v7842_v25, %v10068_v27 }
 0x6cd   : > { %5796 = vmatpush1.bf16.msra.mxu1 %v9109_v28 }
 0x6ce   : > { %5797 = vmatprep.subr.bf16.mxu1 %v9117_v30 }
 0x6d1   : > { %5798 = vmatpush1.bf16.msra.mxu1 %v9115_v45 }
 0x6d2   : > { %5799 = vmatprep.subr.bf16.mxu1 %v9123_v32 }
 0x6d5   : > { %5800 = vmatpush1.bf16.msra.mxu1 %v9121_v51  ;;  %v5126_v51 = vrot.slane %v7842_v25, %v10065_v24  ;;  %v9204_v25 = vld [vmem:[#allocation8 + $0x204] ss:$8 sps:$4 sm:$0xff]  }
 0x6d6   : > { %5801 = vmatprep.subr.bf16.mxu1 %v9129_v38 }
 0x6d9   : > { %5802 = vmatpush1.bf16.msra.mxu1 %v9127_v37 }
 0x6da   : > { %5803 = vmatprep.subr.bf16.mxu1 %v9135_v10  ;;  %v5137_v10 = vrot.slane %v7843_v33, %v10068_v27  ;;  %v9214_v33 = vld [vmem:[#allocation8 + $0x2c0] ss:$8 sps:$4 sm:$0xff]  }
 0x6dd   : > { %5804 = vmatpush1.bf16.msra.mxu1 %v9133_v61 }
 0x6de   : > { %5805 = vmatprep.subr.bf16.mxu1 %v9141_v42 }
 0x6e1   : > { %5806 = vmatpush2.bf16.msra.mxu1 %v9139_v21 }
 0x6e2   : > { %5807 = vmatprep.subr.bf16.mxu1 %v9147_v47 }
 0x6e5   : > { %5808 = vmatpush2.bf16.msra.mxu1 %v9145_v49 }
 0x6e6   : > { %5809 = vmatprep.subr.bf16.mxu1 %v9153_v52 }
 0x6e9   : > { %5810 = vmatpush2.bf16.msra.mxu1 %v9151_v55 }
 0x6ea   : > { %5811 = vmatprep.subr.bf16.mxu1 %v9159_v60  ;;  %v9181_v60 = vld [vmem:[#allocation8 + $0x270] ss:$8 sps:$4 sm:$0xff]  }
 0x6ed   : > { %5812 = vmatpush2.bf16.msra.mxu1 %v9157_v63 }
 0x6ee   : > { %5813 = vmatprep.subr.bf16.mxu1 %v9165_v8 }
 0x6f1   : > { %5814 = vmatpush2.bf16.msra.mxu1 %v9163_v7 }
 0x6f2   : > { %5815 = vmatprep.subr.bf16.mxu1 %v9171_v13 }
 0x6f5   : > { %5816 = vmatpush2.bf16.msra.mxu1 %v9169_v4 }
 0x6f6   : > { %5817 = vmatprep.subr.bf16.mxu1 %v9177_v56 }
 0x6f9   : > { %5818 = vmatpush2.bf16.msra.mxu1 %v9175_v1 }
 0x6fa   : > { %5819 = vmatprep.subr.bf16.mxu1 %v9180_v16  ;;  %v9184_v16 = vld [vmem:[#allocation8 + $0x260] ss:$8 sps:$4 sm:$0xff]  }
 0x6fd   : > { %5820 = vmatpush2.bf16.msra.mxu1 %v9178_v2  ;;  %v9187_v2 = vld [vmem:[#allocation8 + $0x250] ss:$8 sps:$4 sm:$0xff]  }
 0x740   : > { %v5015_v14 = vpop.f32.mrf.mxu1 }
 0x742   : > { %v5017_v6 = vpop.f32.mrf.mxu1 }
 0x743   : > { %v5058_v34 = vpop.f32.mrf.mxu0 }
 0x744   : > { %v5019_v17 = vpop.f32.mrf.mxu1  ;;  %v5059_v23 = vadd.f32 %v5058_v34, %v5015_v14  ;;  %v9192_v14 = vld [vmem:[#allocation8 + $0x244] ss:$8 sps:$4 sm:$0xff]   ;;  %v9195_v34 = vld [vmem:[#allocation8 + $0x234] ss:$8 sps:$4 sm:$0xff]  }
 0x745   : > { %v5060_v18 = vpop.f32.mrf.mxu0 }
 0x746   : > { %v5021_v19 = vpop.f32.mrf.mxu1  ;;  %v5061_v35 = vadd.f32 %v5060_v18, %v5017_v6  ;;  %v9190_v6 = vld [vmem:[#allocation8 + $0x240] ss:$8 sps:$4 sm:$0xff]   ;;  %v9198_v18 = vld [vmem:[#allocation8 + $0x224] ss:$8 sps:$4 sm:$0xff]  }
 0x747   : > { %v5062_v58 = vpop.f32.mrf.mxu0 }
 0x748   : > { %v5063_v45 = vadd.f32 %v5062_v58, %v5019_v17  ;;  %v9193_v17 = vld [vmem:[#allocation8 + $0x230] ss:$8 sps:$4 sm:$0xff]   ;;  %v9201_v58 = vld [vmem:[#allocation8 + $0x214] ss:$8 sps:$4 sm:$0xff]  }
 0x749   : > { %v5064_v30 = vpop.f32.mrf.mxu0 }
 0x74a   : > { %v5065_v39 = vadd.f32 %v5064_v30, %v5021_v19  ;;  %v9196_v19 = vld [vmem:[#allocation8 + $0x220] ss:$8 sps:$4 sm:$0xff]   ;;  %v9210_v30 = vld [vmem:[#allocation8 + $0x2e4] ss:$8 sps:$4 sm:$0xff]  }
 0x780   : > { %v5101_v26 = vpop.f32.mrf.mxu1 }
 0x781   : > { %v5102_v28 = vadd.f32 %v5101_v26, %v5059_v23  ;;  %v9199_v23 = vld [vmem:[#allocation8 + $0x210] ss:$8 sps:$4 sm:$0xff]   ;;  %v9202_v26 = vld [vmem:[#allocation8 + $0x200] ss:$8 sps:$4 sm:$0xff]  }
 0x782   : > { %v5103_v9 = vpop.f32.mrf.mxu1 }
 0x783   : > { %v5110_v32 = vmax.f32 %v5102_v28, 0.0  ;;  %v5104_v40 = vadd.f32 %v5103_v9, %v5061_v35  ;;  %v9207_v35 = vld [vmem:[#allocation8 + $0x2f4] ss:$8 sps:$4 sm:$0xff]   ;;  %v9205_v28 = vld [vmem:[#allocation8 + $0x2f0] ss:$8 sps:$4 sm:$0xff]  }
 0x784   : > { %v5105_v38 = vpop.f32.mrf.mxu1  ;;  %v9213_v9 = vld [vmem:[#allocation8 + $0x2d4] ss:$8 sps:$4 sm:$0xff]  }
 0x785   : > { %v5111_v15 = vmax.f32 %v5104_v40, 0.0  ;;  %v5106_v37 = vadd.f32 %v5105_v38, %v5063_v45  ;;  %v5129_v61 = vmul.f32 %v5122_v22, %v5110_v32  ;;  %v9211_v45 = vld [vmem:[#allocation8 + $0x2d0] ss:$8 sps:$4 sm:$0xff]   ;;  %v9216_v32 = vld [vmem:[#allocation8 + $0x2c4] ss:$8 sps:$4 sm:$0xff]  }
 0x786   : > { %v5107_v41 = vpop.f32.mrf.mxu1  ;;  %v9219_v40 = vld [vmem:[#allocation8 + $0x2b4] ss:$8 sps:$4 sm:$0xff]   ;;  %v9222_v38 = vld [vmem:[#allocation8 + $0x2a4] ss:$8 sps:$4 sm:$0xff]  }
 0x787   : > { %v5130_v42 = vmul.f32 %v5126_v51, %v5111_v15  ;;  %v5112_v43 = vmax.f32 %v5106_v37, 0.0  ;;  %v5108_v44 = vadd.f32 %v5107_v41, %v5065_v39  ;;  %v10354_v46 = vadd.f32 %v5137_v10, %v5129_v61  ;;  %v9220_v39 = vld [vmem:[#allocation8 + $0x2a0] ss:$8 sps:$4 sm:$0xff]   ;;  %v9225_v15 = vld [vmem:[#allocation8 + $0x294] ss:$8 sps:$4 sm:$0xff]  }
 0x788   : > { %v9223_v37 = vld [vmem:[#allocation8 + $0x290] ss:$8 sps:$4 sm:$0xff]   ;;  %v9226_v61 = vld [vmem:[#allocation8 + $0x280] ss:$8 sps:$4 sm:$0xff]  }
 0x789   : > { %v5131_v21 = vmul.f32 %v5122_v22, %v5112_v43  ;;  %v5113_v47 = vmax.f32 %v5108_v44, 0.0  ;;  %v5145_v36 = vadd.f32 %v5141_v50, %v5130_v42  ;;  %v5148_v55 = vrot.slane %v10354_v46, 1  ;;  %v9208_v22 = vld [vmem:[#allocation8 + $0x2e0] ss:$8 sps:$4 sm:$0xff]  }
 0x78a   : > { %v5156_v41 = vrot.slane %v10354_v46, 2 }
 0x78b   : > { %v10356_v49 = vadd.f32 %v5137_v10, %v5131_v21  ;;  %v5132_v52 = vmul.f32 %v5126_v51, %v5113_v47  ;;  %v5149_v57 = vrot.slane %v5145_v36, 1  ;;  %v5157_v63 = vrot.slane %v5145_v36, 2  ;;  %v9217_v51 = vld [vmem:[#allocation8 + $0x2b0] ss:$8 sps:$4 sm:$0xff]   ;;  %v9228_v10 = vld [vmem:[#allocation8 + $0x284] ss:$8 sps:$4 sm:$0xff]  }
 0x78c   : > { %v9229_v21 = vld [vmem:[#allocation10 + $0x78] sm:$0xff]  }
 0x78d   : > { %v5150_v53 = vrot.slane %v10356_v49, 1  ;;  %v5147_v54 = vadd.f32 %v5141_v50, %v5132_v52  ;;  %v5164_v5 = vpack.c.bf16 %v10356_v49, %v10354_v46  ;;  %v5158_v50 = vrot.slane %v10356_v49, 2  ;;  %v9230_v47 = vld [vmem:[#allocation10 + $0x38] sm:$0xff]   ;;  %8069 = vmatprep.subr.bf16.mxu1 %v9229_v21  ;;  %v9236_v49 = vld [vmem:[#allocation10 + $0xf0] sm:$0xff]  }
 0x78e   : > { %v9232_v52 = vld [vmem:[#allocation10 + $0xf8] sm:$0xff]   ;;  %v9233_v46 = vld [vmem:[#allocation10 + $0x30] sm:$0xff]  }
 0x78f   : > { %v5165_v59 = vpack.c.bf16 %v5147_v54, %v5145_v36  ;;  %v5151_v62 = vrot.slane %v5147_v54, 1  ;;  %v5159_v3 = vrot.slane %v5147_v54, 2  ;;  %v5152_v7 = vsel %vm605_vm0, %v5148_v55, %v5150_v53  ;;  %v9231_v36 = vld [vmem:[#allocation10 + $0x70] sm:$0xff]   ;;  %v9235_v54 = vld [vmem:[#allocation10 + $0x68] sm:$0xff]  }
 0x790   : > { %v5154_v8 = vsel %vm605_vm0, %v5150_v53, %v5148_v55  ;;  %v5160_v42 = vsel %vm614_vm1, %v5156_v41, %v5158_v50  ;;  %v5162_v43 = vsel %vm614_vm1, %v5158_v50, %v5156_v41  ;;  %v9234_v53 = vld [vmem:[#allocation10 + $0xb8] sm:$0xff]   ;;  %v9238_v55 = vld [vmem:[#allocation10 + $0xb0] sm:$0xff]  }
 0x791   : > { %5778 = vmatprep.mubr.bf16.mxu0 %v5165_v59  ;;  %v5153_v11 = vsel %vm605_vm0, %v5149_v57, %v5151_v62  ;;  %v5155_v13 = vsel %vm605_vm0, %v5151_v62, %v5149_v57  ;;  %v5161_v12 = vsel %vm614_vm1, %v5157_v63, %v5159_v3  ;;  %v5163_v4 = vsel %vm614_vm1, %v5159_v3, %v5157_v63  ;;  %v9240_v57 = vld [vmem:[#allocation10 + $0xe8] sm:$0xff]   ;;  %v9241_v63 = vld [vmem:[#allocation10 + $0x20] sm:$0xff]   ;;  %v9243_v3 = vld [vmem:[#allocation10 + $0x58] sm:$0xff]  }
 0x792   : > { %5779 = vmatmul.mubr.bf16.vlgmr.msra.gmra.mxu0 %v5164_v5  ;;  %v5167_v56 = vpack.c.bf16 %v5155_v13, %v5153_v11  ;;  %v5169_v29 = vpack.c.bf16 %v5163_v4, %v5161_v12  ;;  %v5166_v1 = vpack.c.bf16 %v5154_v8, %v5152_v7  ;;  %v5168_v44 = vpack.c.bf16 %v5162_v43, %v5160_v42  ;;  %v9237_v59 = vld [vmem:[#allocation10 + $0x28] sm:$0xff]   ;;  %v9244_v5 = vld [vmem:[#allocation10 + $0xe0] sm:$0xff]   ;;  %v9245_v7 = vld [vmem:[#allocation10 + $0x18] sm:$0xff]  }
 0x793   : > { %5833 = vmatpush1.bf16.msra.mxu0 %v9181_v60  ;;  %v9239_v60 = vld [vmem:[#allocation10 + $0x60] sm:$0xff]   ;;  %v9242_v62 = vld [vmem:[#allocation10 + $0xa8] sm:$0xff]   ;;  %v9247_v11 = vld [vmem:[#allocation10 + $0x50] sm:$0xff]  }
 0x794   : > { %5821 = vmatprep.mubr.bf16.mxu1 %v5167_v56  ;;  %5864 = vmatprep.mubr.bf16.mxu0 %v5169_v29  ;;  %v9246_v8 = vld [vmem:[#allocation10 + $0xa0] sm:$0xff]   ;;  %v9248_v13 = vld [vmem:[#allocation10 + $0xd8] sm:$0xff]   ;;  %v9249_v12 = vld [vmem:[#allocation10 + $0x10] sm:$0xff]  }
 0x795   : > { %5822 = vmatmul.mubr.bf16.vlgmr.msra.gmra.mxu1 %v5166_v1  ;;  %5834 = vmatprep.subr.bf16.mxu0 %v9186_v48  ;;  %v9250_v4 = vld [vmem:[#allocation10 + $0x98] sm:$0xff]   ;;  %v9251_v48 = vld [vmem:[#allocation10 + $0x48] sm:$0xff]   ;;  %v9252_v56 = vld [vmem:[#allocation10 + $0xd0] sm:$0xff]  }
 0x796   : > { %8070 = vmatpush3.bf16.msra.mxu1 %v9230_v47  ;;  %v9253_v29 = vld [vmem:[#allocation10 + $0x8] sm:$0xff]   ;;  %v9254_v1 = vld [vmem:[#allocation10 + $0x90] sm:$0xff]  }
 0x797   : > { %5835 = vmatpush1.bf16.msra.mxu0 %v9184_v16  ;;  %8071 = vmatprep.subr.bf16.mxu1 %v9231_v36  ;;  %v9255_v16 = vld [vmem:[#allocation10 + $0x40] sm:$0xff]  }
 0x798   : > { %5836 = vmatprep.subr.bf16.mxu0 %v9189_v20  ;;  %v9256_v20 = vld [vmem:[#allocation10 + $0xc8] sm:$0xff]  }
 0x79a   : > { %8072 = vmatpush3.bf16.msra.mxu1 %v9233_v46 }
 0x79b   : > { %5837 = vmatpush1.bf16.msra.mxu0 %v9187_v2  ;;  %8073 = vmatprep.subr.bf16.mxu1 %v9235_v54  ;;  %v9257_v2 = vld [vmem:[#allocation10] sm:$0xff]  }
 0x79c   : > { %5838 = vmatprep.subr.bf16.mxu0 %v9192_v14  ;;  %v9258_v14 = vld [vmem:[#allocation10 + $0x88] sm:$0xff]  }
 0x79e   : > { %8074 = vmatpush3.bf16.msra.mxu1 %v9237_v59 }
 0x79f   : > { %5839 = vmatpush1.bf16.msra.mxu0 %v9190_v6  ;;  %8075 = vmatprep.subr.bf16.mxu1 %v9239_v60  ;;  %v9259_v6 = vld [vmem:[#allocation10 + $0xc0] sm:$0xff]  }
 0x7a0   : > { %5840 = vmatprep.subr.bf16.mxu0 %v9195_v34  ;;  %v9260_v34 = vld [vmem:[#allocation10 + $0x178] sm:$0xff]  }
 0x7a2   : > { %8076 = vmatpush3.bf16.msra.mxu1 %v9241_v63 }
 0x7a3   : > { %5841 = vmatpush1.bf16.msra.mxu0 %v9193_v17  ;;  %8077 = vmatprep.subr.bf16.mxu1 %v9243_v3  ;;  %v9261_v17 = vld [vmem:[#allocation10 + $0x80] sm:$0xff]  }
 0x7a4   : > { %5842 = vmatprep.subr.bf16.mxu0 %v9198_v18  ;;  %v9279_v18 = vld [vmem:[#allocation11 + $0x74] ss:$8 sps:$4 sm:$0xff]  }
 0x7a6   : > { %8078 = vmatpush3.bf16.msra.mxu1 %v9245_v7  ;;  %v9262_v7 = vld [vmem:[#allocation10 + $0x138] sm:$0xff]  }
 0x7a7   : > { %5843 = vmatpush1.bf16.msra.mxu0 %v9196_v19  ;;  %8079 = vmatprep.subr.bf16.mxu1 %v9247_v11 }
 0x7a8   : > { %5844 = vmatprep.subr.bf16.mxu0 %v9201_v58 }
 0x7aa   : > { %8080 = vmatpush3.bf16.msra.mxu1 %v9249_v12 }
 0x7ab   : > { %5845 = vmatpush1.bf16.msra.mxu0 %v9199_v23  ;;  %8081 = vmatprep.subr.bf16.mxu1 %v9251_v48 }
 0x7ac   : > { %5846 = vmatprep.subr.bf16.mxu0 %v9204_v25 }
 0x7ae   : > { %8082 = vmatpush3.bf16.msra.mxu1 %v9253_v29 }
 0x7af   : > { %5847 = vmatpush1.bf16.msra.mxu0 %v9202_v26  ;;  %8083 = vmatprep.subr.bf16.mxu1 %v9255_v16 }
 0x7b0   : > { %5848 = vmatprep.subr.bf16.mxu0 %v9207_v35 }
 0x7b2   : > { %8084 = vmatpush3.bf16.msra.mxu1 %v9257_v2 }
 0x7b3   : > { %5849 = vmatpush2.bf16.msra.mxu0 %v9205_v28  ;;  %8113 = vmatprep.subr.bf16.mxu1 %v9260_v34 }
 0x7b4   : > { %5850 = vmatprep.subr.bf16.mxu0 %v9210_v30 }
 0x7b7   : > { %5851 = vmatpush2.bf16.msra.mxu0 %v9208_v22  ;;  %v7940_v22 = vld [vmem:[%s10595_s8 + $0x20] ss:$8 sm:$0x3] }
 0x7b8   : > { %5852 = vmatprep.subr.bf16.mxu0 %v9213_v9 }
 0x7bb   : > { %5853 = vmatpush2.bf16.msra.mxu0 %v9211_v45 }
 0x7bc   : > { %5854 = vmatprep.subr.bf16.mxu0 %v9216_v32 }
 0x7bf   : > { %5855 = vmatpush2.bf16.msra.mxu0 %v9214_v33 }
 0x7c0   : > { %5856 = vmatprep.subr.bf16.mxu0 %v9219_v40  ;;  %v5887_v40 = vrot.slane %v7940_v22, %v10068_v27 }
 0x7c3   : > { %5857 = vmatpush2.bf16.msra.mxu0 %v9217_v51 }
 0x7c4   : > { %5858 = vmatprep.subr.bf16.mxu0 %v9222_v38 }
 0x7c7   : > { %5859 = vmatpush2.bf16.msra.mxu0 %v9220_v39 }
 0x7c8   : > { %5860 = vmatprep.subr.bf16.mxu0 %v9225_v15  ;;  %v7941_v15 = vld [vmem:[%s10595_s8 + $0x21] ss:$8 sm:$0x3] }
 0x7c9   : > { %v5902_v43 = vrot.slane %v7941_v15, %v10068_v27 }
 0x7cb   : > { %5861 = vmatpush2.bf16.msra.mxu0 %v9223_v37 }
 0x7cc   : > { %5862 = vmatprep.subr.bf16.mxu0 %v9228_v10  ;;  %v5891_v10 = vrot.slane %v7940_v22, %v10065_v24  ;;  %v9270_v22 = vld [vmem:[#allocation10 + $0x118] sm:$0xff]  }
 0x7cf   : > { %5863 = vmatpush2.bf16.msra.mxu0 %v9226_v61 }
 0x7d0   : > { %8091 = vmatprep.subr.bf16.mxu0 %v9232_v52 }
 0x7d2   : > { %5865 = vmatmul.mubr.bf16.vlgmr.msra.gmra.mxu0 %v5168_v44  ;;  %v5906_v44 = vrot.slane %v7941_v15, %v10065_v24 }
 0x7d3   : > { %8092 = vmatpush3.bf16.msra.mxu0 %v9234_v53 }
 0x7d4   : > { %8093 = vmatprep.subr.bf16.mxu0 %v9236_v49 }
 0x7d7   : > { %8094 = vmatpush3.bf16.msra.mxu0 %v9238_v55 }
 0x7d8   : > { %8095 = vmatprep.subr.bf16.mxu0 %v9240_v57 }
 0x7db   : > { %8096 = vmatpush3.bf16.msra.mxu0 %v9242_v62 }
 0x7dc   : > { %8097 = vmatprep.subr.bf16.mxu0 %v9244_v5 }
 0x7df   : > { %8098 = vmatpush3.bf16.msra.mxu0 %v9246_v8 }
 0x7e0   : > { %8099 = vmatprep.subr.bf16.mxu0 %v9248_v13 }
 0x7e3   : > { %8100 = vmatpush3.bf16.msra.mxu0 %v9250_v4 }
 0x7e4   : > { %8101 = vmatprep.subr.bf16.mxu0 %v9252_v56 }
 0x7e7   : > { %8102 = vmatpush3.bf16.msra.mxu0 %v9254_v1 }
 0x7e8   : > { %8103 = vmatprep.subr.bf16.mxu0 %v9256_v20  ;;  %v9263_v20 = vld [vmem:[#allocation10 + $0x170] sm:$0xff]  }
 0x7eb   : > { %8104 = vmatpush3.bf16.msra.mxu0 %v9258_v14 }
 0x7ec   : > { %8105 = vmatprep.subr.bf16.mxu0 %v9259_v6  ;;  %v9277_v6 = vld [vmem:[#allocation11 + $0x70] ss:$8 sps:$4 sm:$0xff]  }
 0x7ef   : > { %8106 = vmatpush3.bf16.msra.mxu0 %v9261_v17  ;;  %v9264_v17 = vld [vmem:[#allocation10 + $0x130] sm:$0xff]  }
 0x7f0   : > { %6749 = vmatprep.subr.bf16.mxu0 %v9279_v18  ;;  %v9282_v18 = vld [vmem:[#allocation11 + $0x64] ss:$8 sps:$4 sm:$0xff]  }
 0x852   : > { %v5780_v19 = vpop.f32.mrf.mxu0 }
 0x854   : > { %v5782_v58 = vpop.f32.mrf.mxu0 }
 0x855   : > { %v5823_v23 = vpop.f32.mrf.mxu1 }
 0x856   : > { %v5784_v25 = vpop.f32.mrf.mxu0  ;;  %v5824_v30 = vadd.f32 %v5823_v23, %v5780_v19  ;;  %v9265_v19 = vld [vmem:[#allocation10 + $0x168] sm:$0xff]  }
 0x857   : > { %v5825_v26 = vpop.f32.mrf.mxu1  ;;  %v9266_v23 = vld [vmem:[#allocation10 + $0x128] sm:$0xff]  }
 0x858   : > { %v5786_v35 = vpop.f32.mrf.mxu0  ;;  %v5826_v45 = vadd.f32 %v5825_v26, %v5782_v58  ;;  %v9280_v58 = vld [vmem:[#allocation11 + $0x60] ss:$8 sps:$4 sm:$0xff]  }
 0x859   : > { %v5827_v28 = vpop.f32.mrf.mxu1  ;;  %v9267_v26 = vld [vmem:[#allocation10 + $0x160] sm:$0xff]  }
 0x85a   : > { %v5828_v38 = vadd.f32 %v5827_v28, %v5784_v25  ;;  %v9285_v25 = vld [vmem:[#allocation11 + $0x54] ss:$8 sps:$4 sm:$0xff]   ;;  %v9268_v28 = vld [vmem:[#allocation10 + $0x120] sm:$0xff]  }
 0x85b   : > { %v5829_v33 = vpop.f32.mrf.mxu1 }
 0x85c   : > { %v5830_v41 = vadd.f32 %v5829_v33, %v5786_v35  ;;  %v9283_v35 = vld [vmem:[#allocation11 + $0x50] ss:$8 sps:$4 sm:$0xff]   ;;  %v9274_v33 = vld [vmem:[#allocation10 + $0x108] sm:$0xff]  }
 0x892   : > { %v5866_v9 = vpop.f32.mrf.mxu0 }
 0x893   : > { %v5867_v32 = vadd.f32 %v5866_v9, %v5824_v30  ;;  %v9269_v30 = vld [vmem:[#allocation10 + $0x158] sm:$0xff]   ;;  %v9271_v9 = vld [vmem:[#allocation10 + $0x150] sm:$0xff]  }
 0x894   : > { %v5868_v51 = vpop.f32.mrf.mxu0 }
 0x895   : > { %v5875_v39 = vmax.f32 %v5867_v32, 0.0  ;;  %v5869_v37 = vadd.f32 %v5868_v51, %v5826_v45  ;;  %v9272_v45 = vld [vmem:[#allocation10 + $0x110] sm:$0xff]   ;;  %v9273_v32 = vld [vmem:[#allocation10 + $0x148] sm:$0xff]  }
 0x896   : > { %v5870_v50 = vpop.f32.mrf.mxu0 }
 0x897   : > { %v5876_v61 = vmax.f32 %v5869_v37, 0.0  ;;  %v5871_v42 = vadd.f32 %v5870_v50, %v5828_v38  ;;  %v5894_v47 = vmul.f32 %v5887_v40, %v5875_v39  ;;  %v9276_v39 = vld [vmem:[#allocation10 + $0x100] sm:$0xff]  }
 0x898   : > { %v5872_v21 = vpop.f32.mrf.mxu0  ;;  %v9288_v50 = vld [vmem:[#allocation11 + $0x44] ss:$8 sps:$4 sm:$0xff]  }
 0x899   : > { %v5895_v36 = vmul.f32 %v5891_v10, %v5876_v61  ;;  %v5877_v52 = vmax.f32 %v5871_v42, 0.0  ;;  %v5873_v53 = vadd.f32 %v5872_v21, %v5830_v41  ;;  %v10390_v54 = vadd.f32 %v5902_v43, %v5894_v47  ;;  %v9286_v41 = vld [vmem:[#allocation11 + $0x40] ss:$8 sps:$4 sm:$0xff]   ;;  %v9291_v61 = vld [vmem:[#allocation11 + $0x34] ss:$8 sps:$4 sm:$0xff]  }
 0x89a   : > { %v9289_v42 = vld [vmem:[#allocation11 + $0x30] ss:$8 sps:$4 sm:$0xff]   ;;  %v9297_v47 = vld [vmem:[#allocation11 + $0x14] ss:$8 sps:$4 sm:$0xff]  }
 0x89b   : > { %v5896_v49 = vmul.f32 %v5887_v40, %v5877_v52  ;;  %v5878_v46 = vmax.f32 %v5873_v53, 0.0  ;;  %v5910_v55 = vadd.f32 %v5906_v44, %v5895_v36  ;;  %v5913_v63 = vrot.slane %v10390_v54, 1  ;;  %v9275_v40 = vld [vmem:[#allocation10 + $0x140] sm:$0xff]   ;;  %v9295_v21 = vld [vmem:[#allocation11 + $0x10] ss:$8 sps:$4 sm:$0xff]  }
 0x89c   : > { %v5921_v38 = vrot.slane %v10390_v54, 2  ;;  %v9300_v36 = vld [vmem:[#allocation11 + $0x4] ss:$8 sps:$4 sm:$0xff]   ;;  %v9301_v52 = vld [vmem:[#allocation11 + $0x170] ss:$8 sps:$4 sm:$0xff]  }
 0x89d   : > { %v10392_v57 = vadd.f32 %v5902_v43, %v5896_v49  ;;  %v5897_v59 = vmul.f32 %v5891_v10, %v5878_v46  ;;  %v5914_v3 = vrot.slane %v5910_v55, 1  ;;  %v5922_v11 = vrot.slane %v5910_v55, 2  ;;  %v9294_v43 = vld [vmem:[#allocation11 + $0x24] ss:$8 sps:$4 sm:$0xff]   ;;  %v9303_v53 = vld [vmem:[#allocation11 + $0x174] ss:$8 sps:$4 sm:$0xff]  }
 0x89e   : > { %v9298_v49 = vld [vmem:[#allocation11] ss:$8 sps:$4 sm:$0xff]  }
 0x89f   : > { %v5915_v60 = vrot.slane %v10392_v57, 1  ;;  %v5912_v62 = vadd.f32 %v5906_v44, %v5897_v59  ;;  %v5929_v12 = vpack.c.bf16 %v10392_v57, %v10390_v54  ;;  %v5923_v51 = vrot.slane %v10392_v57, 2  ;;  %v9292_v44 = vld [vmem:[#allocation11 + $0x20] ss:$8 sps:$4 sm:$0xff]   ;;  %v9306_v54 = vld [vmem:[#allocation11 + $0xf4] ss:$8 sps:$4 sm:$0xff]  }
 0x8a0   : > { %v9307_v46 = vld [vmem:[#allocation11 + $0x160] ss:$8 sps:$4 sm:$0xff]   ;;  %v9304_v57 = vld [vmem:[#allocation11 + $0xf0] ss:$8 sps:$4 sm:$0xff]  }
 0x8a1   : > { %v5930_v5 = vpack.c.bf16 %v5912_v62, %v5910_v55  ;;  %v5916_v8 = vrot.slane %v5912_v62, 1  ;;  %v5924_v13 = vrot.slane %v5912_v62, 2  ;;  %v5917_v4 = vsel %vm605_vm0, %v5913_v63, %v5915_v60  ;;  %v9315_v55 = vld [vmem:[#allocation11 + $0x154] ss:$8 sps:$4 sm:$0xff]   ;;  %v9313_v59 = vld [vmem:[#allocation11 + $0x150] ss:$8 sps:$4 sm:$0xff]  }
 0x8a2   : > { %v5919_v48 = vsel %vm605_vm0, %v5915_v60, %v5913_v63  ;;  %v5925_v15 = vsel %vm614_vm1, %v5921_v38, %v5923_v51  ;;  %v5927_v37 = vsel %vm614_vm1, %v5923_v51, %v5921_v38  ;;  %v9312_v60 = vld [vmem:[#allocation11 + $0xe4] ss:$8 sps:$4 sm:$0xff]   ;;  %v9310_v62 = vld [vmem:[#allocation11 + $0xe0] ss:$8 sps:$4 sm:$0xff]   ;;  %v9318_v63 = vld [vmem:[#allocation11 + $0xd4] ss:$8 sps:$4 sm:$0xff]  }
 0x8a3   : > { %6351 = vmatprep.mubr.bf16.mxu1 %v5930_v5  ;;  %v5918_v56 = vsel %vm605_vm0, %v5914_v3, %v5916_v8  ;;  %v5920_v29 = vsel %vm605_vm0, %v5916_v8, %v5914_v3  ;;  %v5926_v1 = vsel %vm614_vm1, %v5922_v11, %v5924_v13  ;;  %v5928_v16 = vsel %vm614_vm1, %v5924_v13, %v5922_v11  ;;  %v9316_v3 = vld [vmem:[#allocation11 + $0xd0] ss:$8 sps:$4 sm:$0xff]   ;;  %v9321_v5 = vld [vmem:[#allocation11 + $0x144] ss:$8 sps:$4 sm:$0xff]   ;;  %v9322_v11 = vld [vmem:[#allocation11 + $0xc0] ss:$8 sps:$4 sm:$0xff]  }
 0x8a4   : > { %6352 = vmatmul.mubr.bf16.vlgmr.msra.gmra.mxu1 %v5929_v12  ;;  %v5932_v2 = vpack.c.bf16 %v5920_v29, %v5918_v56  ;;  %v5934_v14 = vpack.c.bf16 %v5928_v16, %v5926_v1  ;;  %v5931_v34 = vpack.c.bf16 %v5919_v48, %v5917_v4  ;;  %v5933_v10 = vpack.c.bf16 %v5927_v37, %v5925_v15  ;;  %v9324_v8 = vld [vmem:[#allocation11 + $0xc4] ss:$8 sps:$4 sm:$0xff]   ;;  %v9327_v13 = vld [vmem:[#allocation11 + $0x134] ss:$8 sps:$4 sm:$0xff]   ;;  %v9325_v12 = vld [vmem:[#allocation11 + $0x130] ss:$8 sps:$4 sm:$0xff]  }
 0x8a5   : > { %8114 = vmatpush3.bf16.msra.mxu1 %v9262_v7  ;;  %v9319_v7 = vld [vmem:[#allocation11 + $0x140] ss:$8 sps:$4 sm:$0xff]   ;;  %v9330_v4 = vld [vmem:[#allocation11 + $0xb4] ss:$8 sps:$4 sm:$0xff]   ;;  %v9328_v48 = vld [vmem:[#allocation11 + $0xb0] ss:$8 sps:$4 sm:$0xff]  }
 0x8a6   : > { %6392 = vmatprep.mubr.bf16.mxu0 %v5932_v2  ;;  %6433 = vmatprep.mubr.bf16.mxu1 %v5934_v14  ;;  %v9333_v56 = vld [vmem:[#allocation11 + $0x124] ss:$8 sps:$4 sm:$0xff]   ;;  %v9331_v29 = vld [vmem:[#allocation11 + $0x120] ss:$8 sps:$4 sm:$0xff]   ;;  %v9337_v2 = vld [vmem:[#allocation11 + $0x110] ss:$8 sps:$4 sm:$0xff]  }
 0x8a7   : > { %6393 = vmatmul.mubr.bf16.vlgmr.msra.gmra.mxu0 %v5931_v34  ;;  %8115 = vmatprep.subr.bf16.mxu1 %v9263_v20  ;;  %v9336_v1 = vld [vmem:[#allocation11 + $0xa4] ss:$8 sps:$4 sm:$0xff]   ;;  %v9334_v16 = vld [vmem:[#allocation11 + $0xa0] ss:$8 sps:$4 sm:$0xff]   ;;  %v9339_v20 = vld [vmem:[#allocation11 + $0x114] ss:$8 sps:$4 sm:$0xff]  }
 0x8a8   : > { %6750 = vmatpush1.bf16.msra.mxu0 %v9277_v6  ;;  %v9342_v14 = vld [vmem:[#allocation11 + $0x94] ss:$8 sps:$4 sm:$0xff]   ;;  %v9340_v6 = vld [vmem:[#allocation11 + $0x90] ss:$8 sps:$4 sm:$0xff]   ;;  %v9345_v34 = vld [vmem:[#allocation11 + $0x104] ss:$8 sps:$4 sm:$0xff]  }
 0x8a9   : > { %8116 = vmatpush3.bf16.msra.mxu1 %v9264_v17  ;;  %6751 = vmatprep.subr.bf16.mxu0 %v9282_v18  ;;  %v9343_v17 = vld [vmem:[#allocation11 + $0x100] ss:$8 sps:$4 sm:$0xff]  }
 0x8aa   : > { %8117 = vmatprep.subr.bf16.mxu1 %v9265_v19  ;;  %v9346_v18 = vld [vmem:[#allocation11 + $0x80] ss:$8 sps:$4 sm:$0xff]   ;;  %v9348_v19 = vld [vmem:[#allocation11 + $0x84] ss:$8 sps:$4 sm:$0xff]  }
 0x8ac   : > { %6752 = vmatpush1.bf16.msra.mxu0 %v9280_v58 }
 0x8ad   : > { %8118 = vmatpush3.bf16.msra.mxu1 %v9266_v23  ;;  %6753 = vmatprep.subr.bf16.mxu0 %v9285_v25 }
 0x8ae   : > { %8119 = vmatprep.subr.bf16.mxu1 %v9267_v26 }
 0x8b0   : > { %6754 = vmatpush1.bf16.msra.mxu0 %v9283_v35 }
 0x8b1   : > { %8120 = vmatpush3.bf16.msra.mxu1 %v9268_v28  ;;  %6755 = vmatprep.subr.bf16.mxu0 %v9288_v50 }
 0x8b2   : > { %8121 = vmatprep.subr.bf16.mxu1 %v9269_v30 }
 0x8b4   : > { %6756 = vmatpush1.bf16.msra.mxu0 %v9286_v41 }
 0x8b5   : > { %8122 = vmatpush3.bf16.msra.mxu1 %v9270_v22  ;;  %6757 = vmatprep.subr.bf16.mxu0 %v9291_v61 }
 0x8b6   : > { %8123 = vmatprep.subr.bf16.mxu1 %v9271_v9 }
 0x8b8   : > { %6758 = vmatpush1.bf16.msra.mxu0 %v9289_v42 }
 0x8b9   : > { %8124 = vmatpush3.bf16.msra.mxu1 %v9272_v45  ;;  %6759 = vmatprep.subr.bf16.mxu0 %v9294_v43 }
 0x8ba   : > { %8125 = vmatprep.subr.bf16.mxu1 %v9273_v32 }
 0x8bc   : > { %6760 = vmatpush1.bf16.msra.mxu0 %v9292_v44 }
 0x8bd   : > { %8126 = vmatpush3.bf16.msra.mxu1 %v9274_v33  ;;  %6761 = vmatprep.subr.bf16.mxu0 %v9297_v47 }
 0x8be   : > { %8127 = vmatprep.subr.bf16.mxu1 %v9275_v40 }
 0x8c0   : > { %6762 = vmatpush1.bf16.msra.mxu0 %v9295_v21  ;;  %v6445_v21 = vld [vmem:[%s10595_s8 + $0x23] ss:$0 sm:$0xff] }
 0x8c1   : > { %8128 = vmatpush3.bf16.msra.mxu1 %v9276_v39  ;;  %6763 = vmatprep.subr.bf16.mxu0 %v9300_v36 }
 0x8c2   : > { %6792 = vmatprep.subr.bf16.mxu1 %v9303_v53 }
 0x8c4   : > { %6434 = vmatmul.mubr.bf16.vlgmr.msra.gmra.mxu1 %v5933_v10  ;;  %6764 = vmatpush1.bf16.msra.mxu0 %v9298_v49  ;;  %v6444_v10 = vld [vmem:[%s10595_s8 + $0x22] ss:$0 sm:$0xff] }
 0x8c5   : > { %6824 = vmatprep.mubr.bf16.mxu1 %v9626_v0  ;;  %v9309_v0 = vld [vmem:[#allocation11 + $0x164] ss:$8 sps:$4 sm:$0xff]   ;;  %6793 = vmatpush1.bf16.msra.mxu1 %v9301_v52 }
 0x8c6   : > { %6794 = vmatprep.subr.bf16.mxu1 %v9309_v0  ;;  %6765 = vmatprep.subr.bf16.mxu0 %v9306_v54 }
 0x8c8   : > { %6766 = vmatpush2.bf16.msra.mxu0 %v9304_v57 }
 0x8c9   : > { %6795 = vmatpush1.bf16.msra.mxu1 %v9307_v46  ;;  %6767 = vmatprep.subr.bf16.mxu0 %v9312_v60 }
 0x8ca   : > { %6796 = vmatprep.subr.bf16.mxu1 %v9315_v55 }
 0x8cc   : > { %6768 = vmatpush2.bf16.msra.mxu0 %v9310_v62 }
 0x8cd   : > { %6797 = vmatpush1.bf16.msra.mxu1 %v9313_v59  ;;  %6769 = vmatprep.subr.bf16.mxu0 %v9318_v63 }
 0x8ce   : > { %6798 = vmatprep.subr.bf16.mxu1 %v9321_v5  ;;  %v9627_v5 = vmov 0.0  }
 0x8d0   : > { %6770 = vmatpush2.bf16.msra.mxu0 %v9316_v3 }
 0x8d1   : > { %6771 = vmatprep.subr.bf16.mxu0 %v9324_v8  ;;  %6799 = vmatpush1.bf16.msra.mxu1 %v9319_v7  ;;  %v6980_v7 = vld [vmem:[%s10600_s13 + $0xf8] sm:$0xff] }
 0x8d2   : > { %6800 = vmatprep.subr.bf16.mxu1 %v9327_v13  ;;  %v6964_v8 = vld [vmem:[%s10600_s13 + $0x78] sm:$0xff]  ;;  %v6978_v13 = vld [vmem:[%s10600_s13 + $0xe8] sm:$0xff] }
 0x8d4   : > { %6772 = vmatpush2.bf16.msra.mxu0 %v9322_v11  ;;  %v6963_v11 = vld [vmem:[%s10600_s13 + $0x70] sm:$0xff] }
 0x8d5   : > { %6773 = vmatprep.subr.bf16.mxu0 %v9330_v4  ;;  %6801 = vmatpush1.bf16.msra.mxu1 %v9325_v12  ;;  %v6962_v12 = vld [vmem:[%s10600_s13 + $0x68] sm:$0xff]  ;;  %v6977_v4 = vld [vmem:[%s10600_s13 + $0xe0] sm:$0xff] }
 0x8d6   : > { %6802 = vmatprep.subr.bf16.mxu1 %v9333_v56  ;;  %v6976_v56 = vld [vmem:[%s10600_s13 + $0xd8] sm:$0xff] }
 0x8d8   : > { %6774 = vmatpush2.bf16.msra.mxu0 %v9328_v48  ;;  %v6961_v48 = vld [vmem:[%s10600_s13 + $0x60] sm:$0xff] }
 0x8d9   : > { %6775 = vmatprep.subr.bf16.mxu0 %v9336_v1  ;;  %6803 = vmatpush1.bf16.msra.mxu1 %v9331_v29  ;;  %v6960_v29 = vld [vmem:[%s10600_s13 + $0x58] sm:$0xff]  ;;  %v6975_v1 = vld [vmem:[%s10600_s13 + $0xd0] sm:$0xff] }
 0x8da   : > { %6804 = vmatprep.subr.bf16.mxu1 %v9339_v20  ;;  %v6974_v20 = vld [vmem:[%s10600_s13 + $0xc8] sm:$0xff] }
 0x8dc   : > { %6776 = vmatpush2.bf16.msra.mxu0 %v9334_v16  ;;  %v6959_v16 = vld [vmem:[%s10600_s13 + $0x50] sm:$0xff] }
 0x8dd   : > { %6777 = vmatprep.subr.bf16.mxu0 %v9342_v14  ;;  %6805 = vmatpush1.bf16.msra.mxu1 %v9337_v2  ;;  %v6958_v2 = vld [vmem:[%s10600_s13 + $0x48] sm:$0xff]  ;;  %v6973_v14 = vld [vmem:[%s10600_s13 + $0xc0] sm:$0xff] }
 0x8de   : > { %6806 = vmatprep.subr.bf16.mxu1 %v9345_v34  ;;  %v6972_v34 = vld [vmem:[%s10600_s13 + $0xb8] sm:$0xff] }
 0x8e0   : > { %6778 = vmatpush2.bf16.msra.mxu0 %v9340_v6  ;;  %v6957_v6 = vld [vmem:[%s10600_s13 + $0x40] sm:$0xff] }
 0x8e1   : > { %6779 = vmatprep.subr.bf16.mxu0 %v9348_v19  ;;  %6807 = vmatpush1.bf16.msra.mxu1 %v9343_v17  ;;  %v6956_v17 = vld [vmem:[%s10600_s13 + $0x38] sm:$0xff]  ;;  %v6955_v19 = vld [vmem:[%s10600_s13 + $0x30] sm:$0xff] }
 0x8e4   : > { %6780 = vmatpush2.bf16.msra.mxu0 %v9346_v18  ;;  %v6971_v18 = vld [vmem:[%s10600_s13 + $0xb0] sm:$0xff] }
 0x8e5   : > { %8135 = vmatprep.subr.mxu0 %v6980_v7 }
 0x964   : > { %v8085_v58 = vpop.f32.mrf.mxu1 }
 0x966   : > { %v8086_v25 = vpop.f32.mrf.mxu1 }
 0x967   : > { %v8107_v23 = vpop.f32.mrf.mxu0  ;;  %v8087_v32 = vadd.f32 %v8086_v25, %v8085_v58  ;;  %v6970_v58 = vld [vmem:[%s10600_s13 + $0xa8] sm:$0xff]  ;;  %v6969_v25 = vld [vmem:[%s10600_s13 + $0xa0] sm:$0xff] }
 0x968   : > { %v8088_v35 = vpop.f32.mrf.mxu1 }
 0x969   : > { %v8108_v26 = vpop.f32.mrf.mxu0 }
 0x96a   : > { %v8089_v30 = vpop.f32.mrf.mxu1  ;;  %v8109_v22 = vadd.f32 %v8108_v26, %v8107_v23  ;;  %v6954_v23 = vld [vmem:[%s10600_s13 + $0x28] sm:$0xff]  ;;  %v6953_v26 = vld [vmem:[%s10600_s13 + $0x20] sm:$0xff] }
 0x96b   : > { %v8110_v28 = vpop.f32.mrf.mxu0  ;;  %v8090_v15 = vadd.f32 %v8089_v30, %v8088_v35  ;;  %v6968_v35 = vld [vmem:[%s10600_s13 + $0x98] sm:$0xff]  ;;  %v6967_v30 = vld [vmem:[%s10600_s13 + $0x90] sm:$0xff] }
 0x96c   : > { %v6395_v40 = vadd.f32 %v8109_v22, %v8087_v32  ;;  %v6951_v22 = vld [vmem:[%s10600_s13 + $0x10] sm:$0xff] }
 0x96d   : > { %v8111_v9 = vpop.f32.mrf.mxu0 }
 0x96e   : > { %v8112_v51 = vadd.f32 %v8111_v9, %v8110_v28  ;;  %v6952_v28 = vld [vmem:[%s10600_s13 + $0x18] sm:$0xff] }
 0x970   : > { %v6398_v41 = vadd.f32 %v8112_v51, %v8090_v15  ;;  %v8038_v15 = vld [vmem:[%s10595_s8 + $0x24] ss:$8 sm:$0x3] }
 0x984   : > { %v8129_v45 = vpop.f32.mrf.mxu1 }
 0x986   : > { %v8130_v33 = vpop.f32.mrf.mxu1 }
 0x987   : > { %v8131_v38 = vadd.f32 %v8130_v33, %v8129_v45 }
 0x988   : > { %v8132_v39 = vpop.f32.mrf.mxu1 }
 0x989   : > { %v6436_v37 = vadd.f32 %v8131_v38, %v6395_v40 }
 0x98a   : > { %v8133_v50 = vpop.f32.mrf.mxu1 }
 0x98b   : > { %v6442_v61 = vmax.f32 %v6436_v37, 0.0  ;;  %v8134_v42 = vadd.f32 %v8133_v50, %v8132_v39 }
 0x98d   : > { %v6446_v43 = vmul.f32 %v6444_v10, %v6442_v61  ;;  %v6439_v44 = vadd.f32 %v8134_v42, %v6398_v41  ;;  %v6851_v61 = vrot.slane %v8038_v15, %v10065_v24 }
 0x98f   : > { %v6443_v47 = vmax.f32 %v6439_v44, 0.0  ;;  %v6448_v36 = vadd.f32 %v6446_v43, %v6445_v21 }
 0x991   : > { %v6447_v52 = vmul.f32 %v6444_v10, %v6443_v47  ;;  %v6454_v0 = vrot.slane %v6448_v36, 2  ;;  %v6450_v46 = vrot.slane %v6448_v36, 1  ;;  %v8039_v47 = vld [vmem:[%s10595_s8 + $0x25] ss:$8 sm:$0x3] }
 0x993   : > { %v6449_v53 = vadd.f32 %v6447_v52, %v6445_v21  ;;  %v6847_v21 = vrot.slane %v8038_v15, %v10068_v27 }
 0x995   : > { %v6455_v49 = vrot.slane %v6449_v53, 2  ;;  %v6451_v54 = vrot.slane %v6449_v53, 1  ;;  %v6458_v3 = vpack.c.bf16 %v6449_v53, %v6448_v36 }
 0x997   : > { %v6452_v55 = vsel %vm605_vm0, %v6450_v46, %v6451_v54  ;;  %v6453_v57 = vsel %vm605_vm0, %v6451_v54, %v6450_v46  ;;  %v6456_v59 = vsel %vm614_vm1, %v6454_v0, %v6455_v49  ;;  %v6457_v60 = vsel %vm614_vm1, %v6455_v49, %v6454_v0 }
 0x998   : > { %v6459_v62 = vpack.c.bf16 %v6453_v57, %v6452_v55  ;;  %v6460_v63 = vpack.c.bf16 %v6457_v60, %v6456_v59  ;;  %v6866_v49 = vrot.slane %v8039_v47, %v10065_v24  ;;  %v6862_v54 = vrot.slane %v8039_v47, %v10068_v27  ;;  %v6966_v24 = vld [vmem:[%s10600_s13 + $0x88] sm:$0xff] }
 0x999   : > { %v6950_v27 = vld [vmem:[%s10600_s13 + $0x8] sm:$0xff] }
 0x99a   : > { %6781 = vmatprep.mubr.bf16.mxu0 %v6459_v62  ;;  %6825 = vmatmul.mubr.bf16.vlgmr.msra.gmra.mxu1 %v6460_v63  ;;  %v6873_v62 = vld [vmem:[%s10599_s12] sm:$0x1] }
 0x99b   : > { %6782 = vmatmul.mubr.bf16.vlgmr.msra.gmra.mxu0 %v6458_v3  ;;  %6942 = vmatprep.mubr.f32.mxu1 %v9627_v5  ;;  %v6965_v63 = vld [vmem:[%s10600_s13 + $0x80] sm:$0xff] }
 0x99c   : > { %8136 = vmatpush3.msra.mxu0 %v6964_v8  ;;  %v6949_v3 = vld [vmem:[%s10600_s13] sm:$0xff] }
 0x99d   : > { %8137 = vmatprep.subr.mxu0 %v6979_v31  ;;  %v7053_v31 = vld [vmem:[%s10601_s14 + $0x8] sm:$0x3] }
 0x99e   : > { %8138 = vmatpush3.msra.mxu0 %v6963_v11  ;;  %v7052_v11 = vld [vmem:[%s10601_s14] sm:$0xff] }
 0x99f   : > { %8139 = vmatprep.subr.mxu0 %v6978_v13 }
 0x9a0   : > { %8140 = vmatpush3.msra.mxu0 %v6962_v12 }
 0x9a1   : > { %8141 = vmatprep.subr.mxu0 %v6977_v4 }
 0x9a2   : > { %8142 = vmatpush3.msra.mxu0 %v6961_v48 }
 0x9a3   : > { %8143 = vmatprep.subr.mxu0 %v6976_v56 }
 0x9a4   : > { %8144 = vmatpush3.msra.mxu0 %v6960_v29 }
 0x9a5   : > { %8145 = vmatprep.subr.mxu0 %v6975_v1 }
 0x9a6   : > { %8146 = vmatpush3.msra.mxu0 %v6959_v16 }
 0x9a7   : > { %8147 = vmatprep.subr.mxu0 %v6974_v20 }
 0x9a8   : > { %8148 = vmatpush3.msra.mxu0 %v6958_v2 }
 0x9a9   : > { %8149 = vmatprep.subr.mxu0 %v6973_v14 }
 0x9aa   : > { %8150 = vmatpush3.msra.mxu0 %v6957_v6 }
 0x9ab   : > { %8151 = vmatprep.subr.mxu0 %v6972_v34 }
 0x9ac   : > { %8152 = vmatpush3.msra.mxu0 %v6956_v17 }
 0x9ad   : > { %8153 = vmatprep.subr.mxu0 %v6971_v18 }
 0x9ae   : > { %8154 = vmatpush3.msra.mxu0 %v6955_v19 }
 0x9af   : > { %8155 = vmatprep.subr.mxu0 %v6970_v58 }
 0x9b0   : > { %8156 = vmatpush3.msra.mxu0 %v6954_v23 }
 0x9b1   : > { %8157 = vmatprep.subr.mxu0 %v6969_v25 }
 0x9b2   : > { %8158 = vmatpush3.msra.mxu0 %v6953_v26 }
 0x9b3   : > { %8159 = vmatprep.subr.mxu0 %v6968_v35 }
 0x9b4   : > { %8160 = vmatpush3.msra.mxu0 %v6952_v28 }
 0x9b5   : > { %8161 = vmatprep.subr.mxu0 %v6967_v30 }
 0x9b6   : > { %8162 = vmatpush3.msra.mxu0 %v6951_v22 }
 0x9b7   : > { %8163 = vmatprep.subr.mxu0 %v6966_v24 }
 0x9b8   : > { %8164 = vmatpush3.msra.mxu0 %v6950_v27 }
 0x9b9   : > { %8165 = vmatprep.subr.mxu0 %v6965_v63 }
 0x9ba   : > { %8166 = vmatpush3.msra.mxu0 %v6949_v3 }
 0xa5a   : > { %v6826_v9 = vpop.f32.mrf.mxu1 }
 0xa5b   : > { %v6783_v45 = vpop.f32.mrf.mxu0 }
 0xa5c   : > { %v6828_v32 = vpop.f32.mrf.mxu1  ;;  %v6827_v38 = vadd.f32 %v6826_v9, %v6783_v45 }
 0xa5d   : > { %v6785_v33 = vpop.f32.mrf.mxu0 }
 0xa5e   : > { %v6829_v40 = vadd.f32 %v6828_v32, %v6785_v33  ;;  %v6830_v51 = vpop.f32.mrf.mxu1  ;;  %v6835_v44 = vmax.f32 %v6827_v38, 0.0 }
 0xa5f   : > { %v6787_v39 = vpop.f32.mrf.mxu0 }
 0xa60   : > { %v6831_v37 = vadd.f32 %v6830_v51, %v6787_v39  ;;  %v6832_v10 = vpop.f32.mrf.mxu1  ;;  %v6836_v41 = vmax.f32 %v6829_v40, 0.0  ;;  %v6854_v46 = vmul.f32 %v6847_v21, %v6835_v44 }
 0xa61   : > { %v6789_v50 = vpop.f32.mrf.mxu0 }
 0xa62   : > { %v6837_v42 = vmax.f32 %v6831_v37, 0.0  ;;  %v6833_v43 = vadd.f32 %v6832_v10, %v6789_v50  ;;  %v6855_v53 = vmul.f32 %v6851_v61, %v6836_v41  ;;  %v6869_v60 = vadd.f32 %v6862_v54, %v6854_v46 }
 0xa64   : > { %v6838_v36 = vmax.f32 %v6833_v43, 0.0  ;;  %v6856_v52 = vmul.f32 %v6847_v21, %v6837_v42  ;;  %v6870_v59 = vadd.f32 %v6866_v49, %v6855_v53 }
 0xa66   : > { %v6857_v0 = vmul.f32 %v6851_v61, %v6838_v36  ;;  %v6871_v57 = vadd.f32 %v6862_v54, %v6856_v52 }
 0xa68   : > { %v6872_v55 = vadd.f32 %v6866_v49, %v6857_v0 }
 0xa6a   : > { %6906 = vmatprep.subr.mxu1 %v6872_v55 }
 0xa6b   : > { %6907 = vmatpush1.msra.mxu1 %v6871_v57 }
 0xa6c   : > { %6908 = vmatprep.subr.mxu1 %v6870_v59 }
 0xa6d   : > { %6909 = vmatpush1.msra.mxu1 %v6869_v60 }
 0xa6e   : > { %8040 = vmatmul.mubr.msk.f32.vlgmr.msra.gmra.mxu1 %vm6874_vm3, %v6873_v62  ;;  %8173 = vmatprep.subr.mxu1 %v9627_v5 }
 0xa6f   : > { %8174 = vmatpush3.msk.msra.mxu1 %vm7058_vm4, %v7053_v31  ;;  %8177 = vmatprep.mubr.msk.f32.mxu1 %vm9628_vm5, %v9627_v5 }
 0xa70   : > { %8175 = vmatprep.subr.mxu1 %v9627_v5 }
 0xa71   : > { %8176 = vmatpush3.msra.mxu1 %v7052_v11 }
 0xb2e   : > { %v6944_v7 = vpop.f32.mrf.mxu1 }
 0xb30   : > { %v6946_v8 = vpop.f32.mrf.mxu1 }
 0xb31   : > { %7045 = vmatprep.mubr.f32.mxu0 %v6946_v8 }
 0xb32   : > { %7046 = vmatmul.mubr.f32.vlgmr.msra.gmra.mxu0 %v6944_v7 }
 0xbf2   : > { %v8167_v13 = vpop.f32.mrf.mxu0 }
 0xbf4   : > { %v8168_v12 = vpop.f32.mrf.mxu0 }
 0xbf5   : > { %v8169_v4 = vadd.f32 %v8168_v12, %v8167_v13 }
 0xbf7   : > { %v7051_v48 = vmul.f32 0.0625, %v8169_v4 }
 0xbf9   : > { %8178 = vmatmul.mubr.msk.f32.vlgmr.msra.gmra.mxu1 %vm7054_vm6, %v7051_v48 }
 0xcb9   : > { %v7128_v56 = vpop.f32.mrf.mxu1 }
 0xcba   : > { %v7133_v29 = vsel %vm7132_vm7, %v7128_v56, -inf }
 0xcbb   : > { %7134 = vmax.xlane.f32.xlu0 %v7133_v29  ;;  %v8179_v1 = vpop.f32.mrf.mxu1 }
 0xd44   : > { %v7135_v16 = vpop.xlane.xlu0 %7134 }
 0xd45   : > { %v7136_v20 = vsub.f32 %v7128_v56, %v7135_v16 }
 0xd47   : > { %v7137_v2 = vmul.f32 1.442695, %v7136_v20 }
 0xd49   : > { %9349 = vpow2.f32 %v7137_v2 }
 0xd56   : > { %v9350_v14 = vpop.eup %9349 }
 0xd57   : > { %v7139_v5 = vsel %vm7132_vm7, %v9350_v14, 0.0 }
 0xd58   : > { %7140 = vadd.xlane.f32.xlu0 %v7139_v5 }
 0xde1   : > { %v7141_v6 = vpop.xlane.xlu0 %7140 }
 0xde2   : > { %9351 = vlog2.f32 %v7141_v6 }
 0xdef   : > { %v9352_v34 = vpop.eup %9351 }
 0xdf0   : > { %v7143_v17 = vmul.f32 0.6931472, %v9352_v34 }
 0xdf2   : > { %v7144_v18 = vsub.f32 %v7136_v20, %v7143_v17 }
 0xdf4   : > { %7145 = vst.msk [vmem:[%s588_s25] sm:$0x1] %vm7132_vm7, %v7144_v18 }
 0xdf5   : > { %9548 = shalt.err (!%p9545_p7)
}
 0xdf6   : > { %s9549_s16 = scalar_lea.hbm %s7157_s3, 16  ;;  %s9553_s24 = scalar_lea.hbm %s10639_s17, 32 }
 0xdf7   : > { %p9550_p4 = scmp.ne.s32.totalorder %s7157_s3, %s9549_s16  ;;  %p9554_p10 = scmp.lt.s32.totalorder %s7157_s3, %s10639_s17 }
 0xdf8   : > { %p9555_p8 = scmp.lt.s32.totalorder %s9553_s24, %s9549_s16 }
 0xdf9   : > { %p9551_p9 = pnand %p9550_p4, %p9748_p5 }
 0xdfa   : > { %p9556_p11 = por %p9555_p8, %p9554_p10 }
 0xdfb   : > { %p9552_p12 = pneg %p9551_p9 }
 0xdfd   : > { %p9557_p6 = pnand %p9556_p11, %p9552_p12 }
 0xdff   : > { %9560 = shalt.err (!%p9557_p6)
}
 0xe00   : > { %8208 = dma.vmem_to_hbm [thread:$0]  (%p9748_p5), %s7160_s30, 16, %s7157_s3, %s7147_s21  }
 0xe01 PF: > { %s10640_s26 = sld [smem:[#allocation22_spill]] }
 0xe02   : > { %s10641_s15 = sld [smem:[#allocation20_spill]] }
 0xe03   : > { %s10642_s29 = sld [smem:[#allocation25_spill]] }
 0xe07   : > { %p8250_p0 = scmp.ge.s32.totalorder %s10640_s26, 2 }
 0xe08   : > { %s7171_s20 = sand.u32 1, %s10641_s15  }
 0xe09   : > { %p10643_p3 = scmp.ne.s32.totalorder %s10642_s29, 0  ;;  %s7172_s22 = scalar_lea.sflag [#allocation4], %s7171_s20 }
 0xe0b   : > { %p8233_p1 = pnand %p8250_p0, %p10643_p3 }
 0xe0d   : > { %p8234_p13 = pneg %p8233_p1 }
 0xe0f   : > { %9594 = dma.done.wait (%p8234_p13), %s7172_s22, 16  }
 0xe10   : > { %9596 = vsyncadd (%p8234_p13), %s7172_s22, 4294967280  ;;  %s10644_s21 = sld [smem:[#allocation23_spill]]  ;;  %s10647_s18 = smov %s9603_s19 }
 0xe11   : > { %s10645_s16 = sld [smem:[#allocation21_spill]] }
 0xe12   : > { %s10646_s20 = sld [smem:[#allocation24_spill]] }
 0xe16   : > { %p29_p2 = scmp.ge.s32.totalorder %s10644_s21, 4  }
 0xe17   : > { %s10648_s19 = smov %s10645_s16 }
 0xe18   :  { %31 = sbr.rel (!%p29_p2) target bundleno = 10 (0xa), region = 157 }
 0xe1d   :  { %7176 = vsyncpa [#allocation3], 1 }
 0xe1e   :  { %7178 = vsyncpa [#allocation3 + $0x1], 1 }
 0xe1f   :  { %7179 = vsyncpa [#allocation6], 1 }
 0xe20   :  { %7180 = vsyncpa [#allocation9], 1 }
 0xe21   :  { %7181 = vsyncpa [#allocation12], 1 }
 0xe22   :  { %7182 = vsyncpa [#allocation4], 1 }
 0xe23   :  { %7184 = vsyncpa [#allocation4 + $0x1], 1 }

</bundles_post_ra>
